<compile_context>
chip_gen: v5e
topology: v5e:2x2
jax: 0.10.0
libtpu: 0.0.40
codegen_flags: <defaults>
</compile_context>

<pallas_src>
import math

import jax
import jax.numpy as jnp
from jax.experimental import pallas as pl
from jax.experimental.pallas import tpu as pltpu

# Hyper-parameters from Predictor.__init__
WIDTH = 252
D_MODEL = WIDTH + 4          # 256
N_LAYERS = 4
VOCAB = 1014
LN_EPS = 1e-5
SQRT_NINP = math.sqrt(WIDTH)  # enc * sqrt(self.ninp)
NEG_BIG = -1e30               # finite stand-in for the -inf key-padding bias


def _layernorm(x, w, b):
    mu = jnp.mean(x, axis=-1, keepdims=True)
    var = jnp.mean((x - mu) * (x - mu), axis=-1, keepdims=True)
    return (x - mu) * jax.lax.rsqrt(var + LN_EPS) * w + b


def predictor_kernel(x_in_ref, kbias_ref, mask_ref,
                     wqkv_ref, bqkv_ref, wo_ref, bo_ref,
                     ln1w_ref, ln1b_ref, ln2w_ref, ln2b_ref,
                     w1_ref, b1_ref, w2_ref, b2_ref,
                     wlin_ref, blin_ref,
                     out_ref, x_scr):
    """One grid step == one post-norm transformer layer (weights layer-tiled)."""
    l = pl.program_id(0)
    B, S, Dm = x_scr.shape

    @pl.when(l == 0)
    def _():
        # positional encoding already added in the wrapper; seed the carry.
        x_scr[...] = x_in_ref[...]

    xf = x_scr[...].reshape(B * S, Dm)              # (B*S, D) f32 carry
    xb16 = xf.astype(jnp.bfloat16)

    # Fused Q/K/V projection: one (B*S,D)@(D,3D) MXU matmul, f32 accumulation.
    # NOTE: MXU row utilization is B*S=16 of 256 at these shapes; for larger
    # workloads tile rows into blocks of >=128 before anything else MXU-side.
    qkv = jnp.dot(xb16, wqkv_ref[0],
                  preferred_element_type=jnp.float32) + bqkv_ref[0]
    q = qkv[:, :Dm].reshape(B, S, Dm)
    k = qkv[:, Dm:2 * Dm].reshape(B, S, Dm)
    v = qkv[:, 2 * Dm:].reshape(B, S, Dm)

    # head_dim == 1 self-attention with key_padding_mask, vectorized over batch:
    # scores[b,i,j,h] = q[b,i,h]*k[b,j,h] + key_bias[b,j,h]   (scale = 1)
    s = q[:, :, None, :] * k[:, None, :, :] + kbias_ref[...][:, None, :, :]
    m = jnp.max(s, axis=2, keepdims=True)
    p = jnp.exp(s - m)
    a = p * pl.reciprocal(jnp.sum(p, axis=2, keepdims=True), approx=True)
    ao = jnp.sum(a * v[:, None, :, :], axis=2).reshape(B * S, Dm)   # (B*S, D)

    ao = jnp.dot(ao.astype(jnp.bfloat16), wo_ref[0],
                 preferred_element_type=jnp.float32) + bo_ref[0]

    x1 = _layernorm(xf + ao, ln1w_ref[0], ln1b_ref[0])              # norm1

    h = jnp.dot(x1.astype(jnp.bfloat16), w1_ref[0],
                preferred_element_type=jnp.float32) + b1_ref[0]
    h = jnp.maximum(h, 0.0)                                         # relu
    h = jnp.dot(h.astype(jnp.bfloat16), w2_ref[0],
                preferred_element_type=jnp.float32) + b2_ref[0]
    x_new = _layernorm(x1 + h, ln2w_ref[0], ln2b_ref[0])            # norm2
    x_scr[...] = x_new.reshape(B, S, Dm)

    # Head: Linear(D,1) -> sigmoid -> exp -> reshape(mask.shape) -> * mask
    @pl.when(l == N_LAYERS - 1)
    def _():
        logits = jnp.sum(x_scr[...] * wlin_ref[...], axis=-1) + blin_ref[...]
        prob = pl.reciprocal(1.0 + jnp.exp(-logits), approx=True)   # sigmoid
        out_ref[...] = jnp.exp(prob) * mask_ref[...]


def make_params(key):
    """Deterministic synthetic parameters (shapes from Predictor.__init__).
    Weight matrices are stored (in, out) so the kernel computes x @ W + b."""
    D, L = D_MODEL, N_LAYERS
    ks = jax.random.split(key, 8)

    def w(k, shape, scale=0.05):
        return jax.random.normal(k, shape, jnp.float32) * scale

    return dict(
        emb=jax.random.uniform(ks[0], (VOCAB, D), jnp.float32, -0.1, 0.1),
        wq=w(ks[1], (L, D, D)), bq=jnp.zeros((L, 1, D), jnp.float32),
        wk=w(ks[2], (L, D, D)), bk=jnp.zeros((L, 1, D), jnp.float32),
        wv=w(ks[3], (L, D, D)), bv=jnp.zeros((L, 1, D), jnp.float32),
        wo=w(ks[4], (L, D, D)), bo=jnp.zeros((L, 1, D), jnp.float32),
        ln1w=jnp.ones((L, 1, D), jnp.float32), ln1b=jnp.zeros((L, 1, D), jnp.float32),
        ln2w=jnp.ones((L, 1, D), jnp.float32), ln2b=jnp.zeros((L, 1, D), jnp.float32),
        w1=w(ks[5], (L, D, D)), b1=jnp.zeros((L, 1, D), jnp.float32),
        w2=w(ks[6], (L, D, D)), b2=jnp.zeros((L, 1, D), jnp.float32),
        wlin=w(ks[7], (1, 1, D)), blin=jnp.zeros((1, 1), jnp.float32),
    )


def _pos_encoding_table(S):
    position = jnp.arange(S, dtype=jnp.float32)[:, None]
    div_term = jnp.exp(jnp.arange(0, D_MODEL, 2, dtype=jnp.float32)
                       * (-math.log(10000.0) / D_MODEL))
    pe = jnp.zeros((S, D_MODEL), jnp.float32)
    pe = pe.at[:, 0::2].set(jnp.sin(position * div_term))
    pe = pe.at[:, 1::2].set(jnp.cos(position * div_term))
    return pe


def predictor_forward(X, D_unused, mask, params):
    """Mirrors Predictor.forward(X, D, mask). X: (B, S, F) float32; mask: (B, S)."""
    del D_unused  # unused in the PyTorch forward as well
    B, S, _ = X.shape
    Dm, L = D_MODEL, N_LAYERS
    p = params

    # glue: embedding gather + sqrt(ninp) scaling + positional encoding
    idx = X[:, :, 0].astype(jnp.int32)
    enc = jnp.take(p["emb"], idx, axis=0) * jnp.float32(SQRT_NINP)   # (B,S,D)
    x_pe = enc + _pos_encoding_table(S)[None]

    # src_key_padding_mask = (X.sum(dim=2) > 0) -- True means "mask this key",
    # exactly as in the PyTorch forward; converted to a lane-dense additive bias
    # (large finite negative instead of -inf for robustness).
    key_padding = jnp.sum(X, axis=2) > 0                             # (B, S)
    kbias = jnp.where(key_padding, NEG_BIG, 0.0).astype(jnp.float32)
    kbias = jnp.broadcast_to(kbias[:, :, None], (B, S, Dm))          # (B,S,D)

    # bf16 weight slabs for the MXU (accumulation stays f32 in-kernel);
    # Q/K/V weights and biases fused into one slab per layer.
    wqkv = jnp.concatenate([p["wq"], p["wk"], p["wv"]], axis=-1).astype(jnp.bfloat16)
    bqkv = jnp.concatenate([p["bq"], p["bk"], p["bv"]], axis=-1)     # f32 (L,1,3D)
    wo = p["wo"].astype(jnp.bfloat16)
    w1 = p["w1"].astype(jnp.bfloat16)
    w2 = p["w2"].astype(jnp.bfloat16)

    const3 = lambda shape: pl.BlockSpec(shape, lambda l: (0, 0, 0))
    const2 = lambda shape: pl.BlockSpec(shape, lambda l: (0, 0))
    per_layer = lambda shape: pl.BlockSpec(shape, lambda l: (l, 0, 0))

    grid_spec = pltpu.PrefetchScalarGridSpec(
        num_scalar_prefetch=0,
        grid=(L,),
        in_specs=[
            const3((B, S, Dm)),           # x_pe (resident across layers)
            const3((B, S, Dm)),           # kbias
            const2((B, S)),               # mask
            per_layer((1, Dm, 3 * Dm)),   # wqkv  (bf16, double-buffered)
            per_layer((1, 1, 3 * Dm)),    # bqkv
            per_layer((1, Dm, Dm)),       # wo    (bf16)
            per_layer((1, 1, Dm)),        # bo
            per_layer((1, 1, Dm)),        # ln1w
            per_layer((1, 1, Dm)),        # ln1b
            per_layer((1, 1, Dm)),        # ln2w
            per_layer((1, 1, Dm)),        # ln2b
            per_layer((1, Dm, Dm)),       # w1    (bf16)
            per_layer((1, 1, Dm)),        # b1
            per_layer((1, Dm, Dm)),       # w2    (bf16)
            per_layer((1, 1, Dm)),        # b2
            const3((1, 1, Dm)),           # wlin
            const2((1, 1)),               # blin
        ],
        out_specs=const2((B, S)),
        scratch_shapes=[pltpu.VMEM((B, S, Dm), jnp.float32)],        # layer carry
    )

    return pl.pallas_call(
        predictor_kernel,
        out_shape=jax.ShapeDtypeStruct((B, S), jnp.float32),
        grid_spec=grid_spec,
        compiler_params=pltpu.CompilerParams(
            dimension_semantics=("arbitrary",),      # layer axis is sequential
            vmem_limit_bytes=16 * 1024 * 1024,
        ),
    )(x_pe, kbias, mask.astype(jnp.float32),
      wqkv, bqkv, wo, p["bo"],
      p["ln1w"], p["ln1b"], p["ln2w"], p["ln2b"],
      w1, p["b1"], w2, p["b2"],
      p["wlin"], p["blin"])


def predictor_reference(X, mask, params, matmul_dtype=jnp.float32):
    """Pure-JAX reference of the same eval-mode math. With the default f32 it is
    faithful to the PyTorch module; with matmul_dtype=jnp.bfloat16 it mirrors the
    kernel's precision policy (bf16 matmul inputs, f32 accumulation)."""
    B, S, _ = X.shape
    p = params

    def mm(a, w):
        return jnp.dot(a.astype(matmul_dtype), w.astype(matmul_dtype),
                       preferred_element_type=jnp.float32)

    idx = X[:, :, 0].astype(jnp.int32)
    x = jnp.take(p["emb"], idx, axis=0) * jnp.float32(SQRT_NINP)
    x = x + _pos_encoding_table(S)[None]
    kbias = jnp.where(jnp.sum(X, axis=2) > 0, NEG_BIG, 0.0)[:, None, :, None]
    for l in range(N_LAYERS):
        q = mm(x, p["wq"][l]) + p["bq"][l]
        k = mm(x, p["wk"][l]) + p["bk"][l]
        v = mm(x, p["wv"][l]) + p["bv"][l]
        s = q[:, :, None, :] * k[:, None, :, :] + kbias
        a = jax.nn.softmax(s, axis=2)
        ao = mm(jnp.sum(a * v[:, None, :, :], axis=2), p["wo"][l]) + p["bo"][l]
        x1 = _layernorm(x + ao, p["ln1w"][l], p["ln1b"][l])
        h = jnp.maximum(mm(x1, p["w1"][l]) + p["b1"][l], 0.0)
        h = mm(h, p["w2"][l]) + p["b2"][l]
        x = _layernorm(x1 + h, p["ln2w"][l], p["ln2b"][l])
    logits = jnp.sum(x * p["wlin"], axis=-1) + p["blin"]
    return jnp.exp(jax.nn.sigmoid(logits)) * mask


if __name__ == "__main__":
    B, S, F = 2, 8, 3
    key = jax.random.PRNGKey(0)
    k_par, k_idx, k_mask, k_d = jax.random.split(key, 4)
    params = make_params(k_par)

    # Build X so that feature 0 holds valid embedding indices and the key
    # padding pattern is mixed (positions j < 5 unmasked, j >= 5 masked),
    # keeping every query with at least one unmasked key.
    idx = jax.random.randint(k_idx, (B, S), 0, VOCAB).astype(jnp.float32)
    X = jnp.zeros((B, S, F), jnp.float32)
    X = X.at[:, :, 0].set(idx)
    pad_flag = (jnp.arange(S) >= 5)[None, :]                 # (1, S)
    X = X.at[:, :, 1].set(jnp.where(pad_flag, 1.0, -(idx + 1.0)))
    X = X.at[:, :, 2].set(0.0)

    mask = jax.random.uniform(k_mask, (B, S), jnp.float32, 0.1, 1.0)
    D_arg = jax.random.normal(k_d, (B, S), jnp.float32)      # unused, like `D` in forward
    # TODO(synk): the `np.isnan(pred.sum().item())` debug branch in forward is a no-op; not ported.

    pred = predictor_forward(X, D_arg, mask, params)
    pred = jax.block_until_ready(pred)

    ref_bf16 = predictor_reference(X, mask, params, jnp.bfloat16)  # kernel precision policy
    ref_f32 = predictor_reference(X, mask, params)                 # module-faithful f32

    assert pred.shape == mask.shape
    assert bool(jnp.all(jnp.isfinite(pred)))
    # Tight check vs a reference using the same bf16/f32-accum policy...
    assert bool(jnp.allclose(pred, ref_bf16, rtol=2e-2, atol=2e-2))
    # ...and a looser check vs the pure-f32 module math (bf16 quantization headroom).
    assert bool(jnp.allclose(pred, ref_f32, rtol=5e-2, atol=5e-2))
    print("KERNEL_OK")
</pallas_src>

<mosaic_0001>
module attributes {stable_mosaic.version = 11 : i64} {
  func.func @predictor_kernel(%arg0: i32, %arg1: memref<2x8x256xf32, #tpu.memory_space<vmem>>, %arg2: memref<2x8x256xf32, #tpu.memory_space<vmem>>, %arg3: memref<2x8xf32, #tpu.memory_space<vmem>>, %arg4: memref<1x256x768xbf16, #tpu.memory_space<vmem>>, %arg5: memref<1x1x768xf32, #tpu.memory_space<vmem>>, %arg6: memref<1x256x256xbf16, #tpu.memory_space<vmem>>, %arg7: memref<1x1x256xf32, #tpu.memory_space<vmem>>, %arg8: memref<1x1x256xf32, #tpu.memory_space<vmem>>, %arg9: memref<1x1x256xf32, #tpu.memory_space<vmem>>, %arg10: memref<1x1x256xf32, #tpu.memory_space<vmem>>, %arg11: memref<1x1x256xf32, #tpu.memory_space<vmem>>, %arg12: memref<1x256x256xbf16, #tpu.memory_space<vmem>>, %arg13: memref<1x1x256xf32, #tpu.memory_space<vmem>>, %arg14: memref<1x256x256xbf16, #tpu.memory_space<vmem>>, %arg15: memref<1x1x256xf32, #tpu.memory_space<vmem>>, %arg16: memref<1x1x256xf32, #tpu.memory_space<vmem>>, %arg17: memref<1x1xf32, #tpu.memory_space<vmem>>, %arg18: memref<2x8xf32, #tpu.memory_space<vmem>>, %arg19: memref<2x8x256xf32, #tpu.memory_space<vmem>>) attributes {dimension_semantics = [#tpu.dimension_semantics<arbitrary>], iteration_bounds = array<i64: 4>, scalar_prefetch = 0 : i64, scratch_operands = 1 : i64, tpu.core_type = #tpu.core_type<tc>, window_params = [{pipeline_mode = #tpu.pipeline_mode<synchronous>, transform_indices = @transform_0, window_bounds = array<i64: 2, 8, 256>}, {pipeline_mode = #tpu.pipeline_mode<synchronous>, transform_indices = @transform_1, window_bounds = array<i64: 2, 8, 256>}, {pipeline_mode = #tpu.pipeline_mode<synchronous>, transform_indices = @transform_2, window_bounds = array<i64: 2, 8>}, {transform_indices = @transform_3, window_bounds = array<i64: 1, 256, 768>}, {transform_indices = @transform_4, window_bounds = array<i64: 1, 1, 768>}, {transform_indices = @transform_5, window_bounds = array<i64: 1, 256, 256>}, {transform_indices = @transform_6, window_bounds = array<i64: 1, 1, 256>}, {transform_indices = @transform_7, window_bounds = array<i64: 1, 1, 256>}, {transform_indices = @transform_8, window_bounds = array<i64: 1, 1, 256>}, {transform_indices = @transform_9, window_bounds = array<i64: 1, 1, 256>}, {transform_indices = @transform_10, window_bounds = array<i64: 1, 1, 256>}, {transform_indices = @transform_11, window_bounds = array<i64: 1, 256, 256>}, {transform_indices = @transform_12, window_bounds = array<i64: 1, 1, 256>}, {transform_indices = @transform_13, window_bounds = array<i64: 1, 256, 256>}, {transform_indices = @transform_14, window_bounds = array<i64: 1, 1, 256>}, {pipeline_mode = #tpu.pipeline_mode<synchronous>, transform_indices = @transform_15, window_bounds = array<i64: 1, 1, 256>}, {pipeline_mode = #tpu.pipeline_mode<synchronous>, transform_indices = @transform_16, window_bounds = array<i64: 1, 1>}, {pipeline_mode = #tpu.pipeline_mode<synchronous>, transform_indices = @transform_17, window_bounds = array<i64: 2, 8>}]} {
    %c0_i32 = arith.constant 0 : i32
    %0 = arith.cmpi eq, %arg0, %c0_i32 : i32
    %1 = arith.extui %0 : i1 to i32
    %c0_i32_0 = arith.constant 0 : i32
    %2 = arith.cmpi ne, %1, %c0_i32_0 : i32
    scf.if %2 {
      %c0_63 = arith.constant 0 : index
      %c0_64 = arith.constant 0 : index
      %c0_65 = arith.constant 0 : index
      %132 = vector.load %arg1[%c0_63, %c0_64, %c0_65] : memref<2x8x256xf32, #tpu.memory_space<vmem>>, vector<2x8x256xf32>
      %c0_66 = arith.constant 0 : index
      %c0_67 = arith.constant 0 : index
      %c0_68 = arith.constant 0 : index
      %133 = vector.load %arg19[%c0_66, %c0_67, %c0_68] : memref<2x8x256xf32, #tpu.memory_space<vmem>>, vector<2x8x256xf32>
      tpu.vector_store %arg19[%c0_66, %c0_67, %c0_68], %132 {strides = array<i32>} : memref<2x8x256xf32, #tpu.memory_space<vmem>>, vector<2x8x256xf32>,
    } else {
    }
    %c0 = arith.constant 0 : index
    %c0_1 = arith.constant 0 : index
    %c0_2 = arith.constant 0 : index
    %3 = vector.load %arg19[%c0, %c0_1, %c0_2] : memref<2x8x256xf32, #tpu.memory_space<vmem>>, vector<2x8x256xf32>
    %4 = vector.shape_cast %3 : vector<2x8x256xf32> to vector<16x256xf32>
    %5 = arith.truncf %4 : vector<16x256xf32> to vector<16x256xbf16>
    %c0_3 = arith.constant 0 : index
    %c0_4 = arith.constant 0 : index
    %c0_5 = arith.constant 0 : index
    %6 = vector.load %arg4[%c0_3, %c0_4, %c0_5] : memref<1x256x768xbf16, #tpu.memory_space<vmem>>, vector<1x256x768xbf16>
    %7 = vector.shape_cast %6 : vector<1x256x768xbf16> to vector<256x768xbf16>
    %cst = arith.constant dense<0.000000e+00> : vector<16x768xf32>
    %8 = tpu.matmul %5, %7, %cst {dimension_numbers = #tpu.dot_dimension_numbers<[1], [0], [0], [1], [0, 0, 1, 1], [], []>} : vector<16x256xbf16>, vector<256x768xbf16>, vector<16x768xf32> -> vector<16x768xf32>
    %c0_6 = arith.constant 0 : index
    %c0_7 = arith.constant 0 : index
    %c0_8 = arith.constant 0 : index
    %9 = vector.load %arg5[%c0_6, %c0_7, %c0_8] : memref<1x1x768xf32, #tpu.memory_space<vmem>>, vector<1x1x768xf32>
    %10 = vector.shape_cast %9 : vector<1x1x768xf32> to vector<1x768xf32>
    %11 = vector.broadcast %10 : vector<1x768xf32> to vector<16x768xf32>
    %12 = arith.addf %8, %11 : vector<16x768xf32>
    %13 = vector.extract_strided_slice %12 {offsets = [0, 0], sizes = [16, 256], strides = [1, 1]} : vector<16x768xf32> to vector<16x256xf32>
    %14 = vector.shape_cast %13 : vector<16x256xf32> to vector<2x8x256xf32>
    %15 = vector.extract_strided_slice %12 {offsets = [0, 256], sizes = [16, 256], strides = [1, 1]} : vector<16x768xf32> to vector<16x256xf32>
    %16 = vector.shape_cast %15 : vector<16x256xf32> to vector<2x8x256xf32>
    %17 = vector.extract_strided_slice %12 {offsets = [0, 512], sizes = [16, 256], strides = [1, 1]} : vector<16x768xf32> to vector<16x256xf32>
    %18 = vector.shape_cast %17 : vector<16x256xf32> to vector<2x8x256xf32>
    %19 = vector.shape_cast %14 : vector<2x8x256xf32> to vector<2x8x1x256xf32>
    %20 = vector.shape_cast %16 : vector<2x8x256xf32> to vector<2x1x8x256xf32>
    %21 = vector.broadcast %19 : vector<2x8x1x256xf32> to vector<2x8x8x256xf32>
    %22 = vector.broadcast %20 : vector<2x1x8x256xf32> to vector<2x8x8x256xf32>
    %23 = arith.mulf %21, %22 : vector<2x8x8x256xf32>
    %c0_9 = arith.constant 0 : index
    %c0_10 = arith.constant 0 : index
    %c0_11 = arith.constant 0 : index
    %24 = vector.load %arg2[%c0_9, %c0_10, %c0_11] : memref<2x8x256xf32, #tpu.memory_space<vmem>>, vector<2x8x256xf32>
    %25 = vector.shape_cast %24 : vector<2x8x256xf32> to vector<2x1x8x256xf32>
    %26 = vector.broadcast %25 : vector<2x1x8x256xf32> to vector<2x8x8x256xf32>
    %27 = arith.addf %23, %26 : vector<2x8x8x256xf32>
    %cst_12 = arith.constant dense<0xFF800000> : vector<2x8x256xf32>
    %28 = vector.multi_reduction <maximumf>, %27, %cst_12 [2] : vector<2x8x8x256xf32> to vector<2x8x256xf32>
    %29 = vector.shape_cast %28 : vector<2x8x256xf32> to vector<2x8x1x256xf32>
    %30 = vector.broadcast %29 : vector<2x8x1x256xf32> to vector<2x8x8x256xf32>
    %31 = arith.subf %27, %30 : vector<2x8x8x256xf32>
    %32 = math.exp %31 : vector<2x8x8x256xf32>
    %cst_13 = arith.constant dense<0.000000e+00> : vector<2x8x256xf32>
    %33 = vector.multi_reduction <add>, %32, %cst_13 [2] : vector<2x8x8x256xf32> to vector<2x8x256xf32>
    %34 = vector.shape_cast %33 : vector<2x8x256xf32> to vector<2x8x1x256xf32>
    %35 = tpu.reciprocal %34 {approx = true} : vector<2x8x1x256xf32> -> vector<2x8x1x256xf32>
    %36 = vector.broadcast %35 : vector<2x8x1x256xf32> to vector<2x8x8x256xf32>
    %37 = arith.mulf %32, %36 : vector<2x8x8x256xf32>
    %38 = vector.shape_cast %18 : vector<2x8x256xf32> to vector<2x1x8x256xf32>
    %39 = vector.broadcast %38 : vector<2x1x8x256xf32> to vector<2x8x8x256xf32>
    %40 = arith.mulf %37, %39 : vector<2x8x8x256xf32>
    %cst_14 = arith.constant dense<0.000000e+00> : vector<2x8x256xf32>
    %41 = vector.multi_reduction <add>, %40, %cst_14 [2] : vector<2x8x8x256xf32> to vector<2x8x256xf32>
    %42 = vector.shape_cast %41 : vector<2x8x256xf32> to vector<16x256xf32>
    %43 = arith.truncf %42 : vector<16x256xf32> to vector<16x256xbf16>
    %c0_15 = arith.constant 0 : index
    %c0_16 = arith.constant 0 : index
    %c0_17 = arith.constant 0 : index
    %44 = vector.load %arg6[%c0_15, %c0_16, %c0_17] : memref<1x256x256xbf16, #tpu.memory_space<vmem>>, vector<1x256x256xbf16>
    %45 = vector.shape_cast %44 : vector<1x256x256xbf16> to vector<256x256xbf16>
    %cst_18 = arith.constant dense<0.000000e+00> : vector<16x256xf32>
    %46 = tpu.matmul %43, %45, %cst_18 {dimension_numbers = #tpu.dot_dimension_numbers<[1], [0], [0], [1], [0, 0, 1, 1], [], []>} : vector<16x256xbf16>, vector<256x256xbf16>, vector<16x256xf32> -> vector<16x256xf32>
    %c0_19 = arith.constant 0 : index
    %c0_20 = arith.constant 0 : index
    %c0_21 = arith.constant 0 : index
    %47 = vector.load %arg7[%c0_19, %c0_20, %c0_21] : memref<1x1x256xf32, #tpu.memory_space<vmem>>, vector<1x1x256xf32>
    %48 = vector.shape_cast %47 : vector<1x1x256xf32> to vector<1x256xf32>
    %49 = vector.broadcast %48 : vector<1x256xf32> to vector<16x256xf32>
    %50 = arith.addf %46, %49 : vector<16x256xf32>
    %51 = arith.addf %4, %50 : vector<16x256xf32>
    %c0_22 = arith.constant 0 : index
    %c0_23 = arith.constant 0 : index
    %c0_24 = arith.constant 0 : index
    %52 = vector.load %arg8[%c0_22, %c0_23, %c0_24] : memref<1x1x256xf32, #tpu.memory_space<vmem>>, vector<1x1x256xf32>
    %53 = vector.shape_cast %52 : vector<1x1x256xf32> to vector<1x256xf32>
    %c0_25 = arith.constant 0 : index
    %c0_26 = arith.constant 0 : index
    %c0_27 = arith.constant 0 : index
    %54 = vector.load %arg9[%c0_25, %c0_26, %c0_27] : memref<1x1x256xf32, #tpu.memory_space<vmem>>, vector<1x1x256xf32>
    %55 = vector.shape_cast %54 : vector<1x1x256xf32> to vector<1x256xf32>
    %cst_28 = arith.constant dense<0.000000e+00> : vector<16xf32>
    %56 = vector.multi_reduction <add>, %51, %cst_28 [1] : vector<16x256xf32> to vector<16xf32>
    %57 = vector.shape_cast %56 : vector<16xf32> to vector<16x1xf32>
    %cst_29 = arith.constant 2.560000e+02 : f32
    %58 = vector.broadcast %cst_29 : f32 to vector<16x1xf32>
    %59 = arith.divf %57, %58 : vector<16x1xf32>
    %60 = vector.broadcast %59 : vector<16x1xf32> to vector<16x256xf32>
    %61 = arith.subf %51, %60 : vector<16x256xf32>
    %62 = vector.broadcast %59 : vector<16x1xf32> to vector<16x256xf32>
    %63 = arith.subf %51, %62 : vector<16x256xf32>
    %64 = arith.mulf %61, %63 : vector<16x256xf32>
    %cst_30 = arith.constant dense<0.000000e+00> : vector<16xf32>
    %65 = vector.multi_reduction <add>, %64, %cst_30 [1] : vector<16x256xf32> to vector<16xf32>
    %66 = vector.shape_cast %65 : vector<16xf32> to vector<16x1xf32>
    %cst_31 = arith.constant 2.560000e+02 : f32
    %67 = vector.broadcast %cst_31 : f32 to vector<16x1xf32>
    %68 = arith.divf %66, %67 : vector<16x1xf32>
    %69 = vector.broadcast %59 : vector<16x1xf32> to vector<16x256xf32>
    %70 = arith.subf %51, %69 : vector<16x256xf32>
    %cst_32 = arith.constant 9.99999974E-6 : f32
    %71 = vector.broadcast %cst_32 : f32 to vector<16x1xf32>
    %72 = arith.addf %68, %71 : vector<16x1xf32>
    %73 = math.rsqrt %72 : vector<16x1xf32>
    %74 = vector.broadcast %73 : vector<16x1xf32> to vector<16x256xf32>
    %75 = arith.mulf %70, %74 : vector<16x256xf32>
    %76 = vector.broadcast %53 : vector<1x256xf32> to vector<16x256xf32>
    %77 = arith.mulf %75, %76 : vector<16x256xf32>
    %78 = vector.broadcast %55 : vector<1x256xf32> to vector<16x256xf32>
    %79 = arith.addf %77, %78 : vector<16x256xf32>
    %80 = arith.truncf %79 : vector<16x256xf32> to vector<16x256xbf16>
    %c0_33 = arith.constant 0 : index
    %c0_34 = arith.constant 0 : index
    %c0_35 = arith.constant 0 : index
    %81 = vector.load %arg12[%c0_33, %c0_34, %c0_35] : memref<1x256x256xbf16, #tpu.memory_space<vmem>>, vector<1x256x256xbf16>
    %82 = vector.shape_cast %81 : vector<1x256x256xbf16> to vector<256x256xbf16>
    %cst_36 = arith.constant dense<0.000000e+00> : vector<16x256xf32>
    %83 = tpu.matmul %80, %82, %cst_36 {dimension_numbers = #tpu.dot_dimension_numbers<[1], [0], [0], [1], [0, 0, 1, 1], [], []>} : vector<16x256xbf16>, vector<256x256xbf16>, vector<16x256xf32> -> vector<16x256xf32>
    %c0_37 = arith.constant 0 : index
    %c0_38 = arith.constant 0 : index
    %c0_39 = arith.constant 0 : index
    %84 = vector.load %arg13[%c0_37, %c0_38, %c0_39] : memref<1x1x256xf32, #tpu.memory_space<vmem>>, vector<1x1x256xf32>
    %85 = vector.shape_cast %84 : vector<1x1x256xf32> to vector<1x256xf32>
    %86 = vector.broadcast %85 : vector<1x256xf32> to vector<16x256xf32>
    %87 = arith.addf %83, %86 : vector<16x256xf32>
    %cst_40 = arith.constant 0.000000e+00 : f32
    %88 = vector.broadcast %cst_40 : f32 to vector<16x256xf32>
    %89 = arith.maximumf %87, %88 : vector<16x256xf32>
    %90 = arith.truncf %89 : vector<16x256xf32> to vector<16x256xbf16>
    %c0_41 = arith.constant 0 : index
    %c0_42 = arith.constant 0 : index
    %c0_43 = arith.constant 0 : index
    %91 = vector.load %arg14[%c0_41, %c0_42, %c0_43] : memref<1x256x256xbf16, #tpu.memory_space<vmem>>, vector<1x256x256xbf16>
    %92 = vector.shape_cast %91 : vector<1x256x256xbf16> to vector<256x256xbf16>
    %cst_44 = arith.constant dense<0.000000e+00> : vector<16x256xf32>
    %93 = tpu.matmul %90, %92, %cst_44 {dimension_numbers = #tpu.dot_dimension_numbers<[1], [0], [0], [1], [0, 0, 1, 1], [], []>} : vector<16x256xbf16>, vector<256x256xbf16>, vector<16x256xf32> -> vector<16x256xf32>
    %c0_45 = arith.constant 0 : index
    %c0_46 = arith.constant 0 : index
    %c0_47 = arith.constant 0 : index
    %94 = vector.load %arg15[%c0_45, %c0_46, %c0_47] : memref<1x1x256xf32, #tpu.memory_space<vmem>>, vector<1x1x256xf32>
    %95 = vector.shape_cast %94 : vector<1x1x256xf32> to vector<1x256xf32>
    %96 = vector.broadcast %95 : vector<1x256xf32> to vector<16x256xf32>
    %97 = arith.addf %93, %96 : vector<16x256xf32>
    %98 = arith.addf %79, %97 : vector<16x256xf32>
    %c0_48 = arith.constant 0 : index
    %c0_49 = arith.constant 0 : index
    %c0_50 = arith.constant 0 : index
    %99 = vector.load %arg10[%c0_48, %c0_49, %c0_50] : memref<1x1x256xf32, #tpu.memory_space<vmem>>, vector<1x1x256xf32>
    %100 = vector.shape_cast %99 : vector<1x1x256xf32> to vector<1x256xf32>
    %c0_51 = arith.constant 0 : index
    %c0_52 = arith.constant 0 : index
    %c0_53 = arith.constant 0 : index
    %101 = vector.load %arg11[%c0_51, %c0_52, %c0_53] : memref<1x1x256xf32, #tpu.memory_space<vmem>>, vector<1x1x256xf32>
    %102 = vector.shape_cast %101 : vector<1x1x256xf32> to vector<1x256xf32>
    %cst_54 = arith.constant dense<0.000000e+00> : vector<16xf32>
    %103 = vector.multi_reduction <add>, %98, %cst_54 [1] : vector<16x256xf32> to vector<16xf32>
    %104 = vector.shape_cast %103 : vector<16xf32> to vector<16x1xf32>
    %cst_55 = arith.constant 2.560000e+02 : f32
    %105 = vector.broadcast %cst_55 : f32 to vector<16x1xf32>
    %106 = arith.divf %104, %105 : vector<16x1xf32>
    %107 = vector.broadcast %106 : vector<16x1xf32> to vector<16x256xf32>
    %108 = arith.subf %98, %107 : vector<16x256xf32>
    %109 = vector.broadcast %106 : vector<16x1xf32> to vector<16x256xf32>
    %110 = arith.subf %98, %109 : vector<16x256xf32>
    %111 = arith.mulf %108, %110 : vector<16x256xf32>
    %cst_56 = arith.constant dense<0.000000e+00> : vector<16xf32>
    %112 = vector.multi_reduction <add>, %111, %cst_56 [1] : vector<16x256xf32> to vector<16xf32>
    %113 = vector.shape_cast %112 : vector<16xf32> to vector<16x1xf32>
    %cst_57 = arith.constant 2.560000e+02 : f32
    %114 = vector.broadcast %cst_57 : f32 to vector<16x1xf32>
    %115 = arith.divf %113, %114 : vector<16x1xf32>
    %116 = vector.broadcast %106 : vector<16x1xf32> to vector<16x256xf32>
    %117 = arith.subf %98, %116 : vector<16x256xf32>
    %cst_58 = arith.constant 9.99999974E-6 : f32
    %118 = vector.broadcast %cst_58 : f32 to vector<16x1xf32>
    %119 = arith.addf %115, %118 : vector<16x1xf32>
    %120 = math.rsqrt %119 : vector<16x1xf32>
    %121 = vector.broadcast %120 : vector<16x1xf32> to vector<16x256xf32>
    %122 = arith.mulf %117, %121 : vector<16x256xf32>
    %123 = vector.broadcast %100 : vector<1x256xf32> to vector<16x256xf32>
    %124 = arith.mulf %122, %123 : vector<16x256xf32>
    %125 = vector.broadcast %102 : vector<1x256xf32> to vector<16x256xf32>
    %126 = arith.addf %124, %125 : vector<16x256xf32>
    %127 = vector.shape_cast %126 : vector<16x256xf32> to vector<2x8x256xf32>
    %c0_59 = arith.constant 0 : index
    %c0_60 = arith.constant 0 : index
    %c0_61 = arith.constant 0 : index
    %128 = vector.load %arg19[%c0_59, %c0_60, %c0_61] : memref<2x8x256xf32, #tpu.memory_space<vmem>>, vector<2x8x256xf32>
    tpu.vector_store %arg19[%c0_59, %c0_60, %c0_61], %127 {strides = array<i32>} : memref<2x8x256xf32, #tpu.memory_space<vmem>>, vector<2x8x256xf32>,
    %c3_i32 = arith.constant 3 : i32
    %129 = arith.cmpi eq, %arg0, %c3_i32 : i32
    %130 = arith.extui %129 : i1 to i32
    %c0_i32_62 = arith.constant 0 : i32
    %131 = arith.cmpi ne, %130, %c0_i32_62 : i32
    scf.if %131 {
      %c0_63 = arith.constant 0 : index
      %c0_64 = arith.constant 0 : index
      %c0_65 = arith.constant 0 : index
      %132 = vector.load %arg19[%c0_63, %c0_64, %c0_65] : memref<2x8x256xf32, #tpu.memory_space<vmem>>, vector<2x8x256xf32>
      %c0_66 = arith.constant 0 : index
      %c0_67 = arith.constant 0 : index
      %c0_68 = arith.constant 0 : index
      %133 = vector.load %arg16[%c0_66, %c0_67, %c0_68] : memref<1x1x256xf32, #tpu.memory_space<vmem>>, vector<1x1x256xf32>
      %134 = vector.broadcast %133 : vector<1x1x256xf32> to vector<2x8x256xf32>
      %135 = arith.mulf %132, %134 : vector<2x8x256xf32>
      %cst_69 = arith.constant dense<0.000000e+00> : vector<2x8xf32>
      %136 = vector.multi_reduction <add>, %135, %cst_69 [2] : vector<2x8x256xf32> to vector<2x8xf32>
      %c0_70 = arith.constant 0 : index
      %c0_71 = arith.constant 0 : index
      %137 = vector.load %arg17[%c0_70, %c0_71] : memref<1x1xf32, #tpu.memory_space<vmem>>, vector<1x1xf32>
      %138 = vector.broadcast %137 : vector<1x1xf32> to vector<2x8xf32>
      %139 = arith.addf %136, %138 : vector<2x8xf32>
      %cst_72 = arith.constant 0.000000e+00 : f32
      %140 = vector.broadcast %cst_72 : f32 to vector<2x8xf32>
      %141 = arith.subf %140, %139 : vector<2x8xf32>
      %142 = math.exp %141 : vector<2x8xf32>
      %cst_73 = arith.constant 1.000000e+00 : f32
      %143 = vector.broadcast %cst_73 : f32 to vector<2x8xf32>
      %144 = arith.addf %143, %142 : vector<2x8xf32>
      %145 = tpu.reciprocal %144 {approx = true} : vector<2x8xf32> -> vector<2x8xf32>
      %146 = math.exp %145 : vector<2x8xf32>
      %c0_74 = arith.constant 0 : index
      %c0_75 = arith.constant 0 : index
      %147 = vector.load %arg3[%c0_74, %c0_75] : memref<2x8xf32, #tpu.memory_space<vmem>>, vector<2x8xf32>
      %148 = arith.mulf %146, %147 : vector<2x8xf32>
      %c0_76 = arith.constant 0 : index
      %c0_77 = arith.constant 0 : index
      %149 = vector.load %arg18[%c0_76, %c0_77] : memref<2x8xf32, #tpu.memory_space<vmem>>, vector<2x8xf32>
      tpu.vector_store %arg18[%c0_76, %c0_77], %148 {strides = array<i32>} : memref<2x8xf32, #tpu.memory_space<vmem>>, vector<2x8xf32>,
    } else {
    }
    return
  }
  func.func @transform_0(%arg0: i32) -> (i32, i32, i32) {
    %c0_i32 = arith.constant 0 : i32
    %c0_i32_0 = arith.constant 0 : i32
    %c0_i32_1 = arith.constant 0 : i32
    %c0_i32_2 = arith.constant 0 : i32
    return %c0_i32, %c0_i32_0, %c0_i32_1 : i32, i32, i32
  }
  func.func @transform_1(%arg0: i32) -> (i32, i32, i32) {
    %c0_i32 = arith.constant 0 : i32
    %c0_i32_0 = arith.constant 0 : i32
    %c0_i32_1 = arith.constant 0 : i32
    %c0_i32_2 = arith.constant 0 : i32
    return %c0_i32, %c0_i32_0, %c0_i32_1 : i32, i32, i32
  }
  func.func @transform_2(%arg0: i32) -> (i32, i32) {
    %c0_i32 = arith.constant 0 : i32
    %c0_i32_0 = arith.constant 0 : i32
    %c0_i32_1 = arith.constant 0 : i32
    return %c0_i32, %c0_i32_0 : i32, i32
  }
  func.func @transform_3(%arg0: i32) -> (i32, i32, i32) {
    %c0_i32 = arith.constant 0 : i32
    %c0_i32_0 = arith.constant 0 : i32
    %c0_i32_1 = arith.constant 0 : i32
    return %arg0, %c0_i32, %c0_i32_0 : i32, i32, i32
  }
  func.func @transform_4(%arg0: i32) -> (i32, i32, i32) {
    %c0_i32 = arith.constant 0 : i32
    %c0_i32_0 = arith.constant 0 : i32
    %c0_i32_1 = arith.constant 0 : i32
    return %arg0, %c0_i32, %c0_i32_0 : i32, i32, i32
  }
  func.func @transform_5(%arg0: i32) -> (i32, i32, i32) {
    %c0_i32 = arith.constant 0 : i32
    %c0_i32_0 = arith.constant 0 : i32
    %c0_i32_1 = arith.constant 0 : i32
    return %arg0, %c0_i32, %c0_i32_0 : i32, i32, i32
  }
  func.func @transform_6(%arg0: i32) -> (i32, i32, i32) {
    %c0_i32 = arith.constant 0 : i32
    %c0_i32_0 = arith.constant 0 : i32
    %c0_i32_1 = arith.constant 0 : i32
    return %arg0, %c0_i32, %c0_i32_0 : i32, i32, i32
  }
  func.func @transform_7(%arg0: i32) -> (i32, i32, i32) {
    %c0_i32 = arith.constant 0 : i32
    %c0_i32_0 = arith.constant 0 : i32
    %c0_i32_1 = arith.constant 0 : i32
    return %arg0, %c0_i32, %c0_i32_0 : i32, i32, i32
  }
  func.func @transform_8(%arg0: i32) -> (i32, i32, i32) {
    %c0_i32 = arith.constant 0 : i32
    %c0_i32_0 = arith.constant 0 : i32
    %c0_i32_1 = arith.constant 0 : i32
    return %arg0, %c0_i32, %c0_i32_0 : i32, i32, i32
  }
  func.func @transform_9(%arg0: i32) -> (i32, i32, i32) {
    %c0_i32 = arith.constant 0 : i32
    %c0_i32_0 = arith.constant 0 : i32
    %c0_i32_1 = arith.constant 0 : i32
    return %arg0, %c0_i32, %c0_i32_0 : i32, i32, i32
  }
  func.func @transform_10(%arg0: i32) -> (i32, i32, i32) {
    %c0_i32 = arith.constant 0 : i32
    %c0_i32_0 = arith.constant 0 : i32
    %c0_i32_1 = arith.constant 0 : i32
    return %arg0, %c0_i32, %c0_i32_0 : i32, i32, i32
  }
  func.func @transform_11(%arg0: i32) -> (i32, i32, i32) {
    %c0_i32 = arith.constant 0 : i32
    %c0_i32_0 = arith.constant 0 : i32
    %c0_i32_1 = arith.constant 0 : i32
    return %arg0, %c0_i32, %c0_i32_0 : i32, i32, i32
  }
  func.func @transform_12(%arg0: i32) -> (i32, i32, i32) {
    %c0_i32 = arith.constant 0 : i32
    %c0_i32_0 = arith.constant 0 : i32
    %c0_i32_1 = arith.constant 0 : i32
    return %arg0, %c0_i32, %c0_i32_0 : i32, i32, i32
  }
  func.func @transform_13(%arg0: i32) -> (i32, i32, i32) {
    %c0_i32 = arith.constant 0 : i32
    %c0_i32_0 = arith.constant 0 : i32
    %c0_i32_1 = arith.constant 0 : i32
    return %arg0, %c0_i32, %c0_i32_0 : i32, i32, i32
  }
  func.func @transform_14(%arg0: i32) -> (i32, i32, i32) {
    %c0_i32 = arith.constant 0 : i32
    %c0_i32_0 = arith.constant 0 : i32
    %c0_i32_1 = arith.constant 0 : i32
    return %arg0, %c0_i32, %c0_i32_0 : i32, i32, i32
  }
  func.func @transform_15(%arg0: i32) -> (i32, i32, i32) {
    %c0_i32 = arith.constant 0 : i32
    %c0_i32_0 = arith.constant 0 : i32
    %c0_i32_1 = arith.constant 0 : i32
    %c0_i32_2 = arith.constant 0 : i32
    return %c0_i32, %c0_i32_0, %c0_i32_1 : i32, i32, i32
  }
  func.func @transform_16(%arg0: i32) -> (i32, i32) {
    %c0_i32 = arith.constant 0 : i32
    %c0_i32_0 = arith.constant 0 : i32
    %c0_i32_1 = arith.constant 0 : i32
    return %c0_i32, %c0_i32_0 : i32, i32
  }
  func.func @transform_17(%arg0: i32) -> (i32, i32) {
    %c0_i32 = arith.constant 0 : i32
    %c0_i32_0 = arith.constant 0 : i32
    %c0_i32_1 = arith.constant 0 : i32
    return %c0_i32, %c0_i32_0 : i32, i32
  }
}

</mosaic_0001>

<bundles_post_ra>
// kernel: tpu_custom_call.1
= control target key start
LH: loop header
LB: loop body
LE: loop exit
PB: predicated region body
PF: predicated region fallthrough
CT: control target
= control target key end

     0   :  { %s7892_s0 = inlined_call_operand.hbm [shape: f32[2,8,256], index: 0, kind: input, shape index: {}]   ;;  %s7893_s1 = inlined_call_operand.hbm [shape: f32[2,8,256], index: 1, kind: input, shape index: {}]   ;;  %s7894_s2 = inlined_call_operand.hbm [shape: f32[2,8], index: 2, kind: input, shape index: {}]   ;;  %s7895_s3 = inlined_call_operand.hbm [shape: bf16[4,256,768], index: 3, kind: input, shape index: {}]   ;;  %s7896_s4 = inlined_call_operand.hbm [shape: f32[4,1,768], index: 4, kind: input, shape index: {}]   ;;  %s7897_s5 = inlined_call_operand.hbm [shape: bf16[4,256,256], index: 5, kind: input, shape index: {}]   ;;  %s7898_s6 = inlined_call_operand.hbm [shape: f32[4,1,256], index: 6, kind: input, shape index: {}]   ;;  %s7899_s7 = inlined_call_operand.hbm [shape: f32[4,1,256], index: 7, kind: input, shape index: {}]   ;;  %s7900_s8 = inlined_call_operand.hbm [shape: f32[4,1,256], index: 8, kind: input, shape index: {}]   ;;  %s7901_s9 = inlined_call_operand.hbm [shape: f32[4,1,256], index: 9, kind: input, shape index: {}]   ;;  %s7902_s10 = inlined_call_operand.hbm [shape: f32[4,1,256], index: 10, kind: input, shape index: {}]   ;;  %s7903_s11 = inlined_call_operand.hbm [shape: bf16[4,256,256], index: 11, kind: input, shape index: {}]   ;;  %s7904_s12 = inlined_call_operand.hbm [shape: f32[4,1,256], index: 12, kind: input, shape index: {}]   ;;  %s7905_s13 = inlined_call_operand.hbm [shape: bf16[4,256,256], index: 13, kind: input, shape index: {}]   ;;  %s7906_s14 = inlined_call_operand.hbm [shape: f32[4,1,256], index: 14, kind: input, shape index: {}]   ;;  %s7907_s15 = inlined_call_operand.hbm [shape: f32[1,1,256], index: 15, kind: input, shape index: {}]   ;;  %s7908_s16 = inlined_call_operand.<no memory space> [shape: f32[1,1], index: 16, kind: input, shape index: {}]   ;;  %s7909_s17 = inlined_call_operand.hbm [shape: f32[2,8], index: 17, kind: output, shape index: {}]  }
   0x1   :  { %7960 = sst [smem:[#allocation75_spill]] %s7892_s0  ;;  %v22_v0 = vstv %s7908_s16 }
   0x2   :  { %7961 = sst [smem:[#allocation76_spill]] %s7893_s1  ;;  %23 = vst [vmem:[#allocation3] sm:$0x1] %v22_v0 }
   0x3   :  { %7962 = sst [smem:[#allocation77_spill]] %s7894_s2 }
   0x4   :  { %7963 = sst [smem:[#allocation78_spill]] %s7895_s3 }
   0x5   :  { %7964 = sst [smem:[#allocation79_spill]] %s7897_s5 }
   0x6   :  { %7965 = sst [smem:[#allocation80_spill]] %s7899_s7 }
   0x7   :  { %7966 = sst [smem:[#allocation81_spill]] %s7901_s9 }
   0x8   :  { %7967 = sst [smem:[#allocation82_spill]] %s7904_s12 }
   0x9   :  { %7968 = sst [smem:[#allocation83_spill]] %s7906_s14 }
   0xa   :  { %7969 = sst [smem:[#allocation84_spill]] %s7907_s15 }
   0xb   :  { %7970 = sst [smem:[#allocation85_spill]] %s7909_s17 }
   0xc   :  { %24 = vsyncpa [#allocation5], 0 }
   0xd   :  { %25 = vsyncpa [#allocation8], 0 }
   0xe   :  { %26 = vsyncpa [#allocation11], 0 }
   0xf   :  { %28 = vsyncpa [#allocation11 + $0x1], 0 }
  0x10   :  { %29 = vsyncpa [#allocation14], 0 }
  0x11   :  { %31 = vsyncpa [#allocation14 + $0x1], 0 }
  0x12   :  { %32 = vsyncpa [#allocation17], 0 }
  0x13   :  { %34 = vsyncpa [#allocation17 + $0x1], 0 }
  0x14   :  { %35 = vsyncpa [#allocation20], 0 }
  0x15   :  { %37 = vsyncpa [#allocation20 + $0x1], 0 }
  0x16   :  { %38 = vsyncpa [#allocation23], 0 }
  0x17   :  { %40 = vsyncpa [#allocation23 + $0x1], 0 }
  0x18   :  { %41 = vsyncpa [#allocation26], 0 }
  0x19   :  { %43 = vsyncpa [#allocation26 + $0x1], 0 }
  0x1a   :  { %44 = vsyncpa [#allocation29], 0 }
  0x1b   :  { %45 = vsyncpa [#allocation6], 0  ;;  %s6193_s26 = smov 0   ;;  %s6195_s16 = smov 0  }
  0x1c   :  { %s6197_s27 = smov 0   ;;  %s6199_s28 = smov 0  }
  0x1d LB: > { %7971 = sst [smem:[#allocation41_spill]] %s6077_s16  ;;  %s6212_s29 = sadd.s32 4294967295, %s6085_s28   ;;  %s6085_s28 = sphi %s6199_s28, %s8071_s28   ;;  %s6081_s27 = sphi %s6197_s27, %s8075_s27   ;;  %s6077_s16 = sphi %s6195_s16, %s8074_s16   ;;  %s6073_s26 = sphi %s6193_s26, %s8072_s26  }
  0x1e   : > { %7972 = sst [smem:[#allocation42_spill]] %s6212_s29  ;;  %s6215_s0 = sadd.s32 1, %s6085_s28  }
  0x1f   : > { %7973 = sst [smem:[#allocation43_spill]] %s6215_s0  ;;  %s118_s30 = ssub.s32 %s6085_s28, %s6215_s0 }
  0x20   : > { %s121_s18 = sadd.s32 1, %s6081_s27  ;;  %p119_p0 = scmp.eq.s32.totalorder %s118_s30, 0 }
  0x21   : > { %p128_p1 = scmp.ne.s32.totalorder %s6081_s27, %s6077_s16  ;;  %p129_p2 = scmp.eq.s32.totalorder %s6085_s28, 0 }
  0x22   : > { %p134_p3 = scmp.ne.s32.totalorder %s6077_s16, %s6073_s26  ;;  %p135_p5 = scmp.eq.s32.totalorder %s6212_s29, 0 }
  0x23   : > { %s6225_s19 = scalar_select %p119_p0, %s6081_s27, %s121_s18  }
  0x24   : > { %p6227_p4 = por %p129_p2, %p128_p1  ;;  %p4239_p6 = scmp.ge.s32.totalorder %s6085_s28, 1 }
  0x25   : > { %7974 = sst [smem:[#allocation44_spill]] %s6225_s19  ;;  %p494_p7 = scmp.lt.s32.totalorder %s6085_s28, 5 }
  0x26   : > { %p6236_p8 = por %p135_p5, %p134_p3  ;;  %p4240_p9 = scmp.ne.s32.totalorder %s6212_s29, 0 }
  0x27   : > { %p6241_p10 = pnand %p4239_p6, %p494_p7  ;;  %s7980_s24 = sld [smem:[#allocation76_spill]] }
  0x28   : > { %s7976_s20 = scalar_select %p6236_p8, 1, 0 }
  0x29   : > { %s7978_s21 = scalar_select %p6241_p10, 1, 0 }
  0x2a   : > { %7977 = sst [smem:[#allocation45_spill]] %s7976_s20  ;;  %p5303_p11 = pneg %p6241_p10 }
  0x2b   : > { %7979 = sst [smem:[#allocation46_spill]] %s7978_s21  ;;  %s6087_s17 = smov [#allocation7]  }
  0x2c   : > { %s7981_s18 = sld [smem:[#allocation75_spill]]  ;;  %p6255_p12 = pnand %p5303_p11, %p135_p5 }
  0x2d   : > { %s519_s25 = sshll.u32 %s7980_s24, 4  ;;  %s521_s20 = sshll.u32 %s6087_s17, 4  ;;  %s520_s25 = int_to_ptr.hbm [resolvable:$true] %s519_s25  ;;  %s522_s20 = int_to_ptr.vmem [resolvable:$true] %s521_s20 }
  0x2e   : > { %s6088_s22 = smov 256   ;;  %s6089_s23 = smov 16  }
  0x2f   : > { %5309 = dma.hbm_to_vmem [thread:$0]  (!%p6255_p12), %s520_s25, 512, %s522_s20, [#allocation8], %s6088_s22, %s6088_s22, %s6089_s23  }
  0x30   : > { %s6090_s24 = smov [#allocation4]   ;;  %s7983_s2 = sld [smem:[#allocation77_spill]] }
  0x31   : > { %s507_s26 = sshll.u32 %s6090_s24, 4  ;;  %s7984_s15 = sld [smem:[#allocation84_spill]]  ;;  %s508_s26 = int_to_ptr.vmem [resolvable:$true] %s507_s26 }
  0x32   : > { %s505_s19 = sshll.u32 %s7981_s18, 4  ;;  %s6091_s14 = smov [#allocation9]   ;;  %s506_s19 = int_to_ptr.hbm [resolvable:$true] %s505_s19 }
  0x33   : > { %5306 = dma.hbm_to_vmem [thread:$0]  (!%p6255_p12), %s506_s19, 512, %s508_s26, [#allocation5], %s6088_s22, %s6088_s22, %s6089_s23  }
  0x34   : > { %s536_s12 = sshll.u32 %s6091_s14, 4  ;;  %s6092_s20 = smov [#allocation28]   ;;  %s537_s12 = int_to_ptr.vmem [resolvable:$true] %s536_s12 }
  0x35   : > { %s548_s25 = sshll.u32 %s6092_s20, 4  ;;  %p4244_p13 = scmp.ge.s32.totalorder %s6085_s28, 4  ;;  %s549_s25 = int_to_ptr.vmem [resolvable:$true] %s548_s25 }
  0x36   : > { %s534_s16 = sshll.u32 %s7983_s2, 4  ;;  %s6275_s29 = sand.u32 (!%p4244_p13), 1, %s6085_s28   ;;  %s535_s16 = int_to_ptr.hbm [resolvable:$true] %s534_s16 }
  0x37   : > { %s546_s21 = sshll.u32 %s7984_s15, 4  ;;  %558 = sbr.rel (%p4244_p13) target bundleno = 269 (0x10d), region = 36  ;;  %s547_s21 = int_to_ptr.hbm [resolvable:$true] %s546_s21 }
  0x38   : > { %5312 = dma.hbm_to_vmem [thread:$0]  (!%p6255_p12), %s535_s16, 32, %s537_s12, [#allocation8]  }
  0x39   : > { %5315 = dma.hbm_to_vmem [thread:$0]  (!%p6255_p12), %s547_s21, 32, %s549_s25, [#allocation29]  }
  0x3a   : > { %s6278_s14 = sand.u32 (!%p4244_p13), 1, %s6081_s27   ;;  %s5254_s12 = smul.u32 (!%p4244_p13), 768, %s6085_s28 }
  0x3b   : > { %s5253_s19 = smul.u32 (!%p4244_p13), 768, %s6278_s14  ;;  %s7985_s3 = sld [smem:[#allocation78_spill]] (!%p4244_p13) }
  0x3c   : > { %s7920_s26 = scalar_lea.sflag [#allocation11], %s6275_s29 }
  0x3d   : > { %s566_s21 = scalar_lea.vmem [#allocation10], %s5253_s19 }
  0x3e   : > { %s574_s23 = sshll.u32 %s566_s21, 4  ;;  %s575_s23 = int_to_ptr.vmem [resolvable:$true] %s574_s23 }
  0x41   : > { %s571_s0 = scalar_lea.hbm %s7985_s3, %s5254_s12  ;;  %s5657_s25 = scalar_lea.hbm %s7985_s3, 3072 }
  0x42   : > { %s572_s24 = sshll.u32 %s571_s0, 4  ;;  %s573_s24 = int_to_ptr.hbm [resolvable:$true] %s572_s24 }
  0x43   : > { %s5651_s30 = sshra.s32 %s573_s24, 4  ;;  %s5652_s30 = int_to_ptr.hbm [resolvable:$true] %s5651_s30 }
  0x44   : > { %s5653_s18 = scalar_lea.hbm %s5652_s30, 768  ;;  %p5658_p3 = scmp.lt.s32.totalorder %s5652_s30, %s7985_s3 }
  0x45   : > { %p5654_p0 = scmp.ne.s32.totalorder %s5652_s30, %s5653_s18  ;;  %p5659_p6 = scmp.lt.s32.totalorder %s5657_s25, %s5653_s18 }
  0x47   : > { %p5655_p1 = pnand %p5654_p0, %p6227_p4  ;;  %p5660_p7 = por %p5659_p6, %p5658_p3 }
  0x49   : > { %p5656_p2 = pneg %p5655_p1 }
  0x4b   : > { %p5661_p11 = pnand %p5660_p7, %p5656_p2 }
  0x4d   : > { %5664 = shalt.err (!%p5661_p11)
}
  0x4e   : > { %s6093_s19 = smov 384   ;;  %s6094_s12 = smov 24  }
  0x4f   : > { %5267 = dma.hbm_to_vmem [thread:$0]  (%p6227_p4), %s573_s24, 12288, %s575_s23, %s7920_s26, %s6093_s19, %s6093_s19, %s6094_s12  }
  0x50   : > { %s6299_s22 = sshll.u32 %s6278_s14, 8  ;;  %s6302_s2 = sshll.u32 %s6085_s28, 8 }
  0x51   : > { %s7986_s5 = sld [smem:[#allocation79_spill]]  ;;  %s607_s17 = scalar_lea.vmem [#allocation13], %s6299_s22 }
  0x52   : > { %s615_s20 = sshll.u32 %s607_s17, 4  ;;  %s7921_s25 = scalar_lea.sflag [#allocation14], %s6275_s29  ;;  %s616_s20 = int_to_ptr.vmem [resolvable:$true] %s615_s20 }
  0x57   : > { %s612_s30 = scalar_lea.hbm %s7986_s5, %s6302_s2  ;;  %s5685_s19 = scalar_lea.hbm %s7986_s5, 1024 }
  0x58   : > { %s613_s18 = sshll.u32 %s612_s30, 4  ;;  %s614_s18 = int_to_ptr.hbm [resolvable:$true] %s613_s18 }
  0x59   : > { %s5679_s16 = sshra.s32 %s614_s18, 4  ;;  %s5680_s16 = int_to_ptr.hbm [resolvable:$true] %s5679_s16 }
  0x5a   : > { %s5681_s3 = scalar_lea.hbm %s5680_s16, 256  ;;  %p5686_p1 = scmp.lt.s32.totalorder %s5680_s16, %s7986_s5 }
  0x5b   : > { %p5682_p12 = scmp.ne.s32.totalorder %s5680_s16, %s5681_s3  ;;  %p5687_p2 = scmp.lt.s32.totalorder %s5685_s19, %s5681_s3 }
  0x5d   : > { %p5683_p13 = pnand %p5682_p12, %p6227_p4  ;;  %p5688_p3 = por %p5687_p2, %p5686_p1 }
  0x5f   : > { %p5684_p0 = pneg %p5683_p13 }
  0x61   : > { %p5689_p6 = pnand %p5688_p3, %p5684_p0 }
  0x63   : > { %5692 = shalt.err (!%p5689_p6)
}
  0x64   : > { %s7922_s21 = smov 128   ;;  %s7924_s30 = smov 8  }
  0x65   : > { %5269 = dma.hbm_to_vmem [thread:$0]  (%p6227_p4), %s614_s18, 4096, %s616_s20, %s7921_s25, %s7922_s21, %s7922_s21, %s7924_s30  }
  0x66   : > { %s6326_s17 = sshll.u32 %s6278_s14, 1  ;;  %s6329_s3 = sshll.u32 %s6085_s28, 1 }
  0x67   : > { %s7987_s7 = sld [smem:[#allocation80_spill]]  ;;  %s648_s19 = scalar_lea.vmem [#allocation16], %s6326_s17 }
  0x68   : > { %s656_s12 = sshll.u32 %s648_s19, 4  ;;  %s7926_s26 = scalar_lea.sflag [#allocation17], %s6275_s29  ;;  %s657_s12 = int_to_ptr.vmem [resolvable:$true] %s656_s12 }
  0x6d   : > { %s652_s24 = scalar_lea.hbm %s7987_s7, %s6329_s3  ;;  %s5713_s25 = scalar_lea.hbm %s7987_s7, 8 }
  0x6e   : > { %s654_s0 = sshll.u32 %s652_s24, 4  ;;  %s655_s0 = int_to_ptr.hbm [resolvable:$true] %s654_s0 }
  0x6f   : > { %s5707_s5 = sshra.s32 %s655_s0, 4  ;;  %s5708_s5 = int_to_ptr.hbm [resolvable:$true] %s5707_s5 }
  0x70   : > { %s5709_s15 = scalar_lea.hbm %s5708_s5, 2  ;;  %p5714_p13 = scmp.lt.s32.totalorder %s5708_s5, %s7987_s7 }
  0x71   : > { %p5710_p7 = scmp.ne.s32.totalorder %s5708_s5, %s5709_s15  ;;  %p5715_p0 = scmp.lt.s32.totalorder %s5713_s25, %s5709_s15 }
  0x73   : > { %p5711_p11 = pnand %p5710_p7, %p6227_p4  ;;  %p5716_p1 = por %p5715_p0, %p5714_p13 }
  0x75   : > { %p5712_p12 = pneg %p5711_p11 }
  0x77   : > { %p5717_p2 = pnand %p5716_p1, %p5712_p12 }
  0x79   : > { %5720 = shalt.err (!%p5717_p2)
}
  0x7a   : > { %5271 = dma.hbm_to_vmem [thread:$0]  (%p6227_p4), %s655_s0, 32, %s657_s12, %s7926_s26  }
  0x7b   : > { %s7988_s9 = sld [smem:[#allocation81_spill]]  ;;  %s686_s21 = scalar_lea.vmem [#allocation19], %s6326_s17 }
  0x7c   : > { %s694_s5 = sshll.u32 %s686_s21, 4  ;;  %s7927_s15 = scalar_lea.sflag [#allocation20], %s6275_s29  ;;  %s695_s5 = int_to_ptr.vmem [resolvable:$true] %s694_s5 }
  0x81   : > { %s690_s19 = scalar_lea.hbm %s7988_s9, %s6329_s3  ;;  %s5741_s12 = scalar_lea.hbm %s7988_s9, 8 }
  0x82   : > { %s692_s18 = sshll.u32 %s690_s19, 4  ;;  %s693_s18 = int_to_ptr.hbm [resolvable:$true] %s692_s18 }
  0x83   : > { %s5735_s25 = sshra.s32 %s693_s18, 4  ;;  %s5736_s25 = int_to_ptr.hbm [resolvable:$true] %s5735_s25 }
  0x84   : > { %s5737_s20 = scalar_lea.hbm %s5736_s25, 2  ;;  %p5742_p11 = scmp.lt.s32.totalorder %s5736_s25, %s7988_s9 }
  0x85   : > { %p5738_p3 = scmp.ne.s32.totalorder %s5736_s25, %s5737_s20  ;;  %p5743_p12 = scmp.lt.s32.totalorder %s5741_s12, %s5737_s20 }
  0x87   : > { %p5739_p6 = pnand %p5738_p3, %p6227_p4  ;;  %p5744_p13 = por %p5743_p12, %p5742_p11 }
  0x89   : > { %p5740_p7 = pneg %p5739_p6 }
  0x8b   : > { %p5745_p0 = pnand %p5744_p13, %p5740_p7 }
  0x8d   : > { %5748 = shalt.err (!%p5745_p0)
}
  0x8e   : > { %5273 = dma.hbm_to_vmem [thread:$0]  (%p6227_p4), %s693_s18, 32, %s695_s5, %s7927_s15  }
  0x8f   : > { %s729_s19 = scalar_lea.hbm %s7903_s11, %s6302_s2  ;;  %s724_s21 = scalar_lea.vmem [#allocation22], %s6299_s22 }
  0x90   : > { %s732_s16 = sshll.u32 %s724_s21, 4  ;;  %s730_s25 = sshll.u32 %s729_s19, 4  ;;  %s733_s16 = int_to_ptr.vmem [resolvable:$true] %s732_s16  ;;  %s731_s25 = int_to_ptr.hbm [resolvable:$true] %s730_s25 }
  0x91   : > { %s721_s20 = scalar_lea.sflag [#allocation23], %s6275_s29  ;;  %s5763_s12 = sshra.s32 %s731_s25, 4  ;;  %s5764_s12 = int_to_ptr.hbm [resolvable:$true] %s5763_s12 }
  0x92   : > { %s5765_s0 = scalar_lea.hbm %s5764_s12, 256  ;;  %s5769_s18 = scalar_lea.hbm %s7903_s11, 1024 }
  0x93   : > { %p5766_p1 = scmp.ne.s32.totalorder %s5764_s12, %s5765_s0  ;;  %p5770_p6 = scmp.lt.s32.totalorder %s5764_s12, %s7903_s11 }
  0x94   : > { %p5771_p7 = scmp.lt.s32.totalorder %s5769_s18, %s5765_s0 }
  0x95   : > { %p5767_p2 = pnand %p5766_p1, %p6227_p4 }
  0x96   : > { %p5772_p11 = por %p5771_p7, %p5770_p6 }
  0x97   : > { %p5768_p3 = pneg %p5767_p2 }
  0x99   : > { %p5773_p12 = pnand %p5772_p11, %p5768_p3 }
  0x9b   : > { %5776 = shalt.err (!%p5773_p12)
}
  0x9c   : > { %s7989_s30 = smov 8   ;;  %s7990_s19 = smov 128  }
  0x9d   : > { %5275 = dma.hbm_to_vmem [thread:$0]  (%p6227_p4), %s731_s25, 4096, %s733_s16, %s721_s20, %s7990_s19, %s7990_s19, %s7989_s30  }
  0x9e   : > { %s770_s12 = scalar_lea.hbm %s7905_s13, %s6302_s2  ;;  %s765_s23 = scalar_lea.vmem [#allocation25], %s6299_s22 }
  0x9f   : > { %s771_s0 = sshll.u32 %s770_s12, 4  ;;  %s773_s18 = sshll.u32 %s765_s23, 4  ;;  %s772_s0 = int_to_ptr.hbm [resolvable:$true] %s771_s0  ;;  %s774_s18 = int_to_ptr.vmem [resolvable:$true] %s773_s18 }
  0xa0   : > { %s762_s5 = scalar_lea.sflag [#allocation26], %s6275_s29  ;;  %s5791_s24 = sshra.s32 %s772_s0, 4  ;;  %s5792_s24 = int_to_ptr.hbm [resolvable:$true] %s5791_s24 }
  0xa1   : > { %s5793_s15 = scalar_lea.hbm %s5792_s24, 256  ;;  %s5797_s16 = scalar_lea.hbm %s7905_s13, 1024 }
  0xa2   : > { %p5794_p13 = scmp.ne.s32.totalorder %s5792_s24, %s5793_s15  ;;  %p5798_p2 = scmp.lt.s32.totalorder %s5792_s24, %s7905_s13 }
  0xa3   : > { %p5799_p3 = scmp.lt.s32.totalorder %s5797_s16, %s5793_s15 }
  0xa4   : > { %p5795_p0 = pnand %p5794_p13, %p6227_p4 }
  0xa5   : > { %p5800_p6 = por %p5799_p3, %p5798_p2 }
  0xa6   : > { %p5796_p1 = pneg %p5795_p0 }
  0xa8   : > { %p5801_p7 = pnand %p5800_p6, %p5796_p1 }
  0xaa   : > { %5804 = shalt.err (!%p5801_p7)
}
  0xab   : > { %5277 = dma.hbm_to_vmem [thread:$0]  (%p6227_p4), %s772_s0, 4096, %s774_s18, %s762_s5, %s7990_s19, %s7990_s19, %s7989_s30  }
  0xac   : > { %s5255_s7 = smul.u32 6, %s6278_s14  ;;  %s633_s15 = scalar_lea.hbm %s7898_s6, %s6329_s3 }
  0xad   : > { %s5256_s9 = smul.u32 6, %s6085_s28  ;;  %s6415_s21 = sshll.u32 %s633_s15, 4  ;;  %s636_s21 = int_to_ptr.hbm [resolvable:$true] %s6415_s21 }
  0xae   : > { %s588_s16 = scalar_lea.vmem [#allocation12], %s5255_s7  ;;  %s5825_s0 = scalar_lea.hbm %s7896_s4, 24 }
  0xaf   : > { %s592_s24 = scalar_lea.hbm %s7896_s4, %s5256_s9  ;;  %s596_s25 = sshll.u32 %s588_s16, 4  ;;  %s597_s25 = int_to_ptr.vmem [resolvable:$true] %s596_s25 }
  0xb0   : > { %s594_s26 = sshll.u32 %s592_s24, 4  ;;  %s595_s26 = int_to_ptr.hbm [resolvable:$true] %s594_s26 }
  0xb1   : > { %s5819_s30 = sshra.s32 %s595_s26, 4  ;;  %s5820_s30 = int_to_ptr.hbm [resolvable:$true] %s5819_s30 }
  0xb2   : > { %s5821_s28 = scalar_lea.hbm %s5820_s30, 6  ;;  %p5826_p0 = scmp.lt.s32.totalorder %s5820_s30, %s7896_s4 }
  0xb3   : > { %p5822_p11 = scmp.ne.s32.totalorder %s5820_s30, %s5821_s28  ;;  %p5827_p1 = scmp.lt.s32.totalorder %s5825_s0, %s5821_s28 }
  0xb5   : > { %p5823_p12 = pnand %p5822_p11, %p6227_p4  ;;  %p5828_p2 = por %p5827_p1, %p5826_p0 }
  0xb7   : > { %p5824_p13 = pneg %p5823_p12 }
  0xb9   : > { %p5829_p3 = pnand %p5828_p2, %p5824_p13 }
  0xbb   : > { %5832 = shalt.err (!%p5829_p3)
}
  0xbc   : > { %s7991_s7 = scalar_lea.sflag [#allocation11], %s6275_s29  ;;  %s629_s9 = scalar_lea.vmem [#allocation15], %s6326_s17 }
  0xbd   : > { %5268 = dma.hbm_to_vmem [thread:$0]  (%p6227_p4), %s595_s26, 96, %s597_s25, %s7991_s7  }
  0xbe   : > { %s637_s2 = sshll.u32 %s629_s9, 4  ;;  %s671_s23 = scalar_lea.hbm %s7900_s8, %s6329_s3  ;;  %s638_s2 = int_to_ptr.vmem [resolvable:$true] %s637_s2 }
  0xbf   : > { %s5847_s24 = sshra.s32 %s636_s21, 4  ;;  %s5853_s14 = scalar_lea.hbm %s7898_s6, 8  ;;  %s5848_s24 = int_to_ptr.hbm [resolvable:$true] %s5847_s24 }
  0xc0   : > { %s5849_s16 = scalar_lea.hbm %s5848_s24, 2  ;;  %p5854_p12 = scmp.lt.s32.totalorder %s5848_s24, %s7898_s6 }
  0xc1   : > { %p5850_p6 = scmp.ne.s32.totalorder %s5848_s24, %s5849_s16  ;;  %p5855_p13 = scmp.lt.s32.totalorder %s5853_s14, %s5849_s16 }
  0xc3   : > { %p5851_p7 = pnand %p5850_p6, %p6227_p4  ;;  %p5856_p0 = por %p5855_p13, %p5854_p12 }
  0xc5   : > { %p5852_p11 = pneg %p5851_p7 }
  0xc7   : > { %p5857_p1 = pnand %p5856_p0, %p5852_p11 }
  0xc9   : > { %5860 = shalt.err (!%p5857_p1)
}
  0xca   : > { %s7992_s19 = scalar_lea.sflag [#allocation14], %s6275_s29  ;;  %s673_s0 = sshll.u32 %s671_s23, 4  ;;  %s674_s0 = int_to_ptr.hbm [resolvable:$true] %s673_s0 }
  0xcb   : > { %5270 = dma.hbm_to_vmem [thread:$0]  (%p6227_p4), %s636_s21, 32, %s638_s2, %s7992_s19  }
  0xcc   : > { %s667_s18 = scalar_lea.vmem [#allocation18], %s6326_s17  ;;  %s5875_s7 = sshra.s32 %s674_s0, 4  ;;  %s5876_s7 = int_to_ptr.hbm [resolvable:$true] %s5875_s7 }
  0xcd   : > { %s675_s22 = sshll.u32 %s667_s18, 4  ;;  %s5877_s9 = scalar_lea.hbm %s5876_s7, 2  ;;  %s676_s22 = int_to_ptr.vmem [resolvable:$true] %s675_s22 }
  0xce   : > { %p5878_p2 = scmp.ne.s32.totalorder %s5876_s7, %s5877_s9  ;;  %s5881_s24 = scalar_lea.hbm %s7900_s8, 8 }
  0xcf   : > { %p5882_p7 = scmp.lt.s32.totalorder %s5876_s7, %s7900_s8  ;;  %p5883_p11 = scmp.lt.s32.totalorder %s5881_s24, %s5877_s9 }
  0xd0   : > { %p5879_p3 = pnand %p5878_p2, %p6227_p4 }
  0xd1   : > { %p5884_p12 = por %p5883_p11, %p5882_p7 }
  0xd2   : > { %p5880_p6 = pneg %p5879_p3 }
  0xd4   : > { %p5885_p13 = pnand %p5884_p12, %p5880_p6 }
  0xd6   : > { %5888 = shalt.err (!%p5885_p13)
}
  0xd7   : > { %s7993_s21 = scalar_lea.sflag [#allocation17], %s6275_s29  ;;  %s709_s28 = scalar_lea.hbm %s7902_s10, %s6329_s3 }
  0xd8   : > { %5272 = dma.hbm_to_vmem [thread:$0]  (%p6227_p4), %s674_s0, 32, %s676_s22, %s7993_s21  }
  0xd9   : > { %s711_s14 = sshll.u32 %s709_s28, 4  ;;  %s705_s25 = scalar_lea.vmem [#allocation21], %s6326_s17  ;;  %s712_s14 = int_to_ptr.hbm [resolvable:$true] %s711_s14 }
  0xda   : > { %s713_s26 = sshll.u32 %s705_s25, 4  ;;  %s5903_s19 = sshra.s32 %s712_s14, 4  ;;  %s714_s26 = int_to_ptr.vmem [resolvable:$true] %s713_s26  ;;  %s5904_s19 = int_to_ptr.hbm [resolvable:$true] %s5903_s19 }
  0xdb   : > { %s5905_s18 = scalar_lea.hbm %s5904_s19, 2  ;;  %s5909_s0 = scalar_lea.hbm %s7902_s10, 8 }
  0xdc   : > { %p5906_p0 = scmp.ne.s32.totalorder %s5904_s19, %s5905_s18  ;;  %p5910_p3 = scmp.lt.s32.totalorder %s5904_s19, %s7902_s10 }
  0xdd   : > { %p5911_p6 = scmp.lt.s32.totalorder %s5909_s0, %s5905_s18 }
  0xde   : > { %p5907_p1 = pnand %p5906_p0, %p6227_p4 }
  0xdf   : > { %p5912_p7 = por %p5911_p6, %p5910_p3 }
  0xe0   : > { %p5908_p2 = pneg %p5907_p1 }
  0xe2   : > { %p5913_p11 = pnand %p5912_p7, %p5908_p2 }
  0xe4   : > { %5916 = shalt.err (!%p5913_p11)
}
  0xe5   : > { %s7994_s12 = scalar_lea.sflag [#allocation20], %s6275_s29  ;;  %s7995_s30 = sld [smem:[#allocation82_spill]] }
  0xe6   : > { %5274 = dma.hbm_to_vmem [thread:$0]  (%p6227_p4), %s712_s14, 32, %s714_s26, %s7994_s12  }
  0xe7   : > { %s746_s23 = scalar_lea.vmem [#allocation24], %s6326_s17 }
  0xe8   : > { %s754_s28 = sshll.u32 %s746_s23, 4  ;;  %s755_s28 = int_to_ptr.vmem [resolvable:$true] %s754_s28 }
  0xeb   : > { %s750_s21 = scalar_lea.hbm %s7995_s30, %s6329_s3  ;;  %s5937_s14 = scalar_lea.hbm %s7995_s30, 8 }
  0xec   : > { %s752_s2 = sshll.u32 %s750_s21, 4  ;;  %s753_s2 = int_to_ptr.hbm [resolvable:$true] %s752_s2 }
  0xed   : > { %s5931_s25 = sshra.s32 %s753_s2, 4  ;;  %s5932_s25 = int_to_ptr.hbm [resolvable:$true] %s5931_s25 }
  0xee   : > { %s5933_s19 = scalar_lea.hbm %s5932_s25, 2  ;;  %p5938_p1 = scmp.lt.s32.totalorder %s5932_s25, %s7995_s30 }
  0xef   : > { %p5934_p12 = scmp.ne.s32.totalorder %s5932_s25, %s5933_s19  ;;  %p5939_p2 = scmp.lt.s32.totalorder %s5937_s14, %s5933_s19 }
  0xf1   : > { %p5935_p13 = pnand %p5934_p12, %p6227_p4  ;;  %p5940_p3 = por %p5939_p2, %p5938_p1 }
  0xf3   : > { %p5936_p0 = pneg %p5935_p13 }
  0xf5   : > { %p5941_p6 = pnand %p5940_p3, %p5936_p0 }
  0xf7   : > { %5944 = shalt.err (!%p5941_p6)
}
  0xf8   : > { %5276 = dma.hbm_to_vmem [thread:$0]  (%p6227_p4), %s753_s2, 32, %s755_s28, %s721_s20  }
  0xf9   : > { %s7996_s15 = sld [smem:[#allocation83_spill]]  ;;  %s787_s16 = scalar_lea.vmem [#allocation27], %s6326_s17 }
  0xfa   : > { %s795_s21 = sshll.u32 %s787_s16, 4  ;;  %s796_s21 = int_to_ptr.vmem [resolvable:$true] %s795_s21 }
  0xff   : > { %s791_s12 = scalar_lea.hbm %s7996_s15, %s6329_s3  ;;  %s5965_s20 = scalar_lea.hbm %s7996_s15, 8 }
 0x100   : > { %s793_s24 = sshll.u32 %s791_s12, 4  ;;  %s794_s24 = int_to_ptr.hbm [resolvable:$true] %s793_s24 }
 0x101   : > { %s5959_s23 = sshra.s32 %s794_s24, 4  ;;  %s5960_s23 = int_to_ptr.hbm [resolvable:$true] %s5959_s23 }
 0x102   : > { %s5961_s25 = scalar_lea.hbm %s5960_s23, 2  ;;  %p5966_p13 = scmp.lt.s32.totalorder %s5960_s23, %s7996_s15 }
 0x103   : > { %p5962_p7 = scmp.ne.s32.totalorder %s5960_s23, %s5961_s25  ;;  %p5967_p0 = scmp.lt.s32.totalorder %s5965_s20, %s5961_s25 }
 0x105   : > { %p5963_p11 = pnand %p5962_p7, %p6227_p4  ;;  %p5968_p1 = por %p5967_p0, %p5966_p13 }
 0x107   : > { %p5964_p12 = pneg %p5963_p11 }
 0x109   : > { %p5969_p2 = pnand %p5968_p1, %p5964_p12 }
 0x10b   : > { %5972 = shalt.err (!%p5969_p2)
}
 0x10c   : > { %5278 = dma.hbm_to_vmem [thread:$0]  (%p6227_p4), %s794_s24, 32, %s796_s21, %s762_s5  }
 0x10d PF: > { %804 = sbr.rel (%p6241_p10) target bundleno = 2041 (0x7f9), region = 88 }
 0x112   : > { %s7998_s3 = sld [smem:[#allocation42_spill]] }
 0x113   : > { %6032 = dma.done.wait (%p135_p5), [#allocation5], 512  }
 0x114   : > { %6034 = vsyncadd (%p135_p5), [#allocation5], 4294966784 }
 0x115   : > { %6036 = dma.done.wait (%p135_p5), [#allocation8], 544  }
 0x116   : > { %6038 = vsyncadd (%p135_p5), [#allocation8], 4294966752  ;;  %s7999_s1 = sld [smem:[#allocation41_spill]] }
 0x118   : > { %s6529_s5 = sand.u32 1, %s7998_s3  }
 0x119   : > { %s822_s26 = scalar_lea.sflag [#allocation11], %s6529_s5 }
 0x11c   : > { %s823_s7 = sand.u32 1, %s7999_s1  }
 0x11d   : > { %s5257_s14 = smul.u32 768, %s823_s7 }
 0x11f   : > { %s6533_s9 = scalar_lea.vmem [#allocation10], %s5257_s14 }
 0x120   : > { %6040 = dma.done.wait (%p6236_p8), %s822_s26, 12384  }
 0x121   : > { %6042 = vsyncadd (%p6236_p8), %s822_s26, 4294954912  ;;  %s5258_s0 = smul.u32 6, %s823_s7  ;;  %s4273_s22 = sshll.u32 %s823_s7, 8 }
 0x122   : > { %s842_s24 = scalar_lea.sflag [#allocation14], %s6529_s5  ;;  %s6542_s16 = scalar_lea.vmem [#allocation13], %s4273_s22 }
 0x123   : > { %s6539_s12 = scalar_lea.vmem [#allocation12], %s5258_s0 }
 0x124   : > { %6044 = dma.done.wait (%p6236_p8), %s842_s24, 4128  }
 0x125   : > { %6046 = vsyncadd (%p6236_p8), %s842_s24, 4294963168  ;;  %s6548_s21 = sshll.u32 %s823_s7, 1  ;;  %s862_s25 = scalar_lea.sflag [#allocation17], %s6529_s5 }
 0x126   : > { %s855_s23 = scalar_lea.vmem [#allocation15], %s6548_s21  ;;  %s865_s19 = scalar_lea.vmem [#allocation16], %s6548_s21 }
 0x127   : > { %6048 = dma.done.wait (%p6236_p8), %s862_s25, 64  }
 0x128   : > { %6050 = vsyncadd (%p6236_p8), %s862_s25, 4294967232  ;;  %s875_s18 = scalar_lea.vmem [#allocation18], %s6548_s21  ;;  %s882_s20 = scalar_lea.sflag [#allocation20], %s6529_s5 }
 0x129   : > { %s885_s2 = scalar_lea.vmem [#allocation19], %s6548_s21 }
 0x12a   : > { %6052 = dma.done.wait (%p6236_p8), %s882_s20, 64  }
 0x12b   : > { %6054 = vsyncadd (%p6236_p8), %s882_s20, 4294967232  ;;  %s895_s28 = scalar_lea.vmem [#allocation21], %s6548_s21  ;;  %s902_s17 = scalar_lea.sflag [#allocation23], %s6529_s5 }
 0x12c   : > { %s6566_s1 = scalar_lea.vmem [#allocation22], %s4273_s22 }
 0x12d   : > { %6056 = dma.done.wait (%p6236_p8), %s902_s17, 4128  }
 0x12e   : > { %6058 = vsyncadd (%p6236_p8), %s902_s17, 4294963168  ;;  %s915_s7 = scalar_lea.vmem [#allocation24], %s6548_s21  ;;  %s922_s14 = scalar_lea.sflag [#allocation26], %s6529_s5 }
 0x12f   : > { %s6574_s26 = scalar_lea.vmem [#allocation25], %s4273_s22 }
 0x130   : > { %6060 = dma.done.wait (%p6236_p8), %s922_s14, 4128  }
 0x131   : > { %6062 = vsyncadd (%p6236_p8), %s922_s14, 4294963168  ;;  %s935_s0 = scalar_lea.vmem [#allocation27], %s6548_s21 }
 0x132   : > { %6064 = dma.done.wait (%p135_p5), [#allocation29], 32  }
 0x133   : > { %6066 = vsyncadd (%p135_p5), [#allocation29], 4294967264  ;;  %1045 = sbr.rel (%p4240_p9) target bundleno = 317 (0x13d), region = 156 }
 0x138   : > { %v1046_v1 = vld [vmem:[#allocation4] sm:$0xff]  ;;  %v1047_v2 = vld [vmem:[#allocation4 + $0x8] sm:$0xff]  ;;  %v1048_v3 = vld [vmem:[#allocation4 + $0x10] sm:$0xff] }
 0x139   : > { %1050 = vst [vmem:[#allocation2 + $0x10] sm:$0xff] %v1046_v1  ;;  %v1049_v4 = vld [vmem:[#allocation4 + $0x18] sm:$0xff] }
 0x13a   : > { %1051 = vst [vmem:[#allocation2] sm:$0xff] %v1047_v2 }
 0x13b   : > { %1052 = vst [vmem:[#allocation2 + $0x18] sm:$0xff] %v1048_v3 }
 0x13c   : > { %1053 = vst [vmem:[#allocation2 + $0x8] sm:$0xff] %v1049_v4 }
 0x13d PF: > { %v4455_v5 = vld [vmem:[%s6533_s9 + $0x150] sm:$0xf]  ;;  %v5106_v6 = vld [vmem:[%s6533_s9 + $0x164] sm:$0xf0]  ;;  %v5103_v10 = vld [vmem:[%s6533_s9 + $0x154] sm:$0xf] }
 0x13e   : > { %v4647_v7 = vld [vmem:[%s6533_s9 + $0x2d0] sm:$0xf]  ;;  %v4456_v8 = vor.u32 %v5106_v6, %v4455_v5  ;;  %v5154_v9 = vld [vmem:[%s6533_s9 + $0x2e4] sm:$0xf0]  ;;  %v4457_v11 = vld [vmem:[%s6533_s9 + $0x168] sm:$0xf0] }
 0x13f   : > { %v4648_v12 = vor.u32 %v5154_v9, %v4647_v7  ;;  %v4460_v13 = vor.u32 %v5103_v10, %v4457_v11  ;;  %v5151_v14 = vld [vmem:[%s6533_s9 + $0x2d4] sm:$0xf]  ;;  %v4649_v15 = vld [vmem:[%s6533_s9 + $0x2e8] sm:$0xf0]  ;;  %v4431_v16 = vld [vmem:[%s6533_s9 + $0x120] sm:$0xf] }
 0x140   : > { %1650 = vmatpush.bf16.msra.mxu0 %v4456_v8  ;;  %v4652_v17 = vor.u32 %v5151_v14, %v4649_v15  ;;  %v5100_v18 = vld [vmem:[%s6533_s9 + $0x134] sm:$0xf0]  ;;  %v4623_v19 = vld [vmem:[%s6533_s9 + $0x2a0] sm:$0xf]  ;;  %v5097_v23 = vld [vmem:[%s6533_s9 + $0x124] sm:$0xf] }
 0x141   : > { %v5148_v20 = vld [vmem:[%s6533_s9 + $0x2b4] sm:$0xf0]  ;;  %1664 = vmatpush.bf16.msra.mxu1 %v4648_v12  ;;  %1678 = vmatpush.bf16.msra.mxu2 %v4460_v13  ;;  %v4432_v21 = vor.u32 %v5100_v18, %v4431_v16  ;;  %v4433_v24 = vld [vmem:[%s6533_s9 + $0x138] sm:$0xf0]  ;;  %v5145_v25 = vld [vmem:[%s6533_s9 + $0x2a4] sm:$0xf] }
 0x142   : > { %v4624_v22 = vor.u32 %v5148_v20, %v4623_v19  ;;  %1692 = vmatpush.bf16.msra.mxu3 %v4652_v17  ;;  %v4436_v26 = vor.u32 %v5097_v23, %v4433_v24  ;;  %v4625_v27 = vld [vmem:[%s6533_s9 + $0x2b8] sm:$0xf0]  ;;  %v4407_v28 = vld [vmem:[%s6533_s9 + $0xf0] sm:$0xf]  ;;  %v5094_v29 = vld [vmem:[%s6533_s9 + $0x104] sm:$0xf0] }
 0x143   : > { %v4628_v30 = vor.u32 %v5145_v25, %v4625_v27  ;;  %v4599_v31 = vld [vmem:[%s6533_s9 + $0x270] sm:$0xf]  ;;  %v5142_v32 = vld [vmem:[%s6533_s9 + $0x284] sm:$0xf0]  ;;  %v5091_v33 = vld [vmem:[%s6533_s9 + $0xf4] sm:$0xf]  ;;  %v4408_v34 = vor.u32 %v5094_v29, %v4407_v28 }
 0x144   : > { %1651 = vmatpush.bf16.msra.mxu0 %v4432_v21  ;;  %v4409_v35 = vld [vmem:[%s6533_s9 + $0x108] sm:$0xf0]  ;;  %v5139_v36 = vld [vmem:[%s6533_s9 + $0x274] sm:$0xf]  ;;  %v4600_v38 = vor.u32 %v5142_v32, %v4599_v31  ;;  %v4383_v40 = vld [vmem:[%s6533_s9 + $0xc0] sm:$0xf] }
 0x145   : > { %v4601_v37 = vld [vmem:[%s6533_s9 + $0x288] sm:$0xf0]  ;;  %1665 = vmatpush.bf16.msra.mxu1 %v4624_v22  ;;  %1679 = vmatpush.bf16.msra.mxu2 %v4436_v26  ;;  %v4412_v39 = vor.u32 %v5091_v33, %v4409_v35  ;;  %v5088_v41 = vld [vmem:[%s6533_s9 + $0xd4] sm:$0xf0]  ;;  %v4575_v42 = vld [vmem:[%s6533_s9 + $0x240] sm:$0xf] }
 0x146   : > { %1693 = vmatpush.bf16.msra.mxu3 %v4628_v30  ;;  %v4604_v43 = vor.u32 %v5139_v36, %v4601_v37  ;;  %v5136_v44 = vld [vmem:[%s6533_s9 + $0x254] sm:$0xf0]  ;;  %v5085_v45 = vld [vmem:[%s6533_s9 + $0xc4] sm:$0xf]  ;;  %v4385_v46 = vld [vmem:[%s6533_s9 + $0xd8] sm:$0xf0]  ;;  %v4384_v49 = vor.u32 %v5088_v41, %v4383_v40 }
 0x147   : > { %v5133_v47 = vld [vmem:[%s6533_s9 + $0x244] sm:$0xf]  ;;  %v4577_v48 = vld [vmem:[%s6533_s9 + $0x258] sm:$0xf0]  ;;  %v4576_v50 = vor.u32 %v5136_v44, %v4575_v42  ;;  %v4388_v51 = vor.u32 %v5085_v45, %v4385_v46  ;;  %v4359_v52 = vld [vmem:[%s6533_s9 + $0x90] sm:$0xf] }
 0x148   : > { %1652 = vmatpush.bf16.msra.mxu0 %v4408_v34  ;;  %v5082_v53 = vld [vmem:[%s6533_s9 + $0xa4] sm:$0xf0]  ;;  %v4551_v54 = vld [vmem:[%s6533_s9 + $0x210] sm:$0xf]  ;;  %v4580_v55 = vor.u32 %v5133_v47, %v4577_v48  ;;  %v5079_v57 = vld [vmem:[%s6533_s9 + $0x94] sm:$0xf] }
 0x149   : > { %1666 = vmatpush.bf16.msra.mxu1 %v4600_v38  ;;  %1680 = vmatpush.bf16.msra.mxu2 %v4412_v39  ;;  %v5130_v56 = vld [vmem:[%s6533_s9 + $0x224] sm:$0xf0]  ;;  %v4361_v58 = vld [vmem:[%s6533_s9 + $0xa8] sm:$0xf0]  ;;  %v5127_v59 = vld [vmem:[%s6533_s9 + $0x214] sm:$0xf]  ;;  %v4360_v61 = vor.u32 %v5082_v53, %v4359_v52 }
 0x14a   : > { %1694 = vmatpush.bf16.msra.mxu3 %v4604_v43  ;;  %v4553_v60 = vld [vmem:[%s6533_s9 + $0x228] sm:$0xf0]  ;;  %v4552_v62 = vor.u32 %v5130_v56, %v4551_v54  ;;  %v4364_v63 = vor.u32 %v5079_v57, %v4361_v58  ;;  %v4335_v0 = vld [vmem:[%s6533_s9 + $0x60] sm:$0xf]  ;;  %v5076_v1 = vld [vmem:[%s6533_s9 + $0x74] sm:$0xf0] }
 0x14b   : > { %v4527_v2 = vld [vmem:[%s6533_s9 + $0x1e0] sm:$0xf]  ;;  %v4556_v3 = vor.u32 %v5127_v59, %v4553_v60  ;;  %v5124_v4 = vld [vmem:[%s6533_s9 + $0x1f4] sm:$0xf0]  ;;  %v5073_v5 = vld [vmem:[%s6533_s9 + $0x64] sm:$0xf]  ;;  %v4336_v9 = vor.u32 %v5076_v1, %v4335_v0 }
 0x14c   : > { %1653 = vmatpush.bf16.msra.mxu0 %v4384_v49  ;;  %v4337_v6 = vld [vmem:[%s6533_s9 + $0x78] sm:$0xf0]  ;;  %v5121_v7 = vld [vmem:[%s6533_s9 + $0x1e4] sm:$0xf]  ;;  %v4528_v10 = vor.u32 %v5124_v4, %v4527_v2  ;;  %v4311_v12 = vld [vmem:[%s6533_s9 + $0x30] sm:$0xf] }
 0x14d   : > { %1667 = vmatpush.bf16.msra.mxu1 %v4576_v50  ;;  %1681 = vmatpush.bf16.msra.mxu2 %v4388_v51  ;;  %v4529_v8 = vld [vmem:[%s6533_s9 + $0x1f8] sm:$0xf0]  ;;  %v4340_v11 = vor.u32 %v5073_v5, %v4337_v6  ;;  %v5070_v13 = vld [vmem:[%s6533_s9 + $0x44] sm:$0xf0]  ;;  %v4503_v14 = vld [vmem:[%s6533_s9 + $0x1b0] sm:$0xf] }
 0x14e   : > { %1695 = vmatpush.bf16.msra.mxu3 %v4580_v55  ;;  %v4532_v15 = vor.u32 %v5121_v7, %v4529_v8  ;;  %v5118_v16 = vld [vmem:[%s6533_s9 + $0x1c4] sm:$0xf0]  ;;  %v5067_v17 = vld [vmem:[%s6533_s9 + $0x34] sm:$0xf]  ;;  %v4313_v18 = vld [vmem:[%s6533_s9 + $0x48] sm:$0xf0]  ;;  %v4312_v21 = vor.u32 %v5070_v13, %v4311_v12 }
 0x14f   : > { %v5115_v19 = vld [vmem:[%s6533_s9 + $0x1b4] sm:$0xf]  ;;  %v4505_v20 = vld [vmem:[%s6533_s9 + $0x1c8] sm:$0xf0]  ;;  %v4287_v22 = vld [vmem:[%s6533_s9] sm:$0xf]  ;;  %v4504_v25 = vor.u32 %v5118_v16, %v4503_v14  ;;  %v4316_v26 = vor.u32 %v5067_v17, %v4313_v18 }
 0x150   : > { %1654 = vmatpush.bf16.msra.mxu0 %v4360_v61  ;;  %v5064_v23 = vld [vmem:[%s6533_s9 + $0x14] sm:$0xf0]  ;;  %v4479_v24 = vld [vmem:[%s6533_s9 + $0x180] sm:$0xf]  ;;  %v5061_v28 = vld [vmem:[%s6533_s9 + $0x4] sm:$0xf]  ;;  %v4508_v30 = vor.u32 %v5115_v19, %v4505_v20 }
 0x151   : > { %1668 = vmatpush.bf16.msra.mxu1 %v4552_v62  ;;  %1682 = vmatpush.bf16.msra.mxu2 %v4364_v63  ;;  %v5112_v27 = vld [vmem:[%s6533_s9 + $0x194] sm:$0xf0]  ;;  %v4289_v29 = vld [vmem:[%s6533_s9 + $0x18] sm:$0xf0]  ;;  %v5109_v31 = vld [vmem:[%s6533_s9 + $0x184] sm:$0xf]  ;;  %v4288_v37 = vor.u32 %v5064_v23, %v4287_v22 }
 0x152   : > { %1696 = vmatpush.bf16.msra.mxu3 %v4556_v3  ;;  %v4481_v32 = vld [vmem:[%s6533_s9 + $0x198] sm:$0xf0]  ;;  %v4463_v33 = vld [vmem:[%s6533_s9 + $0x158] sm:$0xf]  ;;  %v5107_v34 = vld [vmem:[%s6533_s9 + $0x16c] sm:$0xf0]  ;;  %v4480_v41 = vor.u32 %v5112_v27, %v4479_v24  ;;  %v4292_v42 = vor.u32 %v5061_v28, %v4289_v29 }
 0x153   : > { %v4655_v35 = vld [vmem:[%s6533_s9 + $0x2d8] sm:$0xf]  ;;  %v5155_v36 = vld [vmem:[%s6533_s9 + $0x2ec] sm:$0xf0]  ;;  %v5104_v38 = vld [vmem:[%s6533_s9 + $0x15c] sm:$0xf]  ;;  %v4484_v46 = vor.u32 %v5109_v31, %v4481_v32  ;;  %v4464_v47 = vor.u32 %v5107_v34, %v4463_v33 }
 0x154   : > { %1655 = vmatpush.bf16.msra.mxu0 %v4336_v9  ;;  %v4465_v39 = vld [vmem:[%s6533_s9 + $0x170] sm:$0xf0]  ;;  %v5152_v40 = vld [vmem:[%s6533_s9 + $0x2dc] sm:$0xf]  ;;  %v1057_v49 = vld [vmem:[#allocation2 + $0x8] sm:$0xff]  ;;  %v4656_v50 = vor.u32 %v5155_v36, %v4655_v35  ;;  %vm1844_vm0 = vcmask 1046528  }
 0x155   : > { %1669 = vmatpush.bf16.msra.mxu1 %v4528_v10  ;;  %1683 = vmatpush.bf16.msra.mxu2 %v4340_v11  ;;  %v4657_v43 = vld [vmem:[%s6533_s9 + $0x2f0] sm:$0xf0]  ;;  %v1055_v48 = vld [vmem:[#allocation2] sm:$0xff]  ;;  %v4468_v51 = vor.u32 %v5104_v38, %v4465_v39  ;;  %v4439_v52 = vld [vmem:[%s6533_s9 + $0x128] sm:$0xf]  ;;  %vm1826_vm1 = vcmask 1041409  }
 0x156   : > { %1697 = vmatpush.bf16.msra.mxu3 %v4532_v15  ;;  %v1054_v44 = vld [vmem:[#allocation2 + $0x10] sm:$0xff]  ;;  %v1056_v45 = vld [vmem:[#allocation2 + $0x18] sm:$0xff]  ;;  %v5101_v53 = vld [vmem:[%s6533_s9 + $0x13c] sm:$0xf0]  ;;  %v4660_v55 = vor.u32 %v5152_v40, %v4657_v43  ;;  %v6669_v62 = vpack.c.bf16 %v1057_v49, %v1055_v48  ;;  %vm1829_vm2 = vcmask 1042434   ;;  %vm1832_vm3 = vcmask 1043459  }
 0x157   : > { %v4631_v54 = vld [vmem:[%s6533_s9 + $0x2a8] sm:$0xf]  ;;  %v6662_v56 = vpack.c.bf16 %v1056_v45, %v1054_v44  ;;  %v5149_v57 = vld [vmem:[%s6533_s9 + $0x2bc] sm:$0xf0]  ;;  %v5098_v58 = vld [vmem:[%s6533_s9 + $0x12c] sm:$0xf]  ;;  %v4440_v63 = vor.u32 %v5101_v53, %v4439_v52 }
 0x158   : > { %1656 = vmatpush.bf16.msra.mxu0 %v4312_v21  ;;  %v4441_v59 = vld [vmem:[%s6533_s9 + $0x140] sm:$0xf0]  ;;  %v5146_v60 = vld [vmem:[%s6533_s9 + $0x2ac] sm:$0xf]  ;;  %v4632_v0 = vor.u32 %v5149_v57, %v4631_v54  ;;  %v4415_v2 = vld [vmem:[%s6533_s9 + $0xf8] sm:$0xf] }
 0x159   : > { %1670 = vmatpush.bf16.msra.mxu1 %v4504_v25  ;;  %1684 = vmatpush.bf16.msra.mxu2 %v4316_v26  ;;  %v4633_v61 = vld [vmem:[%s6533_s9 + $0x2c0] sm:$0xf0]  ;;  %v4444_v1 = vor.u32 %v5098_v58, %v4441_v59  ;;  %v5095_v3 = vld [vmem:[%s6533_s9 + $0x10c] sm:$0xf0]  ;;  %v4607_v4 = vld [vmem:[%s6533_s9 + $0x278] sm:$0xf] }
 0x15a   : > { %1698 = vmatpush.bf16.msra.mxu3 %v4508_v30  ;;  %v4636_v5 = vor.u32 %v5146_v60, %v4633_v61  ;;  %v5143_v6 = vld [vmem:[%s6533_s9 + $0x28c] sm:$0xf0]  ;;  %v5092_v7 = vld [vmem:[%s6533_s9 + $0xfc] sm:$0xf]  ;;  %v4417_v8 = vld [vmem:[%s6533_s9 + $0x110] sm:$0xf0]  ;;  %v4416_v11 = vor.u32 %v5095_v3, %v4415_v2 }
 0x15b   : > { %v5140_v9 = vld [vmem:[%s6533_s9 + $0x27c] sm:$0xf]  ;;  %v4609_v10 = vld [vmem:[%s6533_s9 + $0x290] sm:$0xf0]  ;;  %v4608_v12 = vor.u32 %v5143_v6, %v4607_v4  ;;  %v4420_v13 = vor.u32 %v5092_v7, %v4417_v8  ;;  %v4391_v14 = vld [vmem:[%s6533_s9 + $0xc8] sm:$0xf] }
 0x15c   : > { %1657 = vmatpush.bf16.msra.mxu0 %v4288_v37  ;;  %v5089_v15 = vld [vmem:[%s6533_s9 + $0xdc] sm:$0xf0]  ;;  %v4583_v16 = vld [vmem:[%s6533_s9 + $0x248] sm:$0xf]  ;;  %v4612_v17 = vor.u32 %v5140_v9, %v4609_v10  ;;  %v5086_v19 = vld [vmem:[%s6533_s9 + $0xcc] sm:$0xf] }
 0x15d   : > { %1671 = vmatpush.bf16.msra.mxu1 %v4480_v41  ;;  %1685 = vmatpush.bf16.msra.mxu2 %v4292_v42  ;;  %v5137_v18 = vld [vmem:[%s6533_s9 + $0x25c] sm:$0xf0]  ;;  %v4393_v20 = vld [vmem:[%s6533_s9 + $0xe0] sm:$0xf0]  ;;  %v5134_v21 = vld [vmem:[%s6533_s9 + $0x24c] sm:$0xf]  ;;  %v4392_v23 = vor.u32 %v5089_v15, %v4391_v14 }
 0x15e   : > { %1699 = vmatpush.bf16.msra.mxu3 %v4484_v46  ;;  %v4585_v22 = vld [vmem:[%s6533_s9 + $0x260] sm:$0xf0]  ;;  %v4584_v24 = vor.u32 %v5137_v18, %v4583_v16  ;;  %v4396_v25 = vor.u32 %v5086_v19, %v4393_v20  ;;  %v4367_v26 = vld [vmem:[%s6533_s9 + $0x98] sm:$0xf]  ;;  %v5083_v27 = vld [vmem:[%s6533_s9 + $0xac] sm:$0xf0] }
 0x15f   : > { %1658 = vmatmul.bf16.vlgmr.msra.gmra.mxu0 %v6662_v56  ;;  %v4559_v28 = vld [vmem:[%s6533_s9 + $0x218] sm:$0xf]  ;;  %v4588_v29 = vor.u32 %v5134_v21, %v4585_v22  ;;  %v5131_v30 = vld [vmem:[%s6533_s9 + $0x22c] sm:$0xf0]  ;;  %v5080_v31 = vld [vmem:[%s6533_s9 + $0x9c] sm:$0xf]  ;;  %v4368_v35 = vor.u32 %v5083_v27, %v4367_v26 }
 0x160   : > { %1706 = vmatpush.bf16.msrb.mxu0 %v4464_v47  ;;  %1686 = vmatmul.bf16.vlgmr.msra.gmra.mxu2 %v6662_v56  ;;  %v4369_v32 = vld [vmem:[%s6533_s9 + $0xb0] sm:$0xf0]  ;;  %v5128_v33 = vld [vmem:[%s6533_s9 + $0x21c] sm:$0xf]  ;;  %v4560_v36 = vor.u32 %v5131_v30, %v4559_v28  ;;  %v4343_v38 = vld [vmem:[%s6533_s9 + $0x68] sm:$0xf] }
 0x161   : > { %1720 = vmatpush.bf16.msrb.mxu1 %v4656_v50  ;;  %1734 = vmatpush.bf16.msrb.mxu2 %v4468_v51  ;;  %v4561_v34 = vld [vmem:[%s6533_s9 + $0x230] sm:$0xf0]  ;;  %v4372_v37 = vor.u32 %v5080_v31, %v4369_v32  ;;  %v5077_v39 = vld [vmem:[%s6533_s9 + $0x7c] sm:$0xf0]  ;;  %v4535_v40 = vld [vmem:[%s6533_s9 + $0x1e8] sm:$0xf] }
 0x162   : > { %1748 = vmatpush.bf16.msrb.mxu3 %v4660_v55  ;;  %1672 = vmatmul.bf16.vlgmr.msra.gmra.mxu1 %v6669_v62  ;;  %v4564_v41 = vor.u32 %v5128_v33, %v4561_v34  ;;  %v5125_v42 = vld [vmem:[%s6533_s9 + $0x1fc] sm:$0xf0]  ;;  %v5074_v43 = vld [vmem:[%s6533_s9 + $0x6c] sm:$0xf]  ;;  %v4345_v44 = vld [vmem:[%s6533_s9 + $0x80] sm:$0xf0]  ;;  %v4344_v47 = vor.u32 %v5077_v39, %v4343_v38 }
 0x163   : > { %1700 = vmatmul.bf16.vlgmr.msra.gmra.mxu3 %v6669_v62  ;;  %v5122_v45 = vld [vmem:[%s6533_s9 + $0x1ec] sm:$0xf]  ;;  %v4537_v46 = vld [vmem:[%s6533_s9 + $0x200] sm:$0xf0]  ;;  %v4536_v48 = vor.u32 %v5125_v42, %v4535_v40  ;;  %v4348_v49 = vor.u32 %v5074_v43, %v4345_v44  ;;  %v4319_v50 = vld [vmem:[%s6533_s9 + $0x38] sm:$0xf] }
 0x164   : > { %1707 = vmatpush.bf16.msrb.mxu0 %v4440_v63  ;;  %v5071_v51 = vld [vmem:[%s6533_s9 + $0x4c] sm:$0xf0]  ;;  %v4511_v52 = vld [vmem:[%s6533_s9 + $0x1b8] sm:$0xf]  ;;  %v4540_v53 = vor.u32 %v5122_v45, %v4537_v46  ;;  %v5068_v55 = vld [vmem:[%s6533_s9 + $0x3c] sm:$0xf] }
 0x165   : > { %1721 = vmatpush.bf16.msrb.mxu1 %v4632_v0  ;;  %1735 = vmatpush.bf16.msrb.mxu2 %v4444_v1  ;;  %v5119_v54 = vld [vmem:[%s6533_s9 + $0x1cc] sm:$0xf0]  ;;  %v4321_v57 = vld [vmem:[%s6533_s9 + $0x50] sm:$0xf0]  ;;  %v5116_v58 = vld [vmem:[%s6533_s9 + $0x1bc] sm:$0xf]  ;;  %v4320_v60 = vor.u32 %v5071_v51, %v4319_v50 }
 0x166   : > { %1749 = vmatpush.bf16.msrb.mxu3 %v4636_v5  ;;  %v4513_v59 = vld [vmem:[%s6533_s9 + $0x1d0] sm:$0xf0]  ;;  %v4295_v61 = vld [vmem:[%s6533_s9 + $0x8] sm:$0xf]  ;;  %v4512_v63 = vor.u32 %v5119_v54, %v4511_v52  ;;  %v4324_v0 = vor.u32 %v5068_v55, %v4321_v57  ;;  %v5065_v1 = vld [vmem:[%s6533_s9 + $0x1c] sm:$0xf0] }
 0x167   : > { %v4487_v2 = vld [vmem:[%s6533_s9 + $0x188] sm:$0xf]  ;;  %v5113_v3 = vld [vmem:[%s6533_s9 + $0x19c] sm:$0xf0]  ;;  %v4516_v4 = vor.u32 %v5116_v58, %v4513_v59  ;;  %v5062_v5 = vld [vmem:[%s6533_s9 + $0xc] sm:$0xf] }
 0x168   : > { %1708 = vmatpush.bf16.msrb.mxu0 %v4416_v11  ;;  %v4297_v6 = vld [vmem:[%s6533_s9 + $0x20] sm:$0xf0]  ;;  %v5110_v7 = vld [vmem:[%s6533_s9 + $0x18c] sm:$0xf]  ;;  %v4473_v10 = vld [vmem:[%s6533_s9 + $0x178] sm:$0xf0]  ;;  %v4296_v11 = vor.u32 %v5065_v1, %v4295_v61  ;;  %v4488_v14 = vor.u32 %v5113_v3, %v4487_v2 }
 0x169   : > { %1722 = vmatpush.bf16.msrb.mxu1 %v4608_v12  ;;  %1736 = vmatpush.bf16.msrb.mxu2 %v4420_v13  ;;  %v4489_v8 = vld [vmem:[%s6533_s9 + $0x1a0] sm:$0xf0]  ;;  %v4665_v13 = vld [vmem:[%s6533_s9 + $0x2f8] sm:$0xf0]  ;;  %v4300_v15 = vor.u32 %v5062_v5, %v4297_v6  ;;  %v4471_v18 = vld [vmem:[%s6533_s9 + $0x160] sm:$0xf] }
 0x16a   : > { %1750 = vmatpush.bf16.msrb.mxu3 %v4612_v17  ;;  %v5105_v9 = vld [vmem:[%s6533_s9 + $0x164] sm:$0xf]  ;;  %v4492_v16 = vor.u32 %v5110_v7, %v4489_v8  ;;  %v5108_v19 = vld [vmem:[%s6533_s9 + $0x174] sm:$0xf0]  ;;  %v5099_v20 = vld [vmem:[%s6533_s9 + $0x134] sm:$0xf] }
 0x16b   : > { %v5153_v12 = vld [vmem:[%s6533_s9 + $0x2e4] sm:$0xf]  ;;  %v4476_v17 = vor.u32 %v5105_v9, %v4473_v10  ;;  %v4449_v22 = vld [vmem:[%s6533_s9 + $0x148] sm:$0xf0]  ;;  %v4472_v27 = vor.u32 %v5108_v19, %v4471_v18  ;;  %v4447_v30 = vld [vmem:[%s6533_s9 + $0x130] sm:$0xf] }
 0x16c   : > { %1709 = vmatpush.bf16.msrb.mxu0 %v4392_v23  ;;  %v4668_v21 = vor.u32 %v5153_v12, %v4665_v13  ;;  %v4663_v23 = vld [vmem:[%s6533_s9 + $0x2e0] sm:$0xf]  ;;  %v4641_v26 = vld [vmem:[%s6533_s9 + $0x2c8] sm:$0xf0]  ;;  %v4452_v28 = vor.u32 %v5099_v20, %v4449_v22  ;;  %v5102_v31 = vld [vmem:[%s6533_s9 + $0x144] sm:$0xf0] }
 0x16d   : > { %1723 = vmatpush.bf16.msrb.mxu1 %v4584_v24  ;;  %1737 = vmatpush.bf16.msrb.mxu2 %v4396_v25  ;;  %v5156_v24 = vld [vmem:[%s6533_s9 + $0x2f4] sm:$0xf0]  ;;  %v5147_v25 = vld [vmem:[%s6533_s9 + $0x2b4] sm:$0xf]  ;;  %v5093_v32 = vld [vmem:[%s6533_s9 + $0x104] sm:$0xf]  ;;  %v4448_v39 = vor.u32 %v5102_v31, %v4447_v30 }
 0x16e   : > { %1751 = vmatpush.bf16.msrb.mxu3 %v4588_v29  ;;  %v4664_v29 = vor.u32 %v5156_v24, %v4663_v23  ;;  %v4644_v33 = vor.u32 %v5147_v25, %v4641_v26  ;;  %v4425_v34 = vld [vmem:[%s6533_s9 + $0x118] sm:$0xf0]  ;;  %v4423_v42 = vld [vmem:[%s6533_s9 + $0x100] sm:$0xf]  ;;  %v5096_v43 = vld [vmem:[%s6533_s9 + $0x114] sm:$0xf0] }
 0x16f   : > { %v4617_v38 = vld [vmem:[%s6533_s9 + $0x298] sm:$0xf0]  ;;  %v4428_v40 = vor.u32 %v5093_v32, %v4425_v34  ;;  %v5087_v44 = vld [vmem:[%s6533_s9 + $0xd4] sm:$0xf]  ;;  %v4401_v46 = vld [vmem:[%s6533_s9 + $0xe8] sm:$0xf0]  ;;  %v4424_v51 = vor.u32 %v5096_v43, %v4423_v42 }
 0x170   : > { %1710 = vmatpush.bf16.msrb.mxu0 %v4368_v35  ;;  %v4639_v35 = vld [vmem:[%s6533_s9 + $0x2b0] sm:$0xf]  ;;  %v4593_v50 = vld [vmem:[%s6533_s9 + $0x268] sm:$0xf0]  ;;  %v4404_v52 = vor.u32 %v5087_v44, %v4401_v46  ;;  %v5090_v55 = vld [vmem:[%s6533_s9 + $0xe4] sm:$0xf0] }
 0x171   : > { %1724 = vmatpush.bf16.msrb.mxu1 %v4560_v36  ;;  %1738 = vmatpush.bf16.msrb.mxu2 %v4372_v37  ;;  %v5150_v36 = vld [vmem:[%s6533_s9 + $0x2c4] sm:$0xf0]  ;;  %v5141_v37 = vld [vmem:[%s6533_s9 + $0x284] sm:$0xf]  ;;  %v4399_v54 = vld [vmem:[%s6533_s9 + $0xd0] sm:$0xf] }
 0x172   : > { %1752 = vmatpush.bf16.msrb.mxu3 %v4564_v41  ;;  %v4640_v41 = vor.u32 %v5150_v36, %v4639_v35  ;;  %v4620_v45 = vor.u32 %v5141_v37, %v4617_v38  ;;  %v5081_v57 = vld [vmem:[%s6533_s9 + $0xa4] sm:$0xf]  ;;  %v4377_v59 = vld [vmem:[%s6533_s9 + $0xb8] sm:$0xf0]  ;;  %v5138_v61 = vld [vmem:[%s6533_s9 + $0x264] sm:$0xf0]  ;;  %v4400_v1 = vor.u32 %v5090_v55, %v4399_v54 }
 0x173   : > { %v4380_v2 = vor.u32 %v5081_v57, %v4377_v59  ;;  %v5084_v5 = vld [vmem:[%s6533_s9 + $0xb4] sm:$0xf0]  ;;  %v5075_v6 = vld [vmem:[%s6533_s9 + $0x74] sm:$0xf]  ;;  %v4353_v8 = vld [vmem:[%s6533_s9 + $0x88] sm:$0xf0] }
 0x174   : > { %1711 = vmatpush.bf16.msrb.mxu0 %v4344_v47  ;;  %v4615_v47 = vld [vmem:[%s6533_s9 + $0x280] sm:$0xf]  ;;  %v5132_v10 = vld [vmem:[%s6533_s9 + $0x234] sm:$0xf0]  ;;  %v4545_v12 = vld [vmem:[%s6533_s9 + $0x208] sm:$0xf0] }
 0x175   : > { %1725 = vmatpush.bf16.msrb.mxu1 %v4536_v48  ;;  %1739 = vmatpush.bf16.msrb.mxu2 %v4348_v49  ;;  %v5144_v48 = vld [vmem:[%s6533_s9 + $0x294] sm:$0xf0]  ;;  %v5135_v49 = vld [vmem:[%s6533_s9 + $0x254] sm:$0xf]  ;;  %v4567_v9 = vld [vmem:[%s6533_s9 + $0x220] sm:$0xf] }
 0x176   : > { %1753 = vmatpush.bf16.msrb.mxu3 %v4540_v53  ;;  %v4616_v53 = vor.u32 %v5144_v48, %v4615_v47  ;;  %v4596_v58 = vor.u32 %v5135_v49, %v4593_v50  ;;  %v5069_v18 = vld [vmem:[%s6533_s9 + $0x44] sm:$0xf]  ;;  %v4329_v20 = vld [vmem:[%s6533_s9 + $0x58] sm:$0xf0]  ;;  %v5126_v22 = vld [vmem:[%s6533_s9 + $0x204] sm:$0xf0] }
 0x177   : > { %v5117_v23 = vld [vmem:[%s6533_s9 + $0x1c4] sm:$0xf]  ;;  %v4521_v24 = vld [vmem:[%s6533_s9 + $0x1d8] sm:$0xf0]  ;;  %v4332_v26 = vor.u32 %v5069_v18, %v4329_v20  ;;  %v5063_v30 = vld [vmem:[%s6533_s9 + $0x14] sm:$0xf] }
 0x178   : > { %1712 = vmatpush.bf16.msrb.mxu0 %v4320_v60  ;;  %v4591_v60 = vld [vmem:[%s6533_s9 + $0x250] sm:$0xf]  ;;  %v4524_v31 = vor.u32 %v5117_v23, %v4521_v24  ;;  %v4305_v32 = vld [vmem:[%s6533_s9 + $0x28] sm:$0xf0]  ;;  %v5120_v34 = vld [vmem:[%s6533_s9 + $0x1d4] sm:$0xf0] }
 0x179   : > { %1726 = vmatpush.bf16.msrb.mxu1 %v4512_v63  ;;  %1740 = vmatpush.bf16.msrb.mxu2 %v4324_v0  ;;  %v5129_v63 = vld [vmem:[%s6533_s9 + $0x224] sm:$0xf]  ;;  %v4569_v0 = vld [vmem:[%s6533_s9 + $0x238] sm:$0xf0]  ;;  %v4592_v3 = vor.u32 %v5138_v61, %v4591_v60  ;;  %v5111_v35 = vld [vmem:[%s6533_s9 + $0x194] sm:$0xf]  ;;  %v4308_v38 = vor.u32 %v5063_v30, %v4305_v32 }
 0x17a   : > { %1754 = vmatpush.bf16.msrb.mxu3 %v4516_v4  ;;  %v4375_v4 = vld [vmem:[%s6533_s9 + $0xa0] sm:$0xf]  ;;  %v4572_v7 = vor.u32 %v5129_v63, %v4569_v0  ;;  %v4497_v36 = vld [vmem:[%s6533_s9 + $0x1a8] sm:$0xf0]  ;;  %v4495_v43 = vld [vmem:[%s6533_s9 + $0x190] sm:$0xf] }
 0x17b   : > { %v4376_v13 = vor.u32 %v5084_v5, %v4375_v4  ;;  %v4500_v42 = vor.u32 %v5111_v35, %v4497_v36  ;;  %v5114_v44 = vld [vmem:[%s6533_s9 + $0x1a4] sm:$0xf0]  ;;  %vm1835_vm4 = vcmask 1044484   ;;  %vm1824_vm5 = vcmask 1040384   ;;  %s8068_s3 = sld [smem:[#allocation42_spill]] }
 0x17c   : > { %1713 = vmatpush.bf16.msrb.mxu0 %v4296_v11  ;;  %v5123_v11 = vld [vmem:[%s6533_s9 + $0x1f4] sm:$0xf]  ;;  %v4496_v46 = vor.u32 %v5114_v44, %v4495_v43  ;;  %v6796_v47 = vld [vmem:[%s6539_s12] sm:$0x3f]  ;;  %vm1838_vm6 = vcmask 1045509   ;;  %vm1841_vm7 = vcmask 1046534  }
 0x17d   : > { %1727 = vmatpush.bf16.msrb.mxu1 %v4488_v14  ;;  %1741 = vmatpush.bf16.msrb.mxu2 %v4300_v15  ;;  %v4356_v14 = vor.u32 %v5075_v6, %v4353_v8  ;;  %v4568_v15 = vor.u32 %v5132_v10, %v4567_v9  ;;  %v4548_v19 = vor.u32 %v5123_v11, %v4545_v12  ;;  %v1159_v48 = vperm.slane %v6796_v47, 1 }
 0x17e   : > { %1755 = vmatpush.bf16.msrb.mxu3 %v4492_v16  ;;  %v4351_v16 = vld [vmem:[%s6533_s9 + $0x70] sm:$0xf]  ;;  %vm2902_vm8 = vcmask 1047559  }
 0x17f   : > { %1714 = vmatmul.bf16.vlgmr.msrb.gmra.mxu0 %v6662_v56 }
 0x180   : > { %1728 = vmatmul.bf16.vlgmr.msrb.gmra.mxu1 %v6669_v62  ;;  %1742 = vmatmul.bf16.vlgmr.msrb.gmra.mxu2 %v6662_v56 }
 0x181   : > { %1790 = vmatpush.bf16.msra.mxu2 %v4476_v17  ;;  %1756 = vmatmul.bf16.vlgmr.msrb.gmra.mxu3 %v6669_v62  ;;  %v5078_v17 = vld [vmem:[%s6533_s9 + $0x84] sm:$0xf0]  ;;  %p5053_p4 = scmp.ne.s32.totalorder %s8068_s3, 3 }
 0x182   : > { %1804 = vmatpush.bf16.msra.mxu3 %v4668_v21  ;;  %1762 = vmatpush.bf16.msra.mxu0 %v4472_v27  ;;  %v4543_v21 = vld [vmem:[%s6533_s9 + $0x1f0] sm:$0xf]  ;;  %v4352_v25 = vor.u32 %v5078_v17, %v4351_v16  ;;  %v1160_v16 = vperm.slane %v6796_v47, 2  ;;  %v1161_v17 = vperm.slane %v6796_v47, 3 }
 0x183   : > { %1776 = vmatpush.bf16.msra.mxu1 %v4664_v29  ;;  %v4544_v27 = vor.u32 %v5126_v22, %v4543_v21  ;;  %v5072_v29 = vld [vmem:[%s6533_s9 + $0x54] sm:$0xf0] }
 0x185   : > { %1791 = vmatpush.bf16.msra.mxu2 %v4452_v28  ;;  %v4327_v28 = vld [vmem:[%s6533_s9 + $0x40] sm:$0xf] }
 0x186   : > { %1805 = vmatpush.bf16.msra.mxu3 %v4644_v33  ;;  %1763 = vmatpush.bf16.msra.mxu0 %v4448_v39  ;;  %v4519_v33 = vld [vmem:[%s6533_s9 + $0x1c0] sm:$0xf]  ;;  %v4328_v37 = vor.u32 %v5072_v29, %v4327_v28 }
 0x187   : > { %1777 = vmatpush.bf16.msra.mxu1 %v4640_v41  ;;  %v4520_v39 = vor.u32 %v5120_v34, %v4519_v33  ;;  %v5066_v41 = vld [vmem:[%s6533_s9 + $0x24] sm:$0xf0] }
 0x189   : > { %1792 = vmatpush.bf16.msra.mxu2 %v4428_v40  ;;  %v4303_v40 = vld [vmem:[%s6533_s9 + $0x10] sm:$0xf] }
 0x18a   : > { %1806 = vmatpush.bf16.msra.mxu3 %v4620_v45  ;;  %1764 = vmatpush.bf16.msra.mxu0 %v4424_v51  ;;  %v4304_v45 = vor.u32 %v5066_v41, %v4303_v40 }
 0x18b   : > { %1778 = vmatpush.bf16.msra.mxu1 %v4616_v53 }
 0x18d   : > { %1793 = vmatpush.bf16.msra.mxu2 %v4404_v52  ;;  %v1158_v52 = vperm.slane %v6796_v47, 0 }
 0x18e   : > { %1807 = vmatpush.bf16.msra.mxu3 %v4596_v58  ;;  %1765 = vmatpush.bf16.msra.mxu0 %v4400_v1 }
 0x18f   : > { %1779 = vmatpush.bf16.msra.mxu1 %v4592_v3 }
 0x191   : > { %1794 = vmatpush.bf16.msra.mxu2 %v4380_v2 }
 0x192   : > { %1808 = vmatpush.bf16.msra.mxu3 %v4572_v7  ;;  %1766 = vmatpush.bf16.msra.mxu0 %v4376_v13 }
 0x193   : > { %1780 = vmatpush.bf16.msra.mxu1 %v4568_v15 }
 0x195   : > { %1795 = vmatpush.bf16.msra.mxu2 %v4356_v14 }
 0x196   : > { %1809 = vmatpush.bf16.msra.mxu3 %v4548_v19  ;;  %1767 = vmatpush.bf16.msra.mxu0 %v4352_v25 }
 0x197   : > { %1781 = vmatpush.bf16.msra.mxu1 %v4544_v27 }
 0x199   : > { %1796 = vmatpush.bf16.msra.mxu2 %v4332_v26 }
 0x19a   : > { %1810 = vmatpush.bf16.msra.mxu3 %v4524_v31  ;;  %1768 = vmatpush.bf16.msra.mxu0 %v4328_v37 }
 0x19b   : > { %1782 = vmatpush.bf16.msra.mxu1 %v4520_v39 }
 0x19d   : > { %1797 = vmatpush.bf16.msra.mxu2 %v4308_v38 }
 0x19e   : > { %1811 = vmatpush.bf16.msra.mxu3 %v4500_v42  ;;  %1769 = vmatpush.bf16.msra.mxu0 %v4304_v45 }
 0x19f   : > { %1783 = vmatpush.bf16.msra.mxu1 %v4496_v46 }
 0x1a0   : > { %1798 = vmatmul.bf16.vlgmr.msra.gmra.mxu2 %v6662_v56 }
 0x1a1   : > { %1812 = vmatmul.bf16.vlgmr.msra.gmra.mxu3 %v6669_v62  ;;  %1770 = vmatmul.bf16.vlgmr.msra.gmra.mxu0 %v6662_v56 }
 0x1a2   : > { %1784 = vmatmul.bf16.vlgmr.msra.gmra.mxu1 %v6669_v62 }
 0x1dc   : > { %v1659_v50 = vpop.f32.mrf.mxu0 }
 0x1dd   : > { %v1660_v55 = vadd.f32 %v1659_v50, %v1158_v52 }
 0x1df   : > { %v1673_v54 = vpop.f32.mrf.mxu1 }
 0x1e0   : > { %v1674_v60 = vadd.f32 %v1673_v54, %v1660_v55 }
 0x1e3   : > { %v1687_v49 = vpop.f32.mrf.mxu2 }
 0x1e4   : > { %v1688_v51 = vadd.f32 %v1687_v49, %v1159_v48  ;;  %v1661_v56 = vpop.f32.mrf.mxu0 }
 0x1e5   : > { %v1662_v0 = vadd.f32 %v1661_v56, %v1158_v52  ;;  %v6846_v52 = vld [vmem:[#allocation7] sm:$0xff] }
 0x1e6   : > { %v1701_v53 = vpop.f32.mrf.mxu3 }
 0x1e7   : > { %v1702_v57 = vadd.f32 %v1701_v53, %v1688_v51  ;;  %v1675_v2 = vpop.f32.mrf.mxu1 }
 0x1e8   : > { %v1676_v10 = vadd.f32 %v1675_v2, %v1662_v0 }
 0x1e9   : > { %v1822_v59 = vrot.slane %v1702_v57, 7 }
 0x1eb   : > { %v1689_v58 = vpop.f32.mrf.mxu2  ;;  %v1845_v63 = vsel %vm1844_vm0, %v1822_v59, %v1674_v60  ;;  %v1827_v3 = vsel %vm1826_vm1, %v1674_v60, %v1822_v59  ;;  %v1830_v4 = vsel %vm1829_vm2, %v1674_v60, %v1822_v59  ;;  %v1833_v5 = vsel %vm1832_vm3, %v1674_v60, %v1822_v59 }
 0x1ec   : > { %v1690_v61 = vadd.f32 %v1689_v58, %v1159_v48  ;;  %v1846_v6 = vrot.slane %v1845_v63, 7  ;;  %v1836_v7 = vsel %vm1835_vm4, %v1674_v60, %v1822_v59  ;;  %v6806_v8 = vsel %vm1824_vm5, %v1674_v60, %v1822_v59 }
 0x1ed   : > { %v1828_v11 = vrot.slane %v1827_v3, 1  ;;  %v1831_v12 = vrot.slane %v1830_v4, 2  ;;  %v1834_v13 = vrot.slane %v1833_v5, 3  ;;  %v1839_v14 = vsel %vm1838_vm6, %v1674_v60, %v1822_v59 }
 0x1ee   : > { %v1703_v62 = vpop.f32.mrf.mxu3  ;;  %v1842_v15 = vsel %vm1841_vm7, %v1674_v60, %v1822_v59  ;;  %v1837_v18 = vrot.slane %v1836_v7, 4  ;;  %v1862_v19 = vperm.slane %v6806_v8, 0  ;;  %v1863_v20 = vperm.slane %v6806_v8, 1 }
 0x1ef   : > { %v1704_v1 = vadd.f32 %v1703_v62, %v1690_v61  ;;  %v1876_v21 = vperm.slane %v1846_v6, 0  ;;  %v6814_v22 = vperm.slane %v1846_v6, 1  ;;  %v1840_v24 = vrot.slane %v1839_v14, 5 }
 0x1f0   : > { %v1843_v25 = vrot.slane %v1842_v15, 6  ;;  %v6817_v26 = vperm.slane %v1828_v11, 0  ;;  %v6819_v27 = vperm.slane %v1828_v11, 1  ;;  %v6821_v28 = vperm.slane %v1831_v12, 0 }
 0x1f1   : > { %v1823_v9 = vrot.slane %v1704_v1, 7  ;;  %v6823_v29 = vperm.slane %v1831_v12, 1  ;;  %v6825_v30 = vperm.slane %v1834_v13, 0  ;;  %v6831_v34 = vperm.slane %v1834_v13, 1 }
 0x1f2   : > { %v6833_v35 = vperm.slane %v1837_v18, 0  ;;  %v6838_v42 = vperm.slane %v1837_v18, 1  ;;  %v1872_v43 = vperm.slane %v1840_v24, 0  ;;  %v6840_v44 = vperm.slane %v1840_v24, 1 }
 0x1f3   : > { %v1860_v23 = vsel %vm1844_vm0, %v1823_v9, %v1676_v10  ;;  %v6828_v31 = vsel %vm1824_vm5, %v1676_v10, %v1823_v9  ;;  %v1848_v33 = vsel %vm1826_vm1, %v1676_v10, %v1823_v9  ;;  %v1850_v39 = vsel %vm1829_vm2, %v1676_v10, %v1823_v9 }
 0x1f4   : > { %v1861_v36 = vrot.slane %v1860_v23, 7  ;;  %v1852_v40 = vsel %vm1832_vm3, %v1676_v10, %v1823_v9  ;;  %v1854_v41 = vsel %vm1835_vm4, %v1676_v10, %v1823_v9  ;;  %v1849_v46 = vrot.slane %v1848_v33, 1 }
 0x1f5   : > { %v1856_v48 = vsel %vm1838_vm6, %v1676_v10, %v1823_v9  ;;  %v1858_v49 = vsel %vm1841_vm7, %v1676_v10, %v1823_v9  ;;  %v1878_v50 = vperm.slane %v6828_v31, 0  ;;  %v1879_v51 = vperm.slane %v6828_v31, 1 }
 0x1f6   : > { %v1851_v53 = vrot.slane %v1850_v39, 2  ;;  %v1853_v54 = vrot.slane %v1852_v40, 3  ;;  %v1892_v57 = vperm.slane %v1861_v36, 0  ;;  %v6848_v58 = vperm.slane %v1861_v36, 1 }
 0x1f7   : > { %v1855_v59 = vrot.slane %v1854_v41, 4  ;;  %v1857_v60 = vrot.slane %v1856_v48, 5  ;;  %v1859_v61 = vrot.slane %v1858_v49, 6  ;;  %v1874_v56 = vperm.slane %v1843_v25, 0 }
 0x1f8   : > { %v6850_v62 = vperm.slane %v1843_v25, 1  ;;  %v6855_v2 = vperm.slane %v1849_v46, 0  ;;  %v6857_v3 = vperm.slane %v1849_v46, 1  ;;  %v6861_v7 = vperm.slane %v1851_v53, 0 }
 0x1f9   : > { %v6863_v9 = vperm.slane %v1851_v53, 1  ;;  %v6865_v10 = vperm.slane %v1853_v54, 0  ;;  %v6868_v13 = vperm.slane %v1853_v54, 1  ;;  %v6870_v14 = vperm.slane %v1855_v59, 0 }
 0x1fa   : > { %v6878_v23 = vperm.slane %v1857_v60, 1  ;;  %v6888_v33 = vperm.slane %v1859_v61, 0 }
 0x1fc   : > { %v1715_v32 = vpop.f32.mrf.mxu0 }
 0x1fd   : > { %v1716_v37 = vadd.f32 %v1715_v32, %v1160_v16  ;;  %v1729_v38 = vpop.f32.mrf.mxu1  ;;  %v6884_v32 = vld [vmem:[#allocation7 + $0x8] sm:$0xff] }
 0x1ff   : > { %v1730_v45 = vadd.f32 %v1729_v38, %v1716_v37  ;;  %v6893_v37 = vld [vmem:[#allocation7 + $0x10] sm:$0xff]  ;;  %v6895_v38 = vperm.slane %v1859_v61, 1 }
 0x201   : > { %v1926_v55 = vmul.f32 %v1862_v19, %v1730_v45  ;;  %v1940_v63 = vmul.f32 %v1876_v21, %v1730_v45  ;;  %v6874_v19 = vperm.slane %v1855_v59, 1  ;;  %v6876_v21 = vperm.slane %v1857_v60, 0 }
 0x202   : > { %v1928_v39 = vmul.f32 %v6817_v26, %v1730_v45  ;;  %v1930_v40 = vmul.f32 %v6821_v28, %v1730_v45  ;;  %v1932_v8 = vmul.f32 %v6825_v30, %v1730_v45  ;;  %v1936_v54 = vmul.f32 %v1872_v43, %v1730_v45 }
 0x203   : > { %v6853_v0 = vadd.f32 %v6846_v52, %v1926_v55  ;;  %v1743_v1 = vpop.f32.mrf.mxu2  ;;  %v6881_v24 = vadd.f32 %v6846_v52, %v1940_v63 }
 0x204   : > { %v1744_v4 = vadd.f32 %v1743_v1, %v1161_v17  ;;  %v1757_v5 = vpop.f32.mrf.mxu3  ;;  %v1717_v6 = vpop.f32.mrf.mxu0  ;;  %v6916_v60 = vadd.f32 %v6846_v52, %v1928_v39  ;;  %v6919_v30 = vadd.f32 %v6846_v52, %v1930_v40  ;;  %v6948_v40 = vadd.f32 %v6846_v52, %v1936_v54 }
 0x205   : > { %v1994_v11 = vrot.slane %v6853_v0, 4  ;;  %v1718_v12 = vadd.f32 %v1717_v6, %v1160_v16  ;;  %v1731_v18 = vpop.f32.mrf.mxu1  ;;  %8001 = vst [vmem:[#allocation47_spill] sm:$0xff] %v6881_v24  ;;  %v2078_v26 = vrot.slane %v6881_v24, 4 }
 0x206   : > { %v6872_v15 = vadd.f32 %v1757_v5, %v1744_v4  ;;  %v6933_v4 = vadd.f32 %v6846_v52, %v1932_v8 }
 0x207   : > { %v1995_v25 = vmax.f32 %v6853_v0, %v1994_v11  ;;  %v6886_v16 = vadd.f32 %v1731_v18, %v1718_v12  ;;  %v2079_v6 = vmax.f32 %v6881_v24, %v2078_v26  ;;  %v6937_v12 = vld [vmem:[#allocation7 + $0x18] sm:$0xff] }
 0x208   : > { %v1927_v36 = vmul.f32 %v1863_v20, %v6872_v15  ;;  %v1941_v46 = vmul.f32 %v6814_v22, %v6872_v15  ;;  %v1934_v20 = vmul.f32 %v6833_v35, %v1730_v45  ;;  %v1938_v22 = vmul.f32 %v1874_v56, %v1730_v45 }
 0x209   : > { %v1996_v41 = vrot.slane %v1995_v25, 2  ;;  %v1942_v48 = vmul.f32 %v1878_v50, %v6886_v16  ;;  %v1956_v49 = vmul.f32 %v1892_v57, %v6886_v16  ;;  %v6958_v31 = vmul.f32 %v6819_v27, %v6872_v15 }
 0x20a   : > { %v6904_v53 = vadd.f32 %v6884_v32, %v1927_v36  ;;  %v6922_v43 = vadd.f32 %v6884_v32, %v1941_v46  ;;  %v6940_v18 = vadd.f32 %v6846_v52, %v1934_v20  ;;  %v6974_v27 = vmul.f32 %v6831_v34, %v6872_v15 }
 0x20b   : > { %v1997_v55 = vmax.f32 %v1995_v25, %v1996_v41  ;;  %v6910_v28 = vadd.f32 %v6893_v37, %v1942_v48  ;;  %v1745_v59 = vpop.f32.mrf.mxu2  ;;  %v6925_v61 = vadd.f32 %v6893_v37, %v1956_v49 }
 0x20c   : > { %v2000_v50 = vrot.slane %v6904_v53, 4  ;;  %v1746_v57 = vadd.f32 %v1745_v59, %v1161_v17  ;;  %8002 = vst [vmem:[#allocation48_spill] sm:$0xff] %v6922_v43  ;;  %v1759_v56 = vpop.f32.mrf.mxu3  ;;  %v2084_v46 = vrot.slane %v6922_v43, 4  ;;  %v4759_v17 = vld [vmem:[%s6542_s16 + $0xb0] sm:$0xf] }
 0x20d   : > { %v1998_v35 = vrot.slane %v1997_v55, 1  ;;  %8003 = vst [vmem:[#allocation49_spill] sm:$0xff] %v6925_v61  ;;  %v2090_v45 = vrot.slane %v6910_v28, 4  ;;  %v2174_v49 = vrot.slane %v6925_v61, 4 }
 0x20e   : > { %v2001_v63 = vmax.f32 %v6904_v53, %v2000_v50  ;;  %v6929_v1 = vadd.f32 %v1759_v56, %v1746_v57  ;;  %v4727_v50 = vld [vmem:[%s6542_s16 + $0x70] sm:$0xf]  ;;  %v6970_v57 = vmul.f32 %v6823_v29, %v6872_v15  ;;  %v5171_v56 = vld [vmem:[%s6542_s16 + $0x74] sm:$0xf]  ;;  %v4729_v29 = vld [vmem:[%s6542_s16 + $0x78] sm:$0xf0] }
 0x20f   : > { %v1999_v5 = vmax.f32 %v1997_v55, %v1998_v35  ;;  %v2091_v11 = vmax.f32 %v6910_v28, %v2090_v45  ;;  %v2175_v35 = vmax.f32 %v6925_v61, %v2174_v49  ;;  %v5172_v45 = vld [vmem:[%s6542_s16 + $0x74] sm:$0xf0]  ;;  %v4719_v49 = vld [vmem:[%s6542_s16 + $0x60] sm:$0xf] }
 0x210   : > { %v2002_v25 = vrot.slane %v2001_v63, 2  ;;  %v1943_v36 = vmul.f32 %v1879_v51, %v6929_v1  ;;  %v1957_v39 = vmul.f32 %v6848_v58, %v6929_v1  ;;  %v6961_v51 = vadd.f32 %v6846_v52, %v1938_v22 }
 0x211   : > { %v2186_v41 = vsub.f32 %v6853_v0, %v1999_v5  ;;  %v2092_v48 = vrot.slane %v2091_v11, 2  ;;  %v2080_v58 = vrot.slane %v2079_v6, 2  ;;  %v2085_v52 = vmax.f32 %v6922_v43, %v2084_v46 }
 0x212   : > { %v2003_v8 = vmax.f32 %v2001_v63, %v2002_v25  ;;  %v6954_v20 = vadd.f32 %v6937_v12, %v1943_v36  ;;  %v6964_v55 = vadd.f32 %v6937_v12, %v1957_v39  ;;  %v6984_v25 = vmul.f32 %v6838_v42, %v6872_v15 }
 0x213   : > { %v2218_v0 = vmul.f32 1.442695, %v2186_v41  ;;  %v2093_v54 = vmax.f32 %v2091_v11, %v2092_v48  ;;  %v4728_v11 = vor.u32 %v5172_v45, %v4727_v50  ;;  %v6986_v34 = vmax.f32 %v2079_v6, %v2080_v58 }
 0x214   : > { %8004 = vst [vmem:[#allocation50_spill] sm:$0xff] %v6964_v55  ;;  %v2004_v26 = vrot.slane %v2003_v8, 1  ;;  %v2096_v59 = vrot.slane %v6954_v20, 4  ;;  %v2180_v39 = vrot.slane %v6964_v55, 4  ;;  %v4732_v41 = vor.u32 %v5171_v56, %v4729_v29  ;;  %v5188_v56 = vld [vmem:[%s6542_s16 + $0xf4] sm:$0xf0] }
 0x215   : > { %5371 = vpow2.f32 %v2218_v0  ;;  %v2094_v22 = vrot.slane %v2093_v54, 1  ;;  %3089 = vmatpush.bf16.msrb.mxu0 %v4728_v11  ;;  %v6994_v42 = vmul.f32 %v6840_v44, %v6872_v15  ;;  %v6998_v6 = vmul.f32 %v6850_v62, %v6872_v15  ;;  %v4791_v44 = vld [vmem:[%s6542_s16 + $0xf0] sm:$0xf]  ;;  %v5187_v29 = vld [vmem:[%s6542_s16 + $0xf4] sm:$0xf] }
 0x216   : > { %v2005_v63 = vmax.f32 %v2003_v8, %v2004_v26  ;;  %v2097_v5 = vmax.f32 %v6954_v20, %v2096_v59  ;;  %v5170_v8 = vld [vmem:[%s6542_s16 + $0x64] sm:$0xf0]  ;;  %v2086_v58 = vrot.slane %v2085_v52, 2  ;;  %v2176_v0 = vrot.slane %v2175_v35, 2  ;;  %3117 = vmatpush.bf16.msrb.mxu2 %v4732_v41  ;;  %v5169_v26 = vld [vmem:[%s6542_s16 + $0x64] sm:$0xf] }
 0x217   : > { %v2095_v36 = vmax.f32 %v2093_v54, %v2094_v22  ;;  %v4721_v59 = vld [vmem:[%s6542_s16 + $0x68] sm:$0xf0]  ;;  %v7007_v62 = vmul.f32 %v6855_v2, %v6886_v16  ;;  %v4792_v11 = vor.u32 %v5188_v56, %v4791_v44  ;;  %v5185_v56 = vld [vmem:[%s6542_s16 + $0xe4] sm:$0xf] }
 0x218   : > { %v2187_v46 = vsub.f32 %v6904_v53, %v2005_v63  ;;  %v2098_v48 = vrot.slane %v2097_v5, 2  ;;  %v4720_v53 = vor.u32 %v5170_v8, %v4719_v49  ;;  %v4724_v45 = vor.u32 %v5169_v26, %v4721_v59  ;;  %v4713_v26 = vld [vmem:[%s6542_s16 + $0x58] sm:$0xf0] }
 0x219   : > { %v2202_v54 = vsub.f32 %v6910_v28, %v2095_v36  ;;  %v7012_v28 = vmax.f32 %v6964_v55, %v2180_v39  ;;  %v4793_v36 = vld [vmem:[%s6542_s16 + $0xf8] sm:$0xf0]  ;;  %v5168_v39 = vld [vmem:[%s6542_s16 + $0x54] sm:$0xf0]  ;;  %v7023_v49 = vmax.f32 %v2085_v52, %v2086_v58  ;;  %3103 = vmatpush.bf16.msrb.mxu1 %v4792_v11  ;;  %v7028_v59 = vmax.f32 %v2175_v35, %v2176_v0  ;;  %v4783_v52 = vld [vmem:[%s6542_s16 + $0xe0] sm:$0xf] }
 0x21a   : > { %v2220_v50 = vmul.f32 1.442695, %v2187_v46  ;;  %v2099_v22 = vmax.f32 %v2097_v5, %v2098_v48  ;;  %v7018_v5 = vmul.f32 %v6861_v7, %v6886_v16  ;;  %3090 = vmatpush.bf16.msrb.mxu0 %v4720_v53  ;;  %v4796_v46 = vor.u32 %v5187_v29, %v4793_v36  ;;  %v4711_v48 = vld [vmem:[%s6542_s16 + $0x50] sm:$0xf]  ;;  %3118 = vmatpush.bf16.msrb.mxu2 %v4724_v45  ;;  %v5186_v58 = vld [vmem:[%s6542_s16 + $0xe4] sm:$0xf0] }
 0x21b   : > { %v7009_v15 = vpop.eup %5371  ;;  %v2250_v63 = vmul.f32 1.442695, %v2202_v54  ;;  %8005 = vst [vmem:[#allocation51_spill] sm:$0xff] %v7023_v49  ;;  %v4712_v7 = vor.u32 %v5168_v39, %v4711_v48  ;;  %v5167_v54 = vld [vmem:[%s6542_s16 + $0x54] sm:$0xf]  ;;  %v7037_v11 = vmul.f32 %v6857_v3, %v6929_v1  ;;  %v7041_v35 = vmul.f32 %v6863_v9, %v6929_v1 }
 0x21c   : > { %5373 = vpow2.f32 %v2220_v50  ;;  %v2100_v41 = vrot.slane %v2099_v22, 1  ;;  %v2282_v2 = vrot.slane %v7009_v15, 4  ;;  %3131 = vmatpush.bf16.msrb.mxu3 %v4796_v46  ;;  %v4716_v44 = vor.u32 %v5167_v54, %v4713_v26  ;;  %v4785_v45 = vld [vmem:[%s6542_s16 + $0xe8] sm:$0xf0]  ;;  %v5166_v3 = vld [vmem:[%s6542_s16 + $0x44] sm:$0xf0] }
 0x21d   : > { %5375 = vpow2.f32 %v2250_v63  ;;  %v4784_v63 = vor.u32 %v5186_v58, %v4783_v52  ;;  %v7045_v0 = vmul.f32 %v6865_v10, %v6886_v16  ;;  %v5165_v9 = vld [vmem:[%s6542_s16 + $0x44] sm:$0xf]  ;;  %v4705_v48 = vld [vmem:[%s6542_s16 + $0x48] sm:$0xf0]  ;;  %v4775_v39 = vld [vmem:[%s6542_s16 + $0xd0] sm:$0xf]  ;;  %v7056_v10 = vmul.f32 %v6868_v13, %v6929_v1 }
 0x21e   : > { %v2101_v53 = vmax.f32 %v2099_v22, %v2100_v41  ;;  %v2283_v50 = vadd.f32 %v7009_v15, %v2282_v2  ;;  %v2182_v22 = vrot.slane %v7012_v28, 2  ;;  %3091 = vmatpush.bf16.msrb.mxu0 %v4712_v7  ;;  %v4788_v41 = vor.u32 %v5185_v56, %v4785_v45  ;;  %v4703_v2 = vld [vmem:[%s6542_s16 + $0x40] sm:$0xf]  ;;  %3119 = vmatpush.bf16.msrb.mxu2 %v4716_v44  ;;  %v5184_v44 = vld [vmem:[%s6542_s16 + $0xd4] sm:$0xf0]  ;;  %v1771_v56 = vpop.f32.mrf.mxu0 }
 0x21f   : > { %3104 = vmatpush.bf16.msrb.mxu1 %v4784_v63  ;;  %v4704_v46 = vor.u32 %v5166_v3, %v4703_v2  ;;  %v5183_v52 = vld [vmem:[%s6542_s16 + $0xd4] sm:$0xf]  ;;  %v7068_v58 = vmul.f32 %v6874_v19, %v6929_v1  ;;  %v4776_v63 = vor.u32 %v5184_v44, %v4775_v39  ;;  %v4777_v45 = vld [vmem:[%s6542_s16 + $0xd8] sm:$0xf0]  ;;  %v5164_v3 = vld [vmem:[%s6542_s16 + $0x34] sm:$0xf0]  ;;  %v7092_v44 = vmul.f32 %v6888_v33, %v6886_v16 }
 0x220   : > { %v2203_v29 = vsub.f32 %v6954_v20, %v2101_v53  ;;  %v2284_v36 = vrot.slane %v2283_v50, 2  ;;  %v7060_v20 = vmul.f32 %v6870_v14, %v6886_v16  ;;  %3132 = vmatpush.bf16.msrb.mxu3 %v4788_v41  ;;  %v4708_v53 = vor.u32 %v5165_v9, %v4705_v48  ;;  %v5163_v9 = vld [vmem:[%s6542_s16 + $0x34] sm:$0xf]  ;;  %v4697_v39 = vld [vmem:[%s6542_s16 + $0x38] sm:$0xf0] }
 0x221   : > { %v4780_v2 = vor.u32 %v5183_v52, %v4777_v45  ;;  %v4687_v45 = vld [vmem:[%s6542_s16 + $0x20] sm:$0xf]  ;;  %v5162_v33 = vld [vmem:[%s6542_s16 + $0x24] sm:$0xf0] }
 0x222   : > { %v7062_v7 = vpop.eup %5373  ;;  %v2252_v54 = vmul.f32 1.442695, %v2203_v29  ;;  %v2285_v26 = vadd.f32 %v2284_v36, %v2283_v50  ;;  %v4695_v50 = vld [vmem:[%s6542_s16 + $0x30] sm:$0xf]  ;;  %v7077_v29 = vmul.f32 %v6876_v21, %v6886_v16  ;;  %v7081_v36 = vmul.f32 %v6878_v23, %v6929_v1  ;;  %3092 = vmatpush.bf16.msrb.mxu0 %v4704_v46  ;;  %3120 = vmatpush.bf16.msrb.mxu2 %v4708_v53  ;;  %v4767_v23 = vld [vmem:[%s6542_s16 + $0xc0] sm:$0xf] }
 0x223   : > { %v7070_v13 = vpop.eup %5375  ;;  %v2288_v14 = vrot.slane %v7062_v7, 4  ;;  %3105 = vmatpush.bf16.msrb.mxu1 %v4776_v63  ;;  %v4696_v21 = vor.u32 %v5164_v3, %v4695_v50  ;;  %v7095_v46 = vmax.f32 %v7012_v28, %v2182_v22  ;;  %v5181_v53 = vld [vmem:[%s6542_s16 + $0xc4] sm:$0xf]  ;;  %v4769_v63 = vld [vmem:[%s6542_s16 + $0xc8] sm:$0xf0]  ;;  %v7103_v50 = vmul.f32 %v6895_v38, %v6929_v1 }
 0x224   : > { %5377 = vpow2.f32 %v2252_v54  ;;  %v2286_v19 = vrot.slane %v2285_v26, 1  ;;  %v2378_v41 = vrot.slane %v7070_v13, 4  ;;  %v5182_v54 = vld [vmem:[%s6542_s16 + $0xc4] sm:$0xf0]  ;;  %3133 = vmatpush.bf16.msrb.mxu3 %v4780_v2  ;;  %v4772_v16 = vor.u32 %v5181_v53, %v4769_v63  ;;  %v5161_v28 = vld [vmem:[%s6542_s16 + $0x24] sm:$0xf] }
 0x225   : > { %v2289_v48 = vadd.f32 %v7062_v7, %v2288_v14  ;;  %8006 = vst [vmem:[#allocation52_spill] sm:$0xff] %v7095_v46  ;;  %v4700_v14 = vor.u32 %v5163_v9, %v4697_v39  ;;  %v4768_v8 = vor.u32 %v5182_v54, %v4767_v23  ;;  %v7109_v22 = vadd.f32 %v6884_v32, %v6958_v31  ;;  %v4689_v39 = vld [vmem:[%s6542_s16 + $0x28] sm:$0xf0]  ;;  %v5179_v53 = vld [vmem:[%s6542_s16 + $0xb4] sm:$0xf] }
 0x226   : > { %v2379_v52 = vadd.f32 %v7070_v13, %v2378_v41  ;;  %v1785_v41 = vpop.f32.mrf.mxu1  ;;  %3093 = vmatpush.bf16.msrb.mxu0 %v4696_v21  ;;  %v4688_v9 = vor.u32 %v5162_v33, %v4687_v45  ;;  %v7115_v38 = vadd.f32 %v6884_v32, %v6970_v57  ;;  %v7119_v1 = vadd.f32 %v6884_v32, %v6974_v27  ;;  %v5180_v21 = vld [vmem:[%s6542_s16 + $0xb4] sm:$0xf0]  ;;  %v4761_v63 = vld [vmem:[%s6542_s16 + $0xb8] sm:$0xf0]  ;;  %v1799_v27 = vpop.f32.mrf.mxu2  ;;  %v4751_v49 = vld [vmem:[%s6542_s16 + $0xa0] sm:$0xf] }
 0x227   : > { %v2290_v3 = vrot.slane %v2289_v48, 2  ;;  %v2287_v23 = vadd.f32 %v2286_v19, %v2285_v26  ;;  %3121 = vmatpush.bf16.msrb.mxu2 %v4700_v14  ;;  %3106 = vmatpush.bf16.msrb.mxu1 %v4768_v8  ;;  %v4692_v54 = vor.u32 %v5161_v28, %v4689_v39  ;;  %v8008_v57 = vperm.slane %v6796_v47, 4  ;;  %v5160_v8 = vld [vmem:[%s6542_s16 + $0x14] sm:$0xf0]  ;;  %v5159_v14 = vld [vmem:[%s6542_s16 + $0x14] sm:$0xf] }
 0x228   : > { %v2380_v2 = vrot.slane %v2379_v52, 2  ;;  %3134 = vmatpush.bf16.msrb.mxu3 %v4772_v16  ;;  %v4760_v26 = vor.u32 %v5180_v21, %v4759_v17  ;;  %v4764_v19 = vor.u32 %v5179_v53, %v4761_v63  ;;  %v4681_v46 = vld [vmem:[%s6542_s16 + $0x18] sm:$0xf0]  ;;  %v5177_v21 = vld [vmem:[%s6542_s16 + $0xa4] sm:$0xf]  ;;  %v7144_v53 = vadd.f32 %v6884_v32, %v6994_v42  ;;  %v1813_v42 = vpop.f32.mrf.mxu3 }
 0x229   : > { %v2291_v31 = vadd.f32 %v2290_v3, %v2289_v48  ;;  %v1772_v33 = vadd.f32 %v1771_v56, %v8008_v57  ;;  %v4679_v48 = vld [vmem:[%s6542_s16 + $0x10] sm:$0xf]  ;;  %v8009_v3 = vperm.slane %v6796_v47, 5  ;;  %v7138_v56 = vadd.f32 %v6884_v32, %v6984_v25  ;;  %v1773_v57 = vpop.f32.mrf.mxu0 }
 0x22a   : > { %v7124_v45 = vpop.eup %5377  ;;  %v2381_v55 = vadd.f32 %v2380_v2, %v2379_v52  ;;  %3094 = vmatpush.bf16.msrb.mxu0 %v4688_v9  ;;  %v4680_v52 = vor.u32 %v5160_v8, %v4679_v48  ;;  %v4684_v16 = vor.u32 %v5159_v14, %v4681_v46  ;;  %v5178_v2 = vld [vmem:[%s6542_s16 + $0xa4] sm:$0xf0]  ;;  %5379 = vrcp.f32 %v2287_v23  ;;  %v4753_v46 = vld [vmem:[%s6542_s16 + $0xa8] sm:$0xf0] }
 0x22b   : > { %8007 = vst [vmem:[#allocation53_spill] sm:$0xff] %v7124_v45  ;;  %v1800_v28 = vadd.f32 %v1799_v27, %v8009_v3  ;;  %v2292_v39 = vrot.slane %v2291_v31, 1  ;;  %v2384_v43 = vrot.slane %v7124_v45, 4  ;;  %3122 = vmatpush.bf16.msrb.mxu2 %v4692_v54  ;;  %3107 = vmatpush.bf16.msrb.mxu1 %v4760_v26  ;;  %v4752_v9 = vor.u32 %v5178_v2, %v4751_v49  ;;  %v4671_v27 = vld [vmem:[%s6542_s16] sm:$0xf] }
 0x22c   : > { %v2382_v17 = vrot.slane %v2381_v55, 1  ;;  %v5158_v48 = vld [vmem:[%s6542_s16 + $0x4] sm:$0xf0]  ;;  %v7150_v8 = vadd.f32 %v1785_v41, %v1772_v33  ;;  %3135 = vmatpush.bf16.msrb.mxu3 %v4764_v19  ;;  %v4756_v23 = vor.u32 %v5177_v21, %v4753_v46  ;;  %v4673_v3 = vld [vmem:[%s6542_s16 + $0x8] sm:$0xf0]  ;;  %v7165_v41 = vadd.f32 %v6893_v37, %v7007_v62 }
 0x22d   : > { %v2293_v63 = vadd.f32 %v2292_v39, %v2291_v31  ;;  %v2385_v25 = vadd.f32 %v7124_v45, %v2384_v43  ;;  %v5157_v31 = vld [vmem:[%s6542_s16 + $0x4] sm:$0xf]  ;;  %v4743_v39 = vld [vmem:[%s6542_s16 + $0x90] sm:$0xf]  ;;  %v7157_v43 = vadd.f32 %v6884_v32, %v6998_v6  ;;  %v7159_v54 = vadd.f32 %v1813_v42, %v1800_v28  ;;  %v5176_v26 = vld [vmem:[%s6542_s16 + $0x94] sm:$0xf0] }
 0x22e   : > { %8010 = vst [vmem:[#allocation54_spill] sm:$0xff] %v7150_v8  ;;  %v2383_v14 = vadd.f32 %v2382_v17, %v2381_v55  ;;  %v5175_v2 = vld [vmem:[%s6542_s16 + $0x94] sm:$0xf]  ;;  %v7169_v55 = vadd.f32 %v6937_v12, %v7037_v11  ;;  %v8014_v33 = vperm.slane %v6796_v47, 4  ;;  %3095 = vmatpush.bf16.msrb.mxu0 %v4680_v52  ;;  %v4672_v32 = vor.u32 %v5158_v48, %v4671_v27  ;;  %v4745_v6 = vld [vmem:[%s6542_s16 + $0x98] sm:$0xf0]  ;;  %v1787_v11 = vpop.f32.mrf.mxu1  ;;  %v1801_v42 = vpop.f32.mrf.mxu2 }
 0x22f   : > { %8011 = vst [vmem:[#allocation55_spill] sm:$0xff] %v7159_v54  ;;  %v2386_v49 = vrot.slane %v2385_v25, 2  ;;  %5381 = vrcp.f32 %v2293_v63  ;;  %v7176_v28 = vadd.f32 %v6893_v37, %v7018_v5  ;;  %3123 = vmatpush.bf16.msrb.mxu2 %v4684_v16  ;;  %3108 = vmatpush.bf16.msrb.mxu1 %v4752_v9  ;;  %v4676_v62 = vor.u32 %v5157_v31, %v4673_v3 }
 0x230   : > { %8012 = vst [vmem:[#allocation56_spill] sm:$0xff] %v7165_v41  ;;  %v1774_v19 = vadd.f32 %v1773_v57, %v8014_v33  ;;  %5383 = vrcp.f32 %v2383_v14  ;;  %v4744_v17 = vor.u32 %v5176_v26, %v4743_v39  ;;  %v2006_v21 = vrot.slane %v6916_v60, 4  ;;  %3136 = vmatpush.bf16.msrb.mxu3 %v4756_v23  ;;  %v5380_v27 = vpop.eup %5379 }
 0x231   : > { %8013 = vst [vmem:[#allocation57_spill] sm:$0xff] %v7169_v55  ;;  %v4748_v63 = vor.u32 %v5175_v2, %v4745_v6  ;;  %v2012_v46 = vrot.slane %v7109_v22, 4  ;;  %v2018_v52 = vrot.slane %v6919_v30, 4  ;;  %v2024_v57 = vrot.slane %v7115_v38, 4 }
 0x232   : > { %8015 = vst [vmem:[#allocation58_spill] sm:$0xff] %v7176_v28  ;;  %v2387_v48 = vadd.f32 %v2386_v49, %v2385_v25  ;;  %v2007_v5 = vmax.f32 %v6916_v60, %v2006_v21  ;;  %v2030_v16 = vrot.slane %v6933_v4, 4  ;;  %v2036_v9 = vrot.slane %v7119_v1, 4  ;;  %3096 = vmatpush.bf16.msrb.mxu0 %v4672_v32 }
 0x233   : > { %v7187_v14 = vadd.f32 %v6937_v12, %v7041_v35  ;;  %v2013_v23 = vmax.f32 %v7109_v22, %v2012_v46  ;;  %v2019_v31 = vmax.f32 %v6919_v30, %v2018_v52  ;;  %v2025_v3 = vmax.f32 %v7115_v38, %v2024_v57  ;;  %3124 = vmatpush.bf16.msrb.mxu2 %v4676_v62 }
 0x234   : > { %v7192_v39 = vadd.f32 %v1787_v11, %v1774_v19  ;;  %3109 = vmatpush.bf16.msrb.mxu1 %v4744_v17  ;;  %v7196_v25 = vadd.f32 %v6893_v37, %v7045_v0  ;;  %v2008_v49 = vrot.slane %v2007_v5, 2  ;;  %v2031_v26 = vmax.f32 %v6933_v4, %v2030_v16  ;;  %3137 = vmatpush.bf16.msrb.mxu3 %v4748_v63 }
 0x235   : > { %8016 = vst [vmem:[#allocation59_spill] sm:$0xff] %v7187_v14  ;;  %v5382_v2 = vpop.eup %5381  ;;  %v2506_v35 = vmul.f32 %v5380_v27, %v7009_v15  ;;  %v2014_v33 = vrot.slane %v2013_v23, 2  ;;  %v2037_v32 = vmax.f32 %v7119_v1, %v2036_v9  ;;  %v2042_v6 = vrot.slane %v6940_v18, 4 }
 0x236   : > { %8017 = vst [vmem:[#allocation60_spill] sm:$0xff] %v7192_v39  ;;  %v5384_v19 = vpop.eup %5383  ;;  %v8019_v62 = vperm.slane %v6796_v47, 5  ;;  %v2388_v21 = vrot.slane %v2387_v48, 1  ;;  %v7208_v0 = vadd.f32 %v6937_v12, %v7056_v10  ;;  %v7212_v11 = vadd.f32 %v6893_v37, %v7060_v20 }
 0x237   : > { %8018 = vst [vmem:[#allocation61_spill] sm:$0xff] %v7196_v25  ;;  %v7216_v15 = vadd.f32 %v6937_v12, %v7068_v58  ;;  %v7220_v63 = vadd.f32 %v6893_v37, %v7077_v29  ;;  %v2020_v47 = vrot.slane %v2019_v31, 2  ;;  %v2026_v46 = vrot.slane %v2025_v3, 2 }
 0x238   : > { %v7204_v17 = vadd.f32 %v1801_v42, %v8019_v62  ;;  %8021 = vst [vmem:[#allocation63_spill] sm:$0xff] %v7208_v0  ;;  %v7224_v52 = vadd.f32 %v6937_v12, %v7081_v36  ;;  %v7228_v10 = vadd.f32 %v6893_v37, %v7092_v44  ;;  %v2009_v20 = vmax.f32 %v2007_v5, %v2008_v49 }
 0x239   : > { %8022 = vst [vmem:[#allocation64_spill] sm:$0xff] %v7212_v11  ;;  %v2032_v57 = vrot.slane %v2031_v26, 2  ;;  %v7231_v27 = vmul.f32 %v2506_v35, %v7150_v8  ;;  %v2015_v58 = vmax.f32 %v2013_v23, %v2014_v33  ;;  %v2038_v16 = vrot.slane %v2037_v32, 2 }
 0x23a   : > { %8020 = vst [vmem:[#allocation62_spill] sm:$0xff] %v7204_v17  ;;  %v2043_v29 = vmax.f32 %v6940_v18, %v2042_v6  ;;  %v7235_v9 = vmul.f32 %v5382_v2, %v7062_v7  ;;  %v2389_v42 = vadd.f32 %v2388_v21, %v2387_v48  ;;  %v7239_v36 = vadd.f32 %v6937_v12, %v7103_v50 }
 0x23b   : > { %8023 = vst [vmem:[#allocation65_spill] sm:$0xff] %v7216_v15  ;;  %v2048_v37 = vrot.slane %v7138_v56, 4  ;;  %v2522_v44 = vmul.f32 %v5384_v19, %v7070_v13  ;;  %v2021_v5 = vmax.f32 %v2019_v31, %v2020_v47  ;;  %v2027_v49 = vmax.f32 %v2025_v3, %v2026_v46 }
 0x23c   : > { %8024 = vst [vmem:[#allocation66_spill] sm:$0xff] %v7220_v63  ;;  %v2044_v35 = vrot.slane %v2043_v29, 2  ;;  %v2010_v62 = vrot.slane %v2009_v20, 1  ;;  %v2033_v23 = vmax.f32 %v2031_v26, %v2032_v57  ;;  %v2054_v6 = vrot.slane %v6948_v40, 4 }
 0x23d   : > { %8025 = vst [vmem:[#allocation67_spill] sm:$0xff] %v7224_v52  ;;  %v2049_v33 = vmax.f32 %v7138_v56, %v2048_v37  ;;  %v2016_v7 = vrot.slane %v2015_v58, 1  ;;  %v2039_v2 = vmax.f32 %v2037_v32, %v2038_v16  ;;  %v2060_v48 = vrot.slane %v7144_v53, 4 }
 0x23e   : > { %8026 = vst [vmem:[#allocation68_spill] sm:$0xff] %v7228_v10  ;;  %v2066_v12 = vrot.slane %v6961_v51, 4  ;;  %v2045_v50 = vmax.f32 %v2043_v29, %v2044_v35  ;;  %v2055_v45 = vmax.f32 %v6948_v40, %v2054_v6  ;;  %v2072_v13 = vrot.slane %v7157_v43, 4 }
 0x23f   : > { %8027 = vst [vmem:[#allocation69_spill] sm:$0xff] %v7231_v27  ;;  %v2050_v21 = vrot.slane %v2049_v33, 2  ;;  %v7250_v31 = vmul.f32 %v2522_v44, %v7192_v39  ;;  %5385 = vrcp.f32 %v2389_v42  ;;  %v2061_v3 = vmax.f32 %v7144_v53, %v2060_v48 }
 0x240   : > { %8028 = vst [vmem:[#allocation70_spill] sm:$0xff] %v7235_v9  ;;  %v2067_v26 = vmax.f32 %v6961_v51, %v2066_v12  ;;  %v2022_v19 = vrot.slane %v2021_v5, 1  ;;  %v2056_v47 = vrot.slane %v2055_v45, 2  ;;  %v2073_v46 = vmax.f32 %v7157_v43, %v2072_v13 }
 0x241   : > { %8029 = vst [vmem:[#allocation71_spill] sm:$0xff] %v7250_v31  ;;  %v2051_v32 = vmax.f32 %v2049_v33, %v2050_v21  ;;  %v2028_v57 = vrot.slane %v2027_v49, 1  ;;  %v2034_v16 = vrot.slane %v2033_v23, 1  ;;  %v2062_v29 = vrot.slane %v2061_v3, 2 }
 0x242   : > { %v2102_v37 = vrot.slane %v7165_v41, 4  ;;  %v7256_v35 = vmax.f32 %v2009_v20, %v2010_v62  ;;  %v7258_v6 = vmax.f32 %v2015_v58, %v2016_v7  ;;  %v2040_v44 = vrot.slane %v2039_v2, 1 }
 0x243   : > { %v2046_v42 = vrot.slane %v2045_v50, 1  ;;  %v2052_v9 = vrot.slane %v2051_v32, 1  ;;  %v2068_v48 = vrot.slane %v2067_v26, 2  ;;  %v2082_v12 = vrot.slane %v6986_v34, 1 }
 0x244   : > { %v2108_v33 = vrot.slane %v7169_v55, 4  ;;  %v7262_v21 = vmax.f32 %v2021_v5, %v2022_v19  ;;  %v2057_v13 = vmax.f32 %v2055_v45, %v2056_v47  ;;  %v2074_v54 = vrot.slane %v2073_v46, 2 }
 0x245   : > { %v2114_v17 = vrot.slane %v7176_v28, 4  ;;  %v7265_v39 = vpop.eup %5385  ;;  %v7267_v20 = vmax.f32 %v2027_v49, %v2028_v57  ;;  %v7269_v58 = vmax.f32 %v2033_v23, %v2034_v16  ;;  %v2063_v62 = vmax.f32 %v2061_v3, %v2062_v29 }
 0x246   : > { %8030 = vst [vmem:[#allocation72_spill] sm:$0xff] %v7265_v39  ;;  %v2103_v7 = vmax.f32 %v7165_v41, %v2102_v37  ;;  %v7272_v8 = vmax.f32 %v2039_v2, %v2040_v44  ;;  %v2109_v31 = vmax.f32 %v7169_v55, %v2108_v33  ;;  %v2120_v45 = vrot.slane %v7187_v14, 4 }
 0x247   : > { %v2115_v5 = vmax.f32 %v7176_v28, %v2114_v17  ;;  %v7277_v19 = vmax.f32 %v2045_v50, %v2046_v42  ;;  %v7279_v47 = vmax.f32 %v2051_v32, %v2052_v9  ;;  %v2069_v39 = vmax.f32 %v2067_v26, %v2068_v48 }
 0x248   : > { %v7282_v49 = vmax.f32 %v6986_v34, %v2082_v12  ;;  %v2058_v23 = vrot.slane %v2057_v13, 1  ;;  %v2075_v3 = vmax.f32 %v2073_v46, %v2074_v54  ;;  %v2121_v57 = vmax.f32 %v7187_v14, %v2120_v45 }
 0x249   : > { %v2126_v2 = vrot.slane %v7196_v25, 4  ;;  %v2064_v16 = vrot.slane %v2063_v62, 1  ;;  %v2104_v29 = vrot.slane %v2103_v7, 2  ;;  %v2132_v17 = vrot.slane %v7208_v0, 4 }
 0x24a   : > { %v2138_v37 = vrot.slane %v7212_v11, 4  ;;  %v2110_v50 = vrot.slane %v2109_v31, 2  ;;  %v2116_v44 = vrot.slane %v2115_v5, 2  ;;  %v2144_v26 = vrot.slane %v7216_v15, 4 }
 0x24b   : > { %v2127_v9 = vmax.f32 %v7196_v25, %v2126_v2  ;;  %v2070_v34 = vrot.slane %v2069_v39, 1  ;;  %v2122_v32 = vrot.slane %v2121_v57, 2  ;;  %v2133_v54 = vmax.f32 %v7208_v0, %v2132_v17 }
 0x24c   : > { %v2139_v46 = vmax.f32 %v7212_v11, %v2138_v37  ;;  %v7292_v42 = vmax.f32 %v2057_v13, %v2058_v23  ;;  %v2076_v48 = vrot.slane %v2075_v3, 1  ;;  %v2145_v33 = vmax.f32 %v7216_v15, %v2144_v26 }
 0x24d   : > { %v2128_v12 = vrot.slane %v2127_v9, 2  ;;  %v2105_v45 = vmax.f32 %v2103_v7, %v2104_v29  ;;  %v2134_v27 = vrot.slane %v2133_v54, 2  ;;  %v2150_v14 = vrot.slane %v7220_v63, 4 }
 0x24e   : > { %v2140_v61 = vrot.slane %v2139_v46, 2  ;;  %v7296_v2 = vmax.f32 %v2063_v62, %v2064_v16  ;;  %v2111_v25 = vmax.f32 %v2109_v31, %v2110_v50  ;;  %v2117_v28 = vmax.f32 %v2115_v5, %v2116_v44 }
 0x24f   : > { %v2146_v55 = vrot.slane %v2145_v33, 2  ;;  %v2123_v41 = vmax.f32 %v2121_v57, %v2122_v32  ;;  %v2129_v17 = vmax.f32 %v2127_v9, %v2128_v12  ;;  %v2151_v37 = vmax.f32 %v7220_v63, %v2150_v14 }
 0x250   : > { %v2156_v13 = vrot.slane %v7224_v52, 4  ;;  %v7300_v23 = vmax.f32 %v2069_v39, %v2070_v34  ;;  %v2135_v11 = vmax.f32 %v2133_v54, %v2134_v27  ;;  %v2141_v26 = vmax.f32 %v2139_v46, %v2140_v61 }
 0x251   : > { %v2162_v7 = vrot.slane %v7228_v10, 4  ;;  %v2106_v29 = vrot.slane %v2105_v45, 1  ;;  %v2147_v15 = vmax.f32 %v2145_v33, %v2146_v55  ;;  %v2152_v0 = vrot.slane %v2151_v37, 2 }
 0x252   : > { %v2157_v62 = vmax.f32 %v7224_v52, %v2156_v13  ;;  %v2112_v31 = vrot.slane %v2111_v25, 1  ;;  %v2118_v5 = vrot.slane %v2117_v28, 1  ;;  %v2168_v16 = vrot.slane %v7239_v36, 4 }
 0x253   : > { %v2163_v57 = vmax.f32 %v7228_v10, %v2162_v7  ;;  %v2124_v14 = vrot.slane %v2123_v41, 1  ;;  %v2130_v50 = vrot.slane %v2129_v17, 1  ;;  %v2153_v44 = vmax.f32 %v2151_v37, %v2152_v0 }
 0x254   : > { %v2158_v39 = vrot.slane %v2157_v62, 2  ;;  %v2136_v9 = vrot.slane %v2135_v11, 1  ;;  %v2142_v27 = vrot.slane %v2141_v26, 1  ;;  %v2169_v34 = vmax.f32 %v7239_v36, %v2168_v16 }
 0x255   : > { %v2164_v61 = vrot.slane %v2163_v57, 2  ;;  %v7307_v32 = vmax.f32 %v2075_v3, %v2076_v48  ;;  %v2107_v55 = vmax.f32 %v2105_v45, %v2106_v29  ;;  %v2148_v54 = vrot.slane %v2147_v15, 1 }
 0x256   : > { %v2159_v46 = vmax.f32 %v2157_v62, %v2158_v39  ;;  %v2154_v12 = vrot.slane %v2153_v44, 1  ;;  %v2170_v13 = vrot.slane %v2169_v34, 2  ;;  %v2178_v7 = vrot.slane %v7028_v59, 1  ;;  %v8042_v39 = vld [vmem:[#allocation66_spill] sm:$0xff] }
 0x257   : > { %v2165_v33 = vmax.f32 %v2163_v57, %v2164_v61  ;;  %v7310_v10 = vmax.f32 %v2111_v25, %v2112_v31  ;;  %v2119_v52 = vmax.f32 %v2117_v28, %v2118_v5  ;;  %v7312_v0 = vmax.f32 %v2123_v41, %v2124_v14  ;;  %v8040_v57 = vld [vmem:[#allocation64_spill] sm:$0xff] }
 0x258   : > { %v2131_v37 = vmax.f32 %v2129_v17, %v2130_v50  ;;  %v7314_v63 = vmax.f32 %v2135_v11, %v2136_v9  ;;  %v2143_v24 = vmax.f32 %v2141_v26, %v2142_v27  ;;  %v2160_v16 = vrot.slane %v2159_v46, 1  ;;  %v8041_v50 = vld [vmem:[#allocation65_spill] sm:$0xff] }
 0x259   : > { %v2171_v3 = vmax.f32 %v2169_v34, %v2170_v13  ;;  %v7316_v48 = vmax.f32 %v2147_v15, %v2148_v54  ;;  %v2166_v45 = vrot.slane %v2165_v33, 1  ;;  %v2188_v29 = vsub.f32 %v6916_v60, %v7256_v35 }
 0x25a   : > { %v2189_v62 = vsub.f32 %v7109_v22, %v7258_v6  ;;  %v2155_v25 = vmax.f32 %v2153_v44, %v2154_v12  ;;  %v2179_v28 = vmax.f32 %v7028_v59, %v2178_v7  ;;  %v2190_v41 = vsub.f32 %v6919_v30, %v7262_v21  ;;  %v8034_v6 = vld [vmem:[#allocation56_spill] sm:$0xff]  ;;  %v8045_v12 = vld [vmem:[#allocation49_spill] sm:$0xff] }
 0x25b   : > { %8031 = vst [vmem:[#allocation73_spill] sm:$0xff] %v7316_v48  ;;  %v2191_v11 = vsub.f32 %v7115_v38, %v7267_v20  ;;  %v2172_v17 = vrot.slane %v2171_v3, 1  ;;  %v2192_v15 = vsub.f32 %v6933_v4, %v7269_v58  ;;  %v2193_v26 = vsub.f32 %v7119_v1, %v7272_v8  ;;  %v8036_v58 = vld [vmem:[#allocation58_spill] sm:$0xff] }
 0x25c   : > { %v2194_v60 = vsub.f32 %v6940_v18, %v7277_v19  ;;  %v7333_v22 = vmax.f32 %v2159_v46, %v2160_v16  ;;  %v2195_v59 = vsub.f32 %v7138_v56, %v7279_v47  ;;  %v2196_v30 = vsub.f32 %v6948_v40, %v7292_v42  ;;  %v8033_v18 = vld [vmem:[#allocation47_spill] sm:$0xff]  ;;  %v8035_v56 = vld [vmem:[#allocation57_spill] sm:$0xff] }
 0x25d   : > { %v2197_v38 = vsub.f32 %v7144_v53, %v7296_v2  ;;  %v2167_v35 = vmax.f32 %v2165_v33, %v2166_v45  ;;  %v2198_v4 = vsub.f32 %v6961_v51, %v7300_v23  ;;  %v2199_v1 = vsub.f32 %v7157_v43, %v7307_v32  ;;  %v8037_v53 = vld [vmem:[#allocation59_spill] sm:$0xff]  ;;  %v8038_v51 = vld [vmem:[#allocation61_spill] sm:$0xff] }
 0x25e   : > { %8032 = vst [vmem:[#allocation74_spill] sm:$0xff] %v7333_v22  ;;  %v2200_v8 = vsub.f32 %v8033_v18, %v7282_v49  ;;  %v2204_v21 = vsub.f32 %v8034_v6, %v2107_v55  ;;  %v2206_v40 = vsub.f32 %v8036_v58, %v2119_v52  ;;  %v2222_v19 = vmul.f32 1.442695, %v2188_v29  ;;  %v8039_v43 = vld [vmem:[#allocation63_spill] sm:$0xff]  ;;  %v8044_v55 = vld [vmem:[#allocation68_spill] sm:$0xff] }
 0x25f   : > { %v7351_v47 = vmax.f32 %v2171_v3, %v2172_v17  ;;  %v2208_v2 = vsub.f32 %v8038_v51, %v2131_v37  ;;  %v2226_v23 = vmul.f32 1.442695, %v2190_v41  ;;  %v2230_v49 = vmul.f32 1.442695, %v2192_v15  ;;  %v8047_v6 = vld [vmem:[#allocation52_spill] sm:$0xff] }
 0x260   : > { %5387 = vpow2.f32 %v2222_v19  ;;  %v2234_v5 = vmul.f32 1.442695, %v2194_v60  ;;  %v2210_v14 = vsub.f32 %v8040_v57, %v2143_v24  ;;  %v2238_v44 = vmul.f32 1.442695, %v2196_v30 }
 0x261   : > { %5389 = vpow2.f32 %v2226_v23  ;;  %v2212_v9 = vsub.f32 %v8042_v39, %v2155_v25  ;;  %v2242_v27 = vmul.f32 1.442695, %v2198_v4  ;;  %v2246_v61 = vmul.f32 1.442695, %v2200_v8 }
 0x262   : > { %5391 = vpow2.f32 %v2230_v49  ;;  %v2214_v54 = vsub.f32 %v8044_v55, %v2167_v35  ;;  %v2254_v46 = vmul.f32 1.442695, %v2204_v21  ;;  %v2216_v33 = vsub.f32 %v8045_v12, %v2179_v28  ;;  %v8046_v35 = vld [vmem:[#allocation51_spill] sm:$0xff] }
 0x263   : > { %5393 = vpow2.f32 %v2234_v5  ;;  %v7366_v24 = vmul.f32 1.442695, %v2189_v62  ;;  %v2258_v13 = vmul.f32 1.442695, %v2206_v40  ;;  %v7368_v7 = vmul.f32 1.442695, %v2191_v11 }
 0x264   : > { %5395 = vpow2.f32 %v2238_v44  ;;  %v7370_v37 = vmul.f32 1.442695, %v2193_v26  ;;  %v2262_v16 = vmul.f32 1.442695, %v2208_v2  ;;  %v7374_v45 = vmul.f32 1.442695, %v2195_v59 }
 0x265   : > { %5397 = vpow2.f32 %v2242_v27  ;;  %v7376_v29 = vmul.f32 1.442695, %v2197_v38  ;;  %v2266_v25 = vmul.f32 1.442695, %v2210_v14  ;;  %v7380_v62 = vmul.f32 1.442695, %v2199_v1 }
 0x266   : > { %v7372_v3 = vpop.eup %5387  ;;  %5399 = vpow2.f32 %v2246_v61  ;;  %v2270_v28 = vmul.f32 1.442695, %v2212_v9  ;;  %v2274_v15 = vmul.f32 1.442695, %v2214_v54  ;;  %v2278_v26 = vmul.f32 1.442695, %v2216_v33 }
 0x267   : > { %v7378_v41 = vpop.eup %5389  ;;  %5401 = vpow2.f32 %v2254_v46  ;;  %v2294_v11 = vrot.slane %v7372_v3, 4  ;;  %v2088_v4 = vrot.slane %v8046_v35, 1 }
 0x268   : > { %v7383_v17 = vpop.eup %5391  ;;  %5403 = vpow2.f32 %v2258_v13  ;;  %v2306_v60 = vrot.slane %v7378_v41, 4 }
 0x269   : > { %v7386_v59 = vpop.eup %5393  ;;  %5405 = vpow2.f32 %v2262_v16  ;;  %v2295_v30 = vadd.f32 %v7372_v3, %v2294_v11  ;;  %v2318_v38 = vrot.slane %v7383_v17, 4 }
 0x26a   : > { %v7391_v1 = vpop.eup %5395  ;;  %5407 = vpow2.f32 %v2266_v25  ;;  %v2307_v18 = vadd.f32 %v7378_v41, %v2306_v60  ;;  %v2330_v8 = vrot.slane %v7386_v59, 4 }
 0x26b   : > { %v7396_v58 = vpop.eup %5397  ;;  %5409 = vpow2.f32 %v2270_v28  ;;  %v2296_v40 = vrot.slane %v2295_v30, 2  ;;  %v2319_v19 = vadd.f32 %v7383_v17, %v2318_v38  ;;  %v2342_v51 = vrot.slane %v7391_v1, 4 }
 0x26c   : > { %v7400_v2 = vpop.eup %5399  ;;  %5411 = vpow2.f32 %v2274_v15  ;;  %v2308_v23 = vrot.slane %v2307_v18, 2  ;;  %v2331_v49 = vadd.f32 %v7386_v59, %v2330_v8  ;;  %v2354_v5 = vrot.slane %v7396_v58, 4 }
 0x26d   : > { %v7404_v57 = vpop.eup %5401  ;;  %5413 = vpow2.f32 %v2278_v26  ;;  %v2297_v14 = vadd.f32 %v2296_v40, %v2295_v30  ;;  %v2320_v44 = vrot.slane %v2319_v19, 2  ;;  %v2343_v39 = vadd.f32 %v7391_v1, %v2342_v51 }
 0x26e   : > { %v7407_v9 = vpop.eup %5403  ;;  %v2309_v27 = vadd.f32 %v2308_v23, %v2307_v18  ;;  %v2332_v61 = vrot.slane %v2331_v49, 2  ;;  %v2355_v55 = vadd.f32 %v7396_v58, %v2354_v5  ;;  %v2366_v54 = vrot.slane %v7400_v2, 4 }
 0x26f   : > { %v7411_v46 = vpop.eup %5405  ;;  %v2298_v12 = vrot.slane %v2297_v14, 1  ;;  %v2321_v33 = vadd.f32 %v2320_v44, %v2319_v19  ;;  %v2344_v13 = vrot.slane %v2343_v39, 2  ;;  %v2390_v16 = vrot.slane %v7404_v57, 4 }
 0x270   : > { %v7414_v25 = vpop.eup %5407  ;;  %v2310_v28 = vrot.slane %v2309_v27, 1  ;;  %v2333_v11 = vadd.f32 %v2332_v61, %v2331_v49  ;;  %v2356_v15 = vrot.slane %v2355_v55, 2  ;;  %v2367_v26 = vadd.f32 %v7400_v2, %v2366_v54 }
 0x271   : > { %v7417_v60 = vpop.eup %5409  ;;  %v2322_v30 = vrot.slane %v2321_v33, 1  ;;  %v2345_v38 = vadd.f32 %v2344_v13, %v2343_v39  ;;  %v2391_v18 = vadd.f32 %v7404_v57, %v2390_v16  ;;  %v7421_v8 = vmax.f32 %v8046_v35, %v2088_v4 }
 0x272   : > { %v7423_v40 = vpop.eup %5411  ;;  %v2299_v19 = vadd.f32 %v2298_v12, %v2297_v14  ;;  %v2334_v51 = vrot.slane %v2333_v11, 1  ;;  %v2357_v23 = vadd.f32 %v2356_v15, %v2355_v55  ;;  %v2368_v5 = vrot.slane %v2367_v26, 2 }
 0x273   : > { %v7425_v44 = vpop.eup %5413  ;;  %v2311_v49 = vadd.f32 %v2310_v28, %v2309_v27  ;;  %v2346_v61 = vrot.slane %v2345_v38, 1  ;;  %v2392_v54 = vrot.slane %v2391_v18, 2  ;;  %v2402_v32 = vrot.slane %v7407_v9, 4 }
 0x274   : > { %v2323_v52 = vadd.f32 %v2322_v30, %v2321_v33  ;;  %v2358_v39 = vrot.slane %v2357_v23, 1  ;;  %v2369_v13 = vadd.f32 %v2368_v5, %v2367_v26  ;;  %v2414_v16 = vrot.slane %v7411_v46, 4 }
 0x275   : > { %v2335_v35 = vadd.f32 %v2334_v51, %v2333_v11  ;;  %v2393_v4 = vadd.f32 %v2392_v54, %v2391_v18  ;;  %v2403_v31 = vadd.f32 %v7407_v9, %v2402_v32  ;;  %v2426_v14 = vrot.slane %v7414_v25, 4 }
 0x276   : > { %v2347_v55 = vadd.f32 %v2346_v61, %v2345_v38  ;;  %v2370_v12 = vrot.slane %v2369_v13, 1  ;;  %v2415_v15 = vadd.f32 %v7411_v46, %v2414_v16  ;;  %v2438_v27 = vrot.slane %v7417_v60, 4 }
 0x277   : > { %v2359_v28 = vadd.f32 %v2358_v39, %v2357_v23  ;;  %v2404_v42 = vrot.slane %v2403_v31, 2  ;;  %v2427_v33 = vadd.f32 %v7414_v25, %v2426_v14  ;;  %v2450_v26 = vrot.slane %v7423_v40, 4 }
 0x278   : > { %v2394_v30 = vrot.slane %v2393_v4, 1  ;;  %v2416_v5 = vrot.slane %v2415_v15, 2  ;;  %v2439_v11 = vadd.f32 %v7417_v60, %v2438_v27  ;;  %v2462_v32 = vrot.slane %v7425_v44, 4 }
 0x279   : > { %v2371_v18 = vadd.f32 %v2370_v12, %v2369_v13  ;;  %v2405_v51 = vadd.f32 %v2404_v42, %v2403_v31  ;;  %v2428_v38 = vrot.slane %v2427_v33, 2  ;;  %v2451_v61 = vadd.f32 %v7423_v40, %v2450_v26 }
 0x27a   : > { %v2417_v54 = vadd.f32 %v2416_v5, %v2415_v15  ;;  %v2440_v16 = vrot.slane %v2439_v11, 2  ;;  %v2463_v23 = vadd.f32 %v7425_v44, %v2462_v32  ;;  %5415 = vrcp.f32 %v2299_v19  ;;  %v8048_v19 = vld [vmem:[#allocation69_spill] sm:$0xff] }
 0x27b   : > { %v2406_v39 = vrot.slane %v2405_v51, 1  ;;  %v2429_v14 = vadd.f32 %v2428_v38, %v2427_v33  ;;  %v2452_v20 = vrot.slane %v2451_v61, 2  ;;  %5417 = vrcp.f32 %v2311_v49 }
 0x27c   : > { %v2418_v21 = vrot.slane %v2417_v54, 1  ;;  %v2441_v22 = vadd.f32 %v2440_v16, %v2439_v11  ;;  %v2464_v34 = vrot.slane %v2463_v23, 2  ;;  %5419 = vrcp.f32 %v2323_v52  ;;  %v8049_v11 = vld [vmem:[#allocation71_spill] sm:$0xff] }
 0x27d   : > { %v2395_v27 = vadd.f32 %v2394_v30, %v2393_v4  ;;  %v2430_v48 = vrot.slane %v2429_v14, 1  ;;  %v2453_v13 = vadd.f32 %v2452_v20, %v2451_v61  ;;  %5421 = vrcp.f32 %v2335_v35 }
 0x27e   : > { %v2407_v42 = vadd.f32 %v2406_v39, %v2405_v51  ;;  %v2442_v31 = vrot.slane %v2441_v22, 1  ;;  %v2465_v12 = vadd.f32 %v2464_v34, %v2463_v23  ;;  %5423 = vrcp.f32 %v2347_v55 }
 0x27f   : > { %v2419_v15 = vadd.f32 %v2418_v21, %v2417_v54  ;;  %v2454_v26 = vrot.slane %v2453_v13, 1  ;;  %5425 = vrcp.f32 %v2359_v28  ;;  %v2570_v5 = vrot.slane %v8048_v19, 4 }
 0x280   : > { %v5416_v33 = vpop.eup %5415  ;;  %v2431_v32 = vadd.f32 %v2430_v48, %v2429_v14  ;;  %v2466_v49 = vrot.slane %v2465_v12, 1  ;;  %5427 = vrcp.f32 %v2371_v18  ;;  %v2666_v38 = vrot.slane %v8049_v11, 4  ;;  %v8050_v18 = vld [vmem:[#allocation54_spill] sm:$0xff] }
 0x281   : > { %v5418_v52 = vpop.eup %5417  ;;  %v2443_v4 = vadd.f32 %v2442_v31, %v2441_v22  ;;  %5429 = vrcp.f32 %v2395_v27  ;;  %v2508_v20 = vmul.f32 %v5416_v33, %v7372_v3  ;;  %v2571_v35 = vadd.f32 %v2570_v5, %v8048_v19 }
 0x282   : > { %v5420_v34 = vpop.eup %5419  ;;  %v2455_v55 = vadd.f32 %v2454_v26, %v2453_v13  ;;  %v2467_v21 = vadd.f32 %v2466_v49, %v2465_v12  ;;  %5431 = vrcp.f32 %v2407_v42  ;;  %v2510_v28 = vmul.f32 %v5418_v52, %v7378_v41 }
 0x283   : > { %v5422_v30 = vpop.eup %5421  ;;  %5433 = vrcp.f32 %v2419_v15  ;;  %v2512_v48 = vmul.f32 %v5420_v34, %v7383_v17  ;;  %v2540_v51 = vmul.f32 %v2508_v20, %v8050_v18  ;;  %v2572_v61 = vrot.slane %v2571_v35, 2 }
 0x284   : > { %v5424_v54 = vpop.eup %5423  ;;  %5435 = vrcp.f32 %v2431_v32  ;;  %v2514_v22 = vmul.f32 %v5422_v30, %v7386_v59  ;;  %v2542_v3 = vmul.f32 %v2510_v28, %v8050_v18  ;;  %v7449_v16 = vadd.f32 %v2666_v38, %v8049_v11 }
 0x285   : > { %v5426_v23 = vpop.eup %5425  ;;  %5437 = vrcp.f32 %v2443_v4  ;;  %v2516_v41 = vmul.f32 %v5424_v54, %v7391_v1  ;;  %v2544_v39 = vmul.f32 %v2512_v48, %v8050_v18  ;;  %v2573_v14 = vadd.f32 %v2572_v61, %v2571_v35  ;;  %v8052_v48 = vld [vmem:[#allocation60_spill] sm:$0xff] }
 0x286   : > { %v5428_v17 = vpop.eup %5427  ;;  %5439 = vrcp.f32 %v2455_v55  ;;  %v2518_v27 = vmul.f32 %v5426_v23, %v7396_v58  ;;  %v2582_v13 = vrot.slane %v2540_v51, 4  ;;  %v8051_v42 = vrot.slane %v8047_v6, 1 }
 0x287   : > { %v5430_v31 = vpop.eup %5429  ;;  %5441 = vrcp.f32 %v2467_v21  ;;  %v2520_v12 = vmul.f32 %v5428_v17, %v7400_v2  ;;  %v2546_v15 = vmul.f32 %v2514_v22, %v8050_v18  ;;  %v2574_v1 = vrot.slane %v2573_v14, 1 }
 0x288   : > { %v7457_v59 = vmax.f32 %v8047_v6, %v8051_v42  ;;  %v5432_v26 = vpop.eup %5431  ;;  %v2524_v19 = vmul.f32 %v5430_v31, %v7404_v57  ;;  %v2583_v5 = vadd.f32 %v2582_v13, %v2540_v51  ;;  %v2594_v33 = vrot.slane %v2542_v3, 4 }
 0x289   : > { %v2668_v58 = vrot.slane %v7449_v16, 2  ;;  %v5434_v32 = vpop.eup %5433  ;;  %v2526_v49 = vmul.f32 %v5432_v26, %v7407_v9  ;;  %v2548_v6 = vmul.f32 %v2516_v41, %v8050_v18  ;;  %v2550_v11 = vmul.f32 %v2518_v27, %v8050_v18 }
 0x28a   : > { %v2606_v38 = vrot.slane %v2544_v39, 4  ;;  %v5436_v52 = vpop.eup %5435  ;;  %v2528_v2 = vmul.f32 %v5434_v32, %v7411_v46  ;;  %v2552_v4 = vmul.f32 %v2520_v12, %v8050_v18  ;;  %v2584_v20 = vrot.slane %v2583_v5, 2 }
 0x28b   : > { %v2595_v35 = vadd.f32 %v2594_v33, %v2542_v3  ;;  %v5438_v57 = vpop.eup %5437  ;;  %v2530_v34 = vmul.f32 %v5436_v52, %v7414_v25  ;;  %v7469_v55 = vadd.f32 %v2574_v1, %v2573_v14  ;;  %v2618_v28 = vrot.slane %v2546_v15, 4 }
 0x28c   : > { %v2607_v21 = vadd.f32 %v2606_v38, %v2544_v39  ;;  %v5440_v9 = vpop.eup %5439  ;;  %v2532_v30 = vmul.f32 %v5438_v57, %v7417_v60  ;;  %v2556_v51 = vmul.f32 %v2524_v19, %v8052_v48  ;;  %v2585_v61 = vadd.f32 %v2584_v20, %v2583_v5 }
 0x28d   : > { %v2596_v54 = vrot.slane %v2595_v35, 2  ;;  %v5442_v22 = vpop.eup %5441  ;;  %v2534_v46 = vmul.f32 %v5440_v9, %v7423_v40  ;;  %v2558_v18 = vmul.f32 %v2526_v49, %v8052_v48  ;;  %v2619_v23 = vadd.f32 %v2618_v28, %v2546_v15 }
 0x28e   : > { %v2608_v3 = vrot.slane %v2607_v21, 2  ;;  %v2536_v25 = vmul.f32 %v5442_v22, %v7425_v44  ;;  %v2560_v41 = vmul.f32 %v2528_v2, %v8052_v48  ;;  %v2562_v39 = vmul.f32 %v2530_v34, %v8052_v48 }
 0x28f   : > { %v2597_v14 = vadd.f32 %v2596_v54, %v2595_v35  ;;  %v2586_v17 = vrot.slane %v2585_v61, 1  ;;  %v2620_v27 = vrot.slane %v2619_v23, 2  ;;  %v2630_v13 = vrot.slane %v2548_v6, 4 }
 0x290   : > { %v2609_v60 = vadd.f32 %v2608_v3, %v2607_v21  ;;  %v2564_v42 = vmul.f32 %v2532_v30, %v8052_v48  ;;  %v2566_v31 = vmul.f32 %v2534_v46, %v8052_v48  ;;  %v2642_v12 = vrot.slane %v2550_v11, 4 }
 0x291   : > { %v2598_v40 = vrot.slane %v2597_v14, 1  ;;  %v2621_v26 = vadd.f32 %v2620_v27, %v2619_v23  ;;  %v2631_v15 = vadd.f32 %v2630_v13, %v2548_v6  ;;  %v2654_v19 = vrot.slane %v2552_v4, 4 }
 0x292   : > { %v2610_v1 = vrot.slane %v2609_v60, 1  ;;  %v2568_v44 = vmul.f32 %v2536_v25, %v8052_v48  ;;  %v2643_v5 = vadd.f32 %v2642_v12, %v2550_v11  ;;  %v2669_v33 = vadd.f32 %v2668_v58, %v7449_v16 }
 0x293   : > { %v2678_v32 = vrot.slane %v2556_v51, 4  ;;  %v7482_v49 = vadd.f32 %v2586_v17, %v2585_v61  ;;  %v7484_v38 = vadd.f32 %v2598_v40, %v2597_v14  ;;  %v2632_v52 = vrot.slane %v2631_v15, 2 }
 0x294   : > { %v2655_v2 = vadd.f32 %v2654_v19, %v2552_v4  ;;  %v7486_v20 = vadd.f32 %v2610_v1, %v2609_v60  ;;  %v2644_v35 = vrot.slane %v2643_v5, 2  ;;  %v2690_v34 = vrot.slane %v2558_v18, 4 }
 0x295   : > { %v2679_v57 = vadd.f32 %v2678_v32, %v2556_v51  ;;  %v2622_v21 = vrot.slane %v2621_v26, 1  ;;  %v2633_v6 = vadd.f32 %v2632_v52, %v2631_v15  ;;  %v2702_v9 = vrot.slane %v2560_v41, 4 }
 0x296   : > { %v2656_v28 = vrot.slane %v2655_v2, 2  ;;  %v2645_v30 = vadd.f32 %v2644_v35, %v2643_v5  ;;  %v2670_v11 = vrot.slane %v2669_v33, 1  ;;  %v2691_v16 = vadd.f32 %v2690_v34, %v2558_v18 }
 0x297   : > { %v2680_v48 = vrot.slane %v2679_v57, 2  ;;  %v2634_v58 = vrot.slane %v2633_v6, 1  ;;  %v2703_v54 = vadd.f32 %v2702_v9, %v2560_v41  ;;  %v2714_v22 = vrot.slane %v2562_v39, 4 }
 0x298   : > { %v2657_v61 = vadd.f32 %v2656_v28, %v2655_v2  ;;  %v2646_v46 = vrot.slane %v2645_v30, 1  ;;  %v2692_v4 = vrot.slane %v2691_v16, 2  ;;  %v2726_v23 = vrot.slane %v2564_v42, 4 }
 0x299   : > { %v2681_v3 = vadd.f32 %v2680_v48, %v2679_v57  ;;  %v2623_v25 = vadd.f32 %v2622_v21, %v2621_v26  ;;  %v2704_v51 = vrot.slane %v2703_v54, 2  ;;  %v2715_v17 = vadd.f32 %v2714_v22, %v2562_v39 }
 0x29a   : > { %v2658_v14 = vrot.slane %v2657_v61, 1  ;;  %v2671_v60 = vadd.f32 %v2670_v11, %v2669_v33  ;;  %v2693_v13 = vadd.f32 %v2692_v4, %v2691_v16  ;;  %v2727_v40 = vadd.f32 %v2726_v23, %v2564_v42 }
 0x29b   : > { %v2682_v27 = vrot.slane %v2681_v3, 1  ;;  %v2635_v12 = vadd.f32 %v2634_v58, %v2633_v6  ;;  %v2705_v1 = vadd.f32 %v2704_v51, %v2703_v54  ;;  %v2716_v15 = vrot.slane %v2715_v17, 2 }
 0x29c   : > { %v2738_v18 = vrot.slane %v2566_v31, 4  ;;  %v2647_v19 = vadd.f32 %v2646_v46, %v2645_v30  ;;  %v2694_v5 = vrot.slane %v2693_v13, 1  ;;  %v2728_v41 = vrot.slane %v2727_v40, 2 }
 0x29d   : > { %v2750_v32 = vrot.slane %v2568_v44, 4  ;;  %v2659_v52 = vadd.f32 %v2658_v14, %v2657_v61  ;;  %v2706_v2 = vrot.slane %v2705_v1, 1  ;;  %v2717_v35 = vadd.f32 %v2716_v15, %v2715_v17 }
 0x29e   : > { %v2739_v57 = vadd.f32 %v2738_v18, %v2566_v31  ;;  %v2683_v26 = vadd.f32 %v2682_v27, %v2681_v3  ;;  %v2729_v34 = vadd.f32 %v2728_v41, %v2727_v40  ;;  %v2762_v39 = vpack.c.bf16 %v7469_v55, %v7469_v55  ;;  %v5174_v41 = vld [vmem:[%s6542_s16 + $0x84] sm:$0xf0] }
 0x29f   : > { %v2751_v21 = vadd.f32 %v2750_v32, %v2568_v44  ;;  %v2695_v33 = vadd.f32 %v2694_v5, %v2693_v13  ;;  %v2718_v42 = vrot.slane %v2717_v35, 1  ;;  %v2764_v28 = vpack.c.bf16 %v7482_v49, %v7482_v49  ;;  %v4735_v5 = vld [vmem:[%s6542_s16 + $0x80] sm:$0xf] }
 0x2a0   : > { %v2740_v6 = vrot.slane %v2739_v57, 2  ;;  %v2707_v9 = vadd.f32 %v2706_v2, %v2705_v1  ;;  %v2730_v30 = vrot.slane %v2729_v34, 1  ;;  %v2766_v48 = vpack.c.bf16 %v7484_v38, %v7484_v38 }
 0x2a1   : > { %v2752_v11 = vrot.slane %v2751_v21, 2  ;;  %v2719_v16 = vadd.f32 %v2718_v42, %v2717_v35  ;;  %v2768_v44 = vpack.c.bf16 %v7486_v20, %v7486_v20  ;;  %v2770_v58 = vpack.c.bf16 %v2623_v25, %v2623_v25 }
 0x2a2   : > { %v2741_v31 = vadd.f32 %v2740_v6, %v2739_v57  ;;  %v2731_v61 = vadd.f32 %v2730_v30, %v2729_v34  ;;  %v2772_v54 = vpack.c.bf16 %v2635_v12, %v2635_v12  ;;  %v2774_v22 = vpack.c.bf16 %v2647_v19, %v2647_v19  ;;  %v5173_v57 = vld [vmem:[%s6542_s16 + $0x84] sm:$0xf] }
 0x2a3   : > { %v2753_v55 = vadd.f32 %v2752_v11, %v2751_v21  ;;  %v2776_v3 = vpack.c.bf16 %v2659_v52, %v2659_v52  ;;  %v2778_v4 = vpack.c.bf16 %v2671_v60, %v2671_v60  ;;  %v2780_v49 = vpack.c.bf16 %v2683_v26, %v2683_v26  ;;  %v4737_v26 = vld [vmem:[%s6542_s16 + $0x88] sm:$0xf0] }
 0x2a4   : > { %v2742_v46 = vrot.slane %v2741_v31, 1  ;;  %v2782_v14 = vpack.c.bf16 %v2695_v33, %v2695_v33  ;;  %v2784_v51 = vpack.c.bf16 %v2707_v9, %v2707_v9  ;;  %v2786_v38 = vpack.c.bf16 %v2719_v16, %v2719_v16  ;;  %v8053_v16 = vld [vmem:[#allocation48_spill] sm:$0xff] }
 0x2a5   : > { %v2754_v23 = vrot.slane %v2753_v55, 1  ;;  %v2788_v27 = vpack.c.bf16 %v2731_v61, %v2731_v61  ;;  %v2864_v13 = vunpack.c.l.b16 %v2762_v39  ;;  %v2866_v20 = vunpack.c.l.b16 %v2764_v28 }
 0x2a6   : > { %v2743_v17 = vadd.f32 %v2742_v46, %v2741_v31  ;;  %v2868_v40 = vunpack.c.l.b16 %v2766_v48  ;;  %v2870_v12 = vunpack.c.l.b16 %v2768_v44  ;;  %v2872_v1 = vunpack.c.l.b16 %v2770_v58 }
 0x2a7   : > { %v2755_v25 = vadd.f32 %v2754_v23, %v2753_v55  ;;  %v2874_v18 = vunpack.c.l.b16 %v2772_v54  ;;  %v2880_v60 = vunpack.c.l.b16 %v2778_v4  ;;  %v2882_v19 = vunpack.c.l.b16 %v2780_v49  ;;  %v1815_v23 = vpop.f32.mrf.mxu3 }
 0x2a8   : > { %v2790_v15 = vpack.c.bf16 %v2743_v17, %v2743_v17  ;;  %v2876_v52 = vunpack.c.l.b16 %v2774_v22  ;;  %v2878_v2 = vunpack.c.l.b16 %v2776_v3  ;;  %v2884_v35 = vunpack.c.l.b16 %v2782_v14 }
 0x2a9   : > { %v2792_v32 = vpack.c.bf16 %v2755_v25, %v2755_v25  ;;  %v2886_v34 = vunpack.c.l.b16 %v2784_v51  ;;  %v2888_v21 = vunpack.c.l.b16 %v2786_v38  ;;  %v2890_v39 = vunpack.c.l.b16 %v2788_v27 }
 0x2aa   : > { %v2896_v33 = vsel %vm1826_vm1, %v2866_v20, %v2864_v13  ;;  %v2892_v42 = vunpack.c.l.b16 %v2790_v15  ;;  %v2911_v28 = vsel %vm1826_vm1, %v2882_v19, %v2880_v60  ;;  %v4736_v9 = vor.u32 %v5174_v41, %v4735_v5 }
 0x2ab   : > { %v2897_v6 = vsel %vm1829_vm2, %v2868_v40, %v2896_v33  ;;  %v2912_v11 = vsel %vm1829_vm2, %v2884_v35, %v2911_v28  ;;  %v4740_v48 = vor.u32 %v5173_v57, %v4737_v26  ;;  %v2201_v31 = vsub.f32 %v8053_v16, %v7421_v8  ;;  %v8064_v40 = vld [vmem:[#allocation55_spill] sm:$0xff] }
 0x2ac   : > { %v2898_v30 = vsel %vm1832_vm3, %v2870_v12, %v2897_v6  ;;  %v2913_v58 = vsel %vm1832_vm3, %v2886_v34, %v2912_v11  ;;  %3110 = vmatpush.bf16.msrb.mxu1 %v4736_v9  ;;  %5443 = vpow2.f32 %v7366_v24  ;;  %v2894_v61 = vunpack.c.l.b16 %v2792_v32  ;;  %v8066_v32 = vld [vmem:[#allocation53_spill] sm:$0xff] }
 0x2ad   : > { %v2899_v44 = vsel %vm1835_vm4, %v2872_v1, %v2898_v30  ;;  %v2914_v54 = vsel %vm1835_vm4, %v2888_v21, %v2913_v58  ;;  %3138 = vmatpush.bf16.msrb.mxu3 %v4740_v48  ;;  %5445 = vpow2.f32 %v7368_v7  ;;  %v2248_v46 = vmul.f32 1.442695, %v2201_v31 }
 0x2ae   : > { %v2900_v55 = vsel %vm1838_vm6, %v2874_v18, %v2899_v44  ;;  %v2915_v8 = vsel %vm1838_vm6, %v2890_v39, %v2914_v54  ;;  %5447 = vpow2.f32 %v7370_v37  ;;  %v2215_v3 = vsub.f32 %v7239_v36, %v7351_v47  ;;  %v8057_v47 = vld [vmem:[#allocation50_spill] sm:$0xff] }
 0x2af   : > { %v2901_v22 = vsel %vm1841_vm7, %v2876_v52, %v2900_v55  ;;  %v8054_v24 = vsub.f32 %v8035_v56, %v7310_v10  ;;  %v2916_v49 = vsel %vm1841_vm7, %v2892_v42, %v2915_v8  ;;  %5449 = vpow2.f32 %v7374_v45  ;;  %v8067_v52 = vld [vmem:[#allocation72_spill] sm:$0xff] }
 0x2b0   : > { %v8055_v7 = vsub.f32 %v8037_v53, %v7312_v0  ;;  %v2903_v51 = vsel %vm2902_vm8, %v2878_v2, %v2901_v22  ;;  %v2917_v37 = vsel %vm2902_vm8, %v2894_v61, %v2916_v49  ;;  %5451 = vpow2.f32 %v7376_v29  ;;  %v8058_v0 = vld [vmem:[#allocation73_spill] sm:$0xff]  ;;  %v8060_v29 = vld [vmem:[#allocation62_spill] sm:$0xff] }
 0x2b1   : > { %v2256_v4 = vmul.f32 1.442695, %v8054_v24  ;;  %v8056_v36 = vsub.f32 %v8039_v43, %v7314_v63  ;;  %v2925_v56 = vpack.c.b16 %v2917_v37, %v2903_v51  ;;  %v2217_v38 = vsub.f32 %v8057_v47, %v7457_v59  ;;  %v8061_v63 = vld [vmem:[#allocation67_spill] sm:$0xff]  ;;  %v8062_v43 = vld [vmem:[#allocation74_spill] sm:$0xff] }
 0x2b2   : > { %v2260_v14 = vmul.f32 1.442695, %v8055_v7  ;;  %5453 = vpow2.f32 %v7380_v62  ;;  %v7535_v45 = vpop.eup %5443  ;;  %v8059_v53 = vsub.f32 %v8041_v50, %v8058_v0  ;;  %v7543_v13 = vadd.f32 %v1815_v23, %v8060_v29  ;;  %v8065_v50 = vld [vmem:[#allocation70_spill] sm:$0xff] }
 0x2b3   : > { %v2264_v10 = vmul.f32 1.442695, %v8056_v36  ;;  %5455 = vpow2.f32 %v2248_v46  ;;  %v7540_v27 = vpop.eup %5445  ;;  %v8063_v20 = vsub.f32 %v8061_v63, %v8062_v43  ;;  %3097 = vmatmul.bf16.vlgmr.msrb.gmra.mxu0 %v2925_v56  ;;  %3125 = vmatmul.bf16.vlgmr.msrb.gmra.mxu2 %v2925_v56  ;;  %v2300_v62 = vrot.slane %v7535_v45, 4 }
 0x2b4   : > { %v2268_v17 = vmul.f32 1.442695, %v8059_v53  ;;  %5457 = vpow2.f32 %v2256_v4  ;;  %v7549_v59 = vpop.eup %5447  ;;  %v7553_v12 = vmul.f32 %v8065_v50, %v8064_v40  ;;  %v2276_v1 = vmul.f32 1.442695, %v2215_v3 }
 0x2b5   : > { %v2272_v25 = vmul.f32 1.442695, %v8063_v20  ;;  %5459 = vpow2.f32 %v2260_v14  ;;  %v2312_v15 = vrot.slane %v7540_v27, 4  ;;  %v7556_v18 = vpop.eup %5449  ;;  %v2280_v60 = vmul.f32 1.442695, %v2217_v38 }
 0x2b6   : > { %5461 = vpow2.f32 %v2264_v10  ;;  %v2301_v19 = vadd.f32 %v7535_v45, %v2300_v62  ;;  %v2324_v5 = vrot.slane %v7549_v59, 4  ;;  %v7560_v41 = vpop.eup %5451  ;;  %v2523_v2 = vmul.f32 %v8067_v52, %v8066_v32 }
 0x2b7   : > { %5463 = vpow2.f32 %v2268_v17  ;;  %v2313_v35 = vadd.f32 %v7540_v27, %v2312_v15  ;;  %v2336_v57 = vrot.slane %v7556_v18, 4  ;;  %v2348_v39 = vrot.slane %v7560_v41, 4 }
 0x2b8   : > { %v7566_v26 = vpop.eup %5453  ;;  %5465 = vpow2.f32 %v2272_v25  ;;  %v2302_v34 = vrot.slane %v2301_v19, 2  ;;  %v2325_v21 = vadd.f32 %v7549_v59, %v2324_v5  ;;  %v7590_v14 = vmul.f32 %v2523_v2, %v7543_v13 }
 0x2b9   : > { %v7570_v33 = vpop.eup %5455  ;;  %5467 = vpow2.f32 %v2276_v1  ;;  %v2314_v42 = vrot.slane %v2313_v35, 2  ;;  %v2337_v6 = vadd.f32 %v7556_v18, %v2336_v57  ;;  %v2360_v28 = vrot.slane %v7566_v26, 4 }
 0x2ba   : > { %v7574_v9 = vpop.eup %5457  ;;  %5469 = vpow2.f32 %v2280_v60  ;;  %v2303_v30 = vadd.f32 %v2302_v34, %v2301_v19  ;;  %v2326_v11 = vrot.slane %v2325_v21, 2  ;;  %v2349_v48 = vadd.f32 %v7560_v41, %v2348_v39 }
 0x2bb   : > { %v7577_v16 = vpop.eup %5459  ;;  %v2315_v31 = vadd.f32 %v2314_v42, %v2313_v35  ;;  %v2338_v44 = vrot.slane %v2337_v6, 2  ;;  %v2361_v58 = vadd.f32 %v7566_v26, %v2360_v28  ;;  %v2372_v61 = vrot.slane %v7570_v33, 4 }
 0x2bc   : > { %v7581_v55 = vpop.eup %5461  ;;  %v2304_v54 = vrot.slane %v2303_v30, 1  ;;  %v2327_v22 = vadd.f32 %v2326_v11, %v2325_v21  ;;  %v2350_v8 = vrot.slane %v2349_v48, 2  ;;  %v2396_v46 = vrot.slane %v7574_v9, 4 }
 0x2bd   : > { %v7584_v3 = vpop.eup %5463  ;;  %v2316_v24 = vrot.slane %v2315_v31, 1  ;;  %v2339_v4 = vadd.f32 %v2338_v44, %v2337_v6  ;;  %v2362_v49 = vrot.slane %v2361_v58, 2  ;;  %v2373_v23 = vadd.f32 %v7570_v33, %v2372_v61 }
 0x2be   : > { %v7587_v7 = vpop.eup %5465  ;;  %v2328_v51 = vrot.slane %v2327_v22, 1  ;;  %v2351_v37 = vadd.f32 %v2350_v8, %v2349_v48  ;;  %v2397_v36 = vadd.f32 %v7574_v9, %v2396_v46  ;;  %v2305_v56 = vadd.f32 %v2304_v54, %v2303_v30 }
 0x2bf   : > { %v7593_v10 = vpop.eup %5467  ;;  %v2340_v47 = vrot.slane %v2339_v4, 1  ;;  %v2363_v38 = vadd.f32 %v2362_v49, %v2361_v58  ;;  %v2374_v0 = vrot.slane %v2373_v23, 2  ;;  %v2317_v17 = vadd.f32 %v2316_v24, %v2315_v31 }
 0x2c0   : > { %v7595_v53 = vpop.eup %5469  ;;  %v2352_v29 = vrot.slane %v2351_v37, 1  ;;  %v2398_v63 = vrot.slane %v2397_v36, 2  ;;  %v2408_v43 = vrot.slane %v7577_v16, 4  ;;  %v2329_v20 = vadd.f32 %v2328_v51, %v2327_v22 }
 0x2c1   : > { %v2364_v25 = vrot.slane %v2363_v38, 1  ;;  %v2375_v62 = vadd.f32 %v2374_v0, %v2373_v23  ;;  %v2420_v50 = vrot.slane %v7581_v55, 4  ;;  %v2341_v1 = vadd.f32 %v2340_v47, %v2339_v4 }
 0x2c2   : > { %v2399_v15 = vadd.f32 %v2398_v63, %v2397_v36  ;;  %v2409_v60 = vadd.f32 %v7577_v16, %v2408_v43  ;;  %v2432_v19 = vrot.slane %v7584_v3, 4  ;;  %v2353_v5 = vadd.f32 %v2352_v29, %v2351_v37 }
 0x2c3   : > { %v2376_v32 = vrot.slane %v2375_v62, 1  ;;  %v2421_v52 = vadd.f32 %v7581_v55, %v2420_v50  ;;  %v2444_v2 = vrot.slane %v7587_v7, 4  ;;  %v2365_v35 = vadd.f32 %v2364_v25, %v2363_v38 }
 0x2c4   : > { %v2410_v57 = vrot.slane %v2409_v60, 2  ;;  %v2433_v34 = vadd.f32 %v7584_v3, %v2432_v19  ;;  %v2456_v21 = vrot.slane %v7593_v10, 4  ;;  %v2400_v39 = vrot.slane %v2399_v15, 1 }
 0x2c5   : > { %v2422_v42 = vrot.slane %v2421_v52, 2  ;;  %v2445_v6 = vadd.f32 %v7587_v7, %v2444_v2  ;;  %v2468_v28 = vrot.slane %v7595_v53, 4  ;;  %v2377_v30 = vadd.f32 %v2376_v32, %v2375_v62 }
 0x2c6   : > { %v2411_v11 = vadd.f32 %v2410_v57, %v2409_v60  ;;  %v2434_v48 = vrot.slane %v2433_v34, 2  ;;  %v2457_v31 = vadd.f32 %v7593_v10, %v2456_v21  ;;  %5471 = vrcp.f32 %v2305_v56 }
 0x2c7   : > { %v2423_v44 = vadd.f32 %v2422_v42, %v2421_v52  ;;  %v2446_v58 = vrot.slane %v2445_v6, 2  ;;  %v2469_v61 = vadd.f32 %v7595_v53, %v2468_v28  ;;  %5473 = vrcp.f32 %v2317_v17 }
 0x2c8   : > { %v2412_v54 = vrot.slane %v2411_v11, 1  ;;  %v2435_v22 = vadd.f32 %v2434_v48, %v2433_v34  ;;  %v2458_v8 = vrot.slane %v2457_v31, 2  ;;  %5475 = vrcp.f32 %v2329_v20 }
 0x2c9   : > { %v2424_v46 = vrot.slane %v2423_v44, 1  ;;  %v2447_v24 = vadd.f32 %v2446_v58, %v2445_v6  ;;  %v2470_v4 = vrot.slane %v2469_v61, 2  ;;  %v2401_v49 = vadd.f32 %v2400_v39, %v2399_v15 }
 0x2ca   : > { %v2436_v23 = vrot.slane %v2435_v22, 1  ;;  %v2459_v51 = vadd.f32 %v2458_v8, %v2457_v31  ;;  %5477 = vrcp.f32 %v2341_v1  ;;  %v2413_v37 = vadd.f32 %v2412_v54, %v2411_v11 }
 0x2cb   : > { %v2448_v36 = vrot.slane %v2447_v24, 1  ;;  %v2471_v47 = vadd.f32 %v2470_v4, %v2469_v61  ;;  %5479 = vrcp.f32 %v2353_v5  ;;  %v2425_v38 = vadd.f32 %v2424_v46, %v2423_v44 }
 0x2cc   : > { %v2460_v0 = vrot.slane %v2459_v51, 1  ;;  %5481 = vrcp.f32 %v2365_v35  ;;  %v2576_v56 = vrot.slane %v7553_v12, 4  ;;  %v5472_v29 = vpop.eup %5471  ;;  %v2437_v63 = vadd.f32 %v2436_v23, %v2435_v22 }
 0x2cd   : > { %v2449_v17 = vadd.f32 %v2448_v36, %v2447_v24  ;;  %v2472_v43 = vrot.slane %v2471_v47, 1  ;;  %5483 = vrcp.f32 %v2377_v30  ;;  %v5474_v25 = vpop.eup %5473  ;;  %v2509_v20 = vmul.f32 %v5472_v29, %v7535_v45 }
 0x2ce   : > { %5485 = vrcp.f32 %v2401_v49  ;;  %v2577_v62 = vadd.f32 %v2576_v56, %v7553_v12  ;;  %v2672_v50 = vrot.slane %v7590_v14, 4  ;;  %v5476_v1 = vpop.eup %5475  ;;  %v2461_v15 = vadd.f32 %v2460_v0, %v2459_v51 }
 0x2cf   : > { %v2473_v60 = vadd.f32 %v2472_v43, %v2471_v47  ;;  %5487 = vrcp.f32 %v2413_v37  ;;  %v2511_v19 = vmul.f32 %v5474_v25, %v7540_v27  ;;  %v2513_v32 = vmul.f32 %v5476_v1, %v7549_v59 }
 0x2d0   : > { %v5478_v5 = vpop.eup %5477  ;;  %5489 = vrcp.f32 %v2425_v38  ;;  %v2541_v52 = vmul.f32 %v2509_v20, %v8064_v40  ;;  %v2578_v2 = vrot.slane %v2577_v62, 2  ;;  %v7620_v21 = vadd.f32 %v2672_v50, %v7590_v14 }
 0x2d1   : > { %v5480_v35 = vpop.eup %5479  ;;  %5491 = vrcp.f32 %v2437_v63  ;;  %v2515_v45 = vmul.f32 %v5478_v5, %v7556_v18  ;;  %v2543_v12 = vmul.f32 %v2511_v19, %v8064_v40  ;;  %v2545_v34 = vmul.f32 %v2513_v32, %v8064_v40 }
 0x2d2   : > { %v5482_v57 = vpop.eup %5481  ;;  %5493 = vrcp.f32 %v2449_v17  ;;  %v2579_v39 = vadd.f32 %v2578_v2, %v2577_v62  ;;  %v2588_v59 = vrot.slane %v2541_v52, 4  ;;  %v2517_v6 = vmul.f32 %v5480_v35, %v7560_v41 }
 0x2d3   : > { %v5484_v27 = vpop.eup %5483  ;;  %5495 = vrcp.f32 %v2461_v15  ;;  %v2547_v28 = vmul.f32 %v2515_v45, %v8064_v40  ;;  %v2519_v30 = vmul.f32 %v5482_v57, %v7566_v26  ;;  %v2600_v48 = vrot.slane %v2543_v12, 4 }
 0x2d4   : > { %v5486_v42 = vpop.eup %5485  ;;  %5497 = vrcp.f32 %v2473_v60  ;;  %v2589_v11 = vadd.f32 %v2588_v59, %v2541_v52  ;;  %v2521_v44 = vmul.f32 %v5484_v27, %v7570_v33  ;;  %v2612_v14 = vrot.slane %v2545_v34, 4 }
 0x2d5   : > { %v5488_v18 = vpop.eup %5487  ;;  %v2674_v58 = vrot.slane %v7620_v21, 2  ;;  %v2525_v54 = vmul.f32 %v5486_v42, %v7574_v9  ;;  %v2580_v22 = vrot.slane %v2579_v39, 1  ;;  %v2601_v46 = vadd.f32 %v2600_v48, %v2543_v12 }
 0x2d6   : > { %v5490_v31 = vpop.eup %5489  ;;  %v2590_v8 = vrot.slane %v2589_v11, 2  ;;  %v2527_v24 = vmul.f32 %v5488_v18, %v7577_v16  ;;  %v2549_v4 = vmul.f32 %v2517_v6, %v8064_v40  ;;  %v2613_v26 = vadd.f32 %v2612_v14, %v2545_v34 }
 0x2d7   : > { %v5492_v61 = vpop.eup %5491  ;;  %v2624_v49 = vrot.slane %v2547_v28, 4  ;;  %v2529_v51 = vmul.f32 %v5490_v31, %v7581_v55  ;;  %v2551_v37 = vmul.f32 %v2519_v30, %v8064_v40  ;;  %v2602_v36 = vrot.slane %v2601_v46, 2 }
 0x2d8   : > { %v5494_v41 = vpop.eup %5493  ;;  %v2531_v33 = vmul.f32 %v5492_v61, %v7584_v3  ;;  %v2553_v9 = vmul.f32 %v2521_v44, %v8064_v40  ;;  %v2591_v38 = vadd.f32 %v2590_v8, %v2589_v11  ;;  %v2614_v0 = vrot.slane %v2613_v26, 2 }
 0x2d9   : > { %v5496_v23 = vpop.eup %5495  ;;  %v2625_v56 = vadd.f32 %v2624_v49, %v2547_v28  ;;  %v2533_v16 = vmul.f32 %v5494_v41, %v7587_v7  ;;  %v2557_v63 = vmul.f32 %v2525_v54, %v7543_v13  ;;  %v7637_v17 = vadd.f32 %v2580_v22, %v2579_v39 }
 0x2da   : > { %v5498_v47 = vpop.eup %5497  ;;  %v2535_v29 = vmul.f32 %v5496_v23, %v7593_v10  ;;  %v2559_v55 = vmul.f32 %v2527_v24, %v7543_v13  ;;  %v2603_v3 = vadd.f32 %v2602_v36, %v2601_v46  ;;  %v2615_v43 = vadd.f32 %v2614_v0, %v2613_v26 }
 0x2db   : > { %v2636_v25 = vrot.slane %v2549_v4, 4  ;;  %v2537_v20 = vmul.f32 %v5498_v47, %v7595_v53  ;;  %v2561_v40 = vmul.f32 %v2529_v51, %v7543_v13  ;;  %v2563_v62 = vmul.f32 %v2531_v33, %v7543_v13 }
 0x2dc   : > { %v2648_v50 = vrot.slane %v2551_v37, 4  ;;  %v2592_v1 = vrot.slane %v2591_v38, 1  ;;  %v2626_v7 = vrot.slane %v2625_v56, 2  ;;  %v2660_v10 = vrot.slane %v2553_v9, 4 }
 0x2dd   : > { %v2637_v15 = vadd.f32 %v2636_v25, %v2549_v4  ;;  %v2565_v60 = vmul.f32 %v2533_v16, %v7543_v13  ;;  %v2567_v19 = vmul.f32 %v2535_v29, %v7543_v13  ;;  %v2684_v32 = vrot.slane %v2557_v63, 4 }
 0x2de   : > { %v2649_v5 = vadd.f32 %v2648_v50, %v2551_v37  ;;  %v2604_v52 = vrot.slane %v2603_v3, 1  ;;  %v2616_v2 = vrot.slane %v2615_v43, 1  ;;  %v2661_v45 = vadd.f32 %v2660_v10, %v2553_v9 }
 0x2df   : > { %v2638_v35 = vrot.slane %v2637_v15, 2  ;;  %v2569_v53 = vmul.f32 %v2537_v20, %v7543_v13  ;;  %v2685_v57 = vadd.f32 %v2684_v32, %v2557_v63  ;;  %v2696_v34 = vrot.slane %v2559_v55, 4 }
 0x2e0   : > { %v2650_v12 = vrot.slane %v2649_v5, 2  ;;  %v7646_v27 = vadd.f32 %v2592_v1, %v2591_v38  ;;  %v2627_v39 = vadd.f32 %v2626_v7, %v2625_v56  ;;  %v2675_v59 = vadd.f32 %v2674_v58, %v7620_v21 }
 0x2e1   : > { %v2708_v42 = vrot.slane %v2561_v40, 4  ;;  %v2639_v6 = vadd.f32 %v2638_v35, %v2637_v15  ;;  %v2662_v28 = vrot.slane %v2661_v45, 2  ;;  %v2686_v18 = vrot.slane %v2685_v57, 2 }
 0x2e2   : > { %v2697_v30 = vadd.f32 %v2696_v34, %v2559_v55  ;;  %v7649_v11 = vadd.f32 %v2604_v52, %v2603_v3  ;;  %v7651_v48 = vadd.f32 %v2616_v2, %v2615_v43  ;;  %v2720_v44 = vrot.slane %v2563_v62, 4 }
 0x2e3   : > { %v2709_v31 = vadd.f32 %v2708_v42, %v2561_v40  ;;  %v2651_v13 = vadd.f32 %v2650_v12, %v2649_v5  ;;  %v2687_v14 = vadd.f32 %v2686_v18, %v2685_v57  ;;  %v2732_v54 = vrot.slane %v2565_v60, 4 }
 0x2e4   : > { %v2698_v61 = vrot.slane %v2697_v30, 2  ;;  %v2628_v22 = vrot.slane %v2627_v39, 1  ;;  %v2676_v8 = vrot.slane %v2675_v59, 1  ;;  %v2721_v41 = vadd.f32 %v2720_v44, %v2563_v62 }
 0x2e5   : > { %v2710_v46 = vrot.slane %v2709_v31, 2  ;;  %v2640_v21 = vrot.slane %v2639_v6, 1  ;;  %v2663_v58 = vadd.f32 %v2662_v28, %v2661_v45  ;;  %v2733_v4 = vadd.f32 %v2732_v54, %v2565_v60 }
 0x2e6   : > { %v2699_v24 = vadd.f32 %v2698_v61, %v2697_v30  ;;  %v2688_v26 = vrot.slane %v2687_v14, 1  ;;  %v2722_v23 = vrot.slane %v2721_v41, 2  ;;  %v2744_v51 = vrot.slane %v2567_v19, 4 }
 0x2e7   : > { %v2711_v49 = vadd.f32 %v2710_v46, %v2709_v31  ;;  %v2652_v33 = vrot.slane %v2651_v13, 1  ;;  %v2734_v36 = vrot.slane %v2733_v4, 2  ;;  %v2756_v47 = vrot.slane %v2569_v53, 4 }
 0x2e8   : > { %v2700_v37 = vrot.slane %v2699_v24, 1  ;;  %v2629_v9 = vadd.f32 %v2628_v22, %v2627_v39  ;;  %v2723_v0 = vadd.f32 %v2722_v23, %v2721_v41  ;;  %v2745_v56 = vadd.f32 %v2744_v51, %v2567_v19 }
 0x2e9   : > { %v2712_v38 = vrot.slane %v2711_v49, 1  ;;  %v2664_v16 = vrot.slane %v2663_v58, 1  ;;  %v2677_v29 = vadd.f32 %v2676_v8, %v2675_v59  ;;  %v2735_v63 = vadd.f32 %v2734_v36, %v2733_v4 }
 0x2ea   : > { %v2757_v55 = vadd.f32 %v2756_v47, %v2569_v53  ;;  %v2641_v3 = vadd.f32 %v2640_v21, %v2639_v6  ;;  %v2689_v43 = vadd.f32 %v2688_v26, %v2687_v14  ;;  %v2724_v25 = vrot.slane %v2723_v0, 1 }
 0x2eb   : > { %v2746_v20 = vrot.slane %v2745_v56, 2  ;;  %v2653_v40 = vadd.f32 %v2652_v33, %v2651_v13  ;;  %v2701_v62 = vadd.f32 %v2700_v37, %v2699_v24  ;;  %v2736_v50 = vrot.slane %v2735_v63, 1 }
 0x2ec   : > { %v2758_v1 = vrot.slane %v2757_v55, 2  ;;  %v2713_v7 = vadd.f32 %v2712_v38, %v2711_v49  ;;  %v2763_v10 = vpack.c.bf16 %v7637_v17, %v7637_v17  ;;  %v2765_v60 = vpack.c.bf16 %v7646_v27, %v7646_v27 }
 0x2ed   : > { %v2747_v15 = vadd.f32 %v2746_v20, %v2745_v56  ;;  %v2665_v19 = vadd.f32 %v2664_v16, %v2663_v58  ;;  %v2725_v5 = vadd.f32 %v2724_v25, %v2723_v0  ;;  %v2767_v52 = vpack.c.bf16 %v7649_v11, %v7649_v11 }
 0x2ee   : > { %v2759_v32 = vadd.f32 %v2758_v1, %v2757_v55  ;;  %v2737_v2 = vadd.f32 %v2736_v50, %v2735_v63  ;;  %v2779_v45 = vpack.c.bf16 %v2677_v29, %v2677_v29  ;;  %v2781_v53 = vpack.c.bf16 %v2689_v43, %v2689_v43  ;;  %v2826_v43 = vld [vmem:[%s855_s23] sm:$0x3] }
 0x2ef   : > { %v2748_v35 = vrot.slane %v2747_v15, 1  ;;  %v2769_v57 = vpack.c.bf16 %v7651_v48, %v7651_v48  ;;  %v2771_v34 = vpack.c.bf16 %v2629_v9, %v2629_v9  ;;  %v2783_v39 = vpack.c.bf16 %v2701_v62, %v2701_v62 }
 0x2f0   : > { %v2760_v12 = vrot.slane %v2759_v32, 1  ;;  %v2785_v59 = vpack.c.bf16 %v2713_v7, %v2713_v7  ;;  %v2865_v42 = vunpack.c.l.b16 %v2763_v10  ;;  %v2867_v27 = vunpack.c.l.b16 %v2765_v60 }
 0x2f1   : > { %v2749_v17 = vadd.f32 %v2748_v35, %v2747_v15  ;;  %v2773_v28 = vpack.c.bf16 %v2641_v3, %v2641_v3  ;;  %v2787_v18 = vpack.c.bf16 %v2725_v5, %v2725_v5  ;;  %v2869_v30 = vunpack.c.l.b16 %v2767_v52  ;;  %v5509_v5 = vld [vmem:[#allocation2 + $0x10] sm:$0xff]  ;;  %v5510_v52 = vld [vmem:[#allocation2] sm:$0xff] }
 0x2f2   : > { %v2761_v6 = vadd.f32 %v2760_v12, %v2759_v32  ;;  %v2775_v31 = vpack.c.bf16 %v2653_v40, %v2653_v40  ;;  %v2789_v11 = vpack.c.bf16 %v2737_v2, %v2737_v2  ;;  %v2881_v44 = vunpack.c.l.b16 %v2779_v45 }
 0x2f3   : > { %v2883_v13 = vunpack.c.l.b16 %v2781_v53  ;;  %v2777_v14 = vpack.c.bf16 %v2665_v19, %v2665_v19  ;;  %v2791_v61 = vpack.c.bf16 %v2749_v17, %v2749_v17  ;;  %v2871_v54 = vunpack.c.l.b16 %v2769_v57 }
 0x2f4   : > { %v2885_v22 = vunpack.c.l.b16 %v2783_v39  ;;  %v2793_v8 = vpack.c.bf16 %v2761_v6, %v2761_v6  ;;  %v2887_v48 = vunpack.c.l.b16 %v2785_v59  ;;  %v2904_v46 = vsel %vm1826_vm1, %v2867_v27, %v2865_v42  ;;  %v5511_v59 = vld [vmem:[#allocation2 + $0x18] sm:$0xff]  ;;  %v5512_v27 = vld [vmem:[#allocation2 + $0x8] sm:$0xff] }
 0x2f5   : > { %v2918_v41 = vsel %vm1826_vm1, %v2883_v13, %v2881_v44  ;;  %v2873_v21 = vunpack.c.l.b16 %v2771_v34  ;;  %v2889_v58 = vunpack.c.l.b16 %v2787_v18  ;;  %v2905_v24 = vsel %vm1829_vm2, %v2869_v30, %v2904_v46 }
 0x2f6   : > { %v2919_v4 = vsel %vm1829_vm2, %v2885_v22, %v2918_v41  ;;  %v2875_v26 = vunpack.c.l.b16 %v2773_v28  ;;  %v2891_v49 = vunpack.c.l.b16 %v2789_v11  ;;  %v2906_v23 = vsel %vm1832_vm3, %v2871_v54, %v2905_v24 }
 0x2f7   : > { %v2920_v51 = vsel %vm1832_vm3, %v2887_v48, %v2919_v4  ;;  %v2877_v33 = vunpack.c.l.b16 %v2775_v31  ;;  %v2893_v37 = vunpack.c.l.b16 %v2791_v61  ;;  %v2907_v36 = vsel %vm1835_vm4, %v2873_v21, %v2906_v23 }
 0x2f8   : > { %v2921_v47 = vsel %vm1835_vm4, %v2889_v58, %v2920_v51  ;;  %v2879_v9 = vunpack.c.l.b16 %v2777_v14  ;;  %v2895_v38 = vunpack.c.l.b16 %v2793_v8  ;;  %v2908_v0 = vsel %vm1838_vm6, %v2875_v26, %v2907_v36  ;;  %v4855_v51 = vld [vmem:[%s6566_s1 + $0x70] sm:$0xf] }
 0x2f9   : > { %v2922_v56 = vsel %vm1838_vm6, %v2891_v49, %v2921_v47  ;;  %v2909_v16 = vsel %vm1841_vm7, %v2877_v33, %v2908_v0  ;;  %v2828_v20 = vperm.slane %v2826_v43, 0  ;;  %v2829_v50 = vperm.slane %v2826_v43, 1  ;;  %v5204_v33 = vld [vmem:[%s6566_s1 + $0x74] sm:$0xf0]  ;;  %v4911_v43 = vld [vmem:[%s6566_s1 + $0xe0] sm:$0xf] }
 0x2fa   : > { %v2923_v29 = vsel %vm1841_vm7, %v2893_v37, %v2922_v56  ;;  %v2910_v63 = vsel %vm2902_vm8, %v2879_v9, %v2909_v16  ;;  %v6097_v18 = vmov 256.0   ;;  %v4919_v37 = vld [vmem:[%s6566_s1 + $0xf0] sm:$0xf]  ;;  %v4856_v36 = vor.u32 %v5204_v33, %v4855_v51  ;;  %v5220_v47 = vld [vmem:[%s6566_s1 + $0xf4] sm:$0xf0] }
 0x2fb   : > { %v2924_v55 = vsel %vm2902_vm8, %v2895_v38, %v2923_v29  ;;  %5499 = vrcp.f32 %v6097_v18  ;;  %v5203_v9 = vld [vmem:[%s6566_s1 + $0x74] sm:$0xf]  ;;  %v4857_v38 = vld [vmem:[%s6566_s1 + $0x78] sm:$0xf0]  ;;  %v4920_v0 = vor.u32 %v5220_v47, %v4919_v37  ;;  %v4815_v51 = vld [vmem:[%s6566_s1 + $0x20] sm:$0xf] }
 0x2fc   : > { %v2926_v3 = vpack.c.b16 %v2924_v55, %v2910_v63  ;;  %v4860_v56 = vor.u32 %v5203_v9, %v4857_v38  ;;  %v5219_v16 = vld [vmem:[%s6566_s1 + $0xf4] sm:$0xf]  ;;  %v4921_v29 = vld [vmem:[%s6566_s1 + $0xf8] sm:$0xf0]  ;;  %3426 = vmatpush.bf16.msra.mxu0 %v4856_v36  ;;  %v4847_v55 = vld [vmem:[%s6566_s1 + $0x60] sm:$0xf] }
 0x2fd   : > { %v4924_v63 = vor.u32 %v5219_v16, %v4921_v29  ;;  %3440 = vmatpush.bf16.msra.mxu1 %v4920_v0  ;;  %v5194_v36 = vld [vmem:[%s6566_s1 + $0x24] sm:$0xf0]  ;;  %v4879_v47 = vld [vmem:[%s6566_s1 + $0xa0] sm:$0xf]  ;;  %v5193_v16 = vld [vmem:[%s6566_s1 + $0x24] sm:$0xf] }
 0x2fe   : > { %3111 = vmatmul.bf16.vlgmr.msrb.gmra.mxu1 %v2926_v3  ;;  %3139 = vmatmul.bf16.vlgmr.msrb.gmra.mxu3 %v2926_v3  ;;  %v5202_v3 = vld [vmem:[%s6566_s1 + $0x64] sm:$0xf0]  ;;  %v4816_v0 = vor.u32 %v5194_v36, %v4815_v51  ;;  %v4817_v29 = vld [vmem:[%s6566_s1 + $0x28] sm:$0xf0]  ;;  %v4967_v36 = vld [vmem:[%s6574_s26 + $0x50] sm:$0xf] }
 0x2ff   : > { %3454 = vmatpush.bf16.msra.mxu2 %v4860_v56  ;;  %3468 = vmatpush.bf16.msra.mxu3 %v4924_v63  ;;  %v5210_v9 = vld [vmem:[%s6566_s1 + $0xa4] sm:$0xf0]  ;;  %v5209_v63 = vld [vmem:[%s6566_s1 + $0xa4] sm:$0xf] }
 0x300   : > { %v4880_v56 = vor.u32 %v5210_v9, %v4879_v47  ;;  %v5232_v47 = vld [vmem:[%s6574_s26 + $0x54] sm:$0xf0] }
 0x301   : > { %v5500_v30 = vpop.eup %5499 }
 0x302   : > { %v3158_v31 = vmul.f32 256.0, %v5500_v30  ;;  %vm3162_vm9 = vweird.f32 %v5500_v30 }
 0x304   : > { %v3159_v11 = vsub.f32 1.0, %v3158_v31  ;;  %v5213_v31 = vld [vmem:[%s6566_s1 + $0xc4] sm:$0xf] }
 0x306   : > { %v3160_v44 = vmul.f32 %v5500_v30, %v3159_v11  ;;  %v4897_v11 = vld [vmem:[%s6566_s1 + $0xc8] sm:$0xf0] }
 0x308   : > { %v3161_v13 = vadd.f32 %v5500_v30, %v3160_v44  ;;  %v4900_v44 = vor.u32 %v5213_v31, %v4897_v11  ;;  %v5235_v31 = vld [vmem:[%s6574_s26 + $0x74] sm:$0xf]  ;;  %v4985_v11 = vld [vmem:[%s6574_s26 + $0x78] sm:$0xf0] }
 0x30a   : > { %v7677_v14 = vsel %vm3162_vm9, %v5500_v30, %v3161_v13  ;;  %v4823_v13 = vld [vmem:[%s6566_s1 + $0x30] sm:$0xf] }
 0x330   : > { %v3098_v25 = vpop.f32.mrf.mxu0 }
 0x331   : > { %v3099_v1 = vadd.f32 %v3098_v25, %v2828_v20  ;;  %v4848_v25 = vor.u32 %v5202_v3, %v4847_v55  ;;  %v4820_v55 = vor.u32 %v5193_v16, %v4817_v29  ;;  %v4881_v3 = vld [vmem:[%s6566_s1 + $0xa8] sm:$0xf0]  ;;  %v5039_v16 = vld [vmem:[%s6574_s26 + $0xe0] sm:$0xf] }
 0x333   : > { %3427 = vmatpush.bf16.msra.mxu0 %v4848_v25  ;;  %v5192_v25 = vld [vmem:[%s6566_s1 + $0x14] sm:$0xf0] }
 0x336   : > { %v3126_v62 = vpop.f32.mrf.mxu2 }
 0x337   : > { %v3127_v15 = vadd.f32 %v3126_v62, %v2829_v50  ;;  %v4849_v62 = vld [vmem:[%s6566_s1 + $0x68] sm:$0xf0] }
 0x338   : > { %v3100_v19 = vpop.f32.mrf.mxu0 }
 0x339   : > { %v3101_v53 = vadd.f32 %v3100_v19, %v2828_v20  ;;  %v5218_v20 = vld [vmem:[%s6566_s1 + $0xe4] sm:$0xf0]  ;;  %v5200_v19 = vld [vmem:[%s6566_s1 + $0x54] sm:$0xf0] }
 0x33e   : > { %v3128_v45 = vpop.f32.mrf.mxu2 }
 0x33f   : > { %v3129_v34 = vadd.f32 %v3128_v45, %v2829_v50  ;;  %v4912_v50 = vor.u32 %v5218_v20, %v4911_v43  ;;  %v4807_v43 = vld [vmem:[%s6566_s1 + $0x10] sm:$0xf] }
 0x341   : > { %3441 = vmatpush.bf16.msra.mxu1 %v4912_v50  ;;  %v5208_v50 = vld [vmem:[%s6566_s1 + $0x94] sm:$0xf0] }
 0x37b   : > { %v3112_v40 = vpop.f32.mrf.mxu1 }
 0x37c   : > { %v3113_v7 = vadd.f32 %v3112_v40, %v3099_v1  ;;  %v5201_v40 = vld [vmem:[%s6566_s1 + $0x64] sm:$0xf] }
 0x37d   : > { %v4852_v1 = vor.u32 %v5201_v40, %v4849_v62  ;;  %v4884_v40 = vor.u32 %v5209_v63, %v4881_v3  ;;  %v4871_v62 = vld [vmem:[%s6566_s1 + $0x90] sm:$0xf]  ;;  %v5250_v63 = vld [vmem:[%s6574_s26 + $0xe4] sm:$0xf0] }
 0x37e   : > { %v3145_v32 = vadd.f32 %v5509_v5, %v3113_v7  ;;  %v5217_v7 = vld [vmem:[%s6566_s1 + $0xe4] sm:$0xf]  ;;  %v4903_v5 = vld [vmem:[%s6566_s1 + $0xd0] sm:$0xf]  ;;  %v5040_v3 = vor.u32 %v5250_v63, %v5039_v16  ;;  %v5225_v63 = vld [vmem:[%s6574_s26 + $0x24] sm:$0xf] }
 0x37f   : > { %3455 = vmatpush.bf16.msra.mxu2 %v4852_v1  ;;  %v4808_v1 = vor.u32 %v5192_v25, %v4807_v43  ;;  %v5041_v43 = vld [vmem:[%s6574_s26 + $0xe8] sm:$0xf0]  ;;  %v4943_v16 = vld [vmem:[%s6574_s26 + $0x20] sm:$0xf] }
 0x381   : > { %v3140_v10 = vpop.f32.mrf.mxu3 }
 0x382   : > { %v3141_v60 = vadd.f32 %v3140_v10, %v3127_v15  ;;  %v4913_v15 = vld [vmem:[%s6566_s1 + $0xe8] sm:$0xf0] }
 0x383   : > { %v3114_v35 = vpop.f32.mrf.mxu1  ;;  %v4916_v10 = vor.u32 %v5217_v7, %v4913_v15  ;;  %v5191_v7 = vld [vmem:[%s6566_s1 + $0x14] sm:$0xf]  ;;  %v4809_v15 = vld [vmem:[%s6566_s1 + $0x18] sm:$0xf0] }
 0x384   : > { %v3146_v2 = vadd.f32 %v5510_v52, %v3141_v60  ;;  %v3115_v57 = vadd.f32 %v3114_v35, %v3101_v53  ;;  %v4839_v60 = vld [vmem:[%s6566_s1 + $0x50] sm:$0xf]  ;;  %v5216_v52 = vld [vmem:[%s6566_s1 + $0xd4] sm:$0xf0]  ;;  %v4841_v35 = vld [vmem:[%s6566_s1 + $0x58] sm:$0xf0] }
 0x385   : > { %3469 = vmatpush.bf16.msra.mxu3 %v4916_v10  ;;  %v4904_v45 = vor.u32 %v5216_v52, %v4903_v5  ;;  %v5207_v10 = vld [vmem:[%s6566_s1 + $0x94] sm:$0xf]  ;;  %v4873_v5 = vld [vmem:[%s6566_s1 + $0x98] sm:$0xf0]  ;;  %v5190_v52 = vld [vmem:[%s6566_s1 + $0x4] sm:$0xf0] }
 0x386   : > { %v3151_v12 = vadd.f32 %v3146_v2, %v3145_v32  ;;  %v3147_v42 = vadd.f32 %v5511_v59, %v3115_v57  ;;  %v4905_v57 = vld [vmem:[%s6566_s1 + $0xd8] sm:$0xf0]  ;;  %v4895_v59 = vld [vmem:[%s6566_s1 + $0xc0] sm:$0xf] }
 0x387   : > { %3442 = vmatpush.bf16.msra.mxu1 %v4904_v45  ;;  %v5206_v45 = vld [vmem:[%s6566_s1 + $0x84] sm:$0xf0] }
 0x388   : > { %3152 = vadd.xlane.f32.xlu0 %v3151_v12  ;;  %v5215_v12 = vld [vmem:[%s6566_s1 + $0xd4] sm:$0xf] }
 0x389   : > { %v3142_v39 = vpop.f32.mrf.mxu3 }
 0x38a   : > { %v3143_v17 = vadd.f32 %v3142_v39, %v3129_v34  ;;  %v4908_v34 = vor.u32 %v5215_v12, %v4905_v57  ;;  %v4831_v39 = vld [vmem:[%s6566_s1 + $0x40] sm:$0xf]  ;;  %v4801_v12 = vld [vmem:[%s6566_s1 + $0x8] sm:$0xf0]  ;;  %v5205_v57 = vld [vmem:[%s6566_s1 + $0x84] sm:$0xf] }
 0x38c   : > { %v3148_v6 = vadd.f32 %v5512_v27, %v3143_v17  ;;  %v5198_v17 = vld [vmem:[%s6566_s1 + $0x44] sm:$0xf0]  ;;  %3470 = vmatpush.bf16.msra.mxu3 %v4908_v34  ;;  %v4865_v34 = vld [vmem:[%s6566_s1 + $0x88] sm:$0xf0] }
 0x38d   : > { %v5214_v27 = vld [vmem:[%s6566_s1 + $0xc4] sm:$0xf0] }
 0x38e   : > { %v3154_v28 = vadd.f32 %v3148_v6, %v3147_v42  ;;  %v4896_v18 = vor.u32 %v5214_v27, %v4895_v59  ;;  %v4983_v59 = vld [vmem:[%s6574_s26 + $0x70] sm:$0xf] }
 0x390   : > { %3155 = vadd.xlane.f32.xlu0 %v3154_v28  ;;  %v4833_v28 = vld [vmem:[%s6566_s1 + $0x48] sm:$0xf0]  ;;  %3443 = vmatpush.bf16.msra.mxu1 %v4896_v18  ;;  %v4868_v18 = vor.u32 %v5205_v57, %v4865_v34 }
 0x391   : > { %3471 = vmatpush.bf16.msra.mxu3 %v4900_v44 }
 0x3fb   : > { %v3153_v61 = vpop.xlane.xlu0 %3152 }
 0x3fc   : > { %v3164_v54 = vmul.f32 %v7677_v14, %v3153_v61  ;;  %v5196_v61 = vld [vmem:[%s6566_s1 + $0x34] sm:$0xf0] }
 0x3fe   : > { %v7680_v22 = vsub.f32 %v3145_v32, %v3164_v54  ;;  %v7682_v8 = vsub.f32 %v3146_v2, %v3164_v54  ;;  %v4840_v32 = vor.u32 %v5200_v19, %v4839_v60  ;;  %v5199_v2 = vld [vmem:[%s6566_s1 + $0x54] sm:$0xf]  ;;  %v4887_v54 = vld [vmem:[%s6566_s1 + $0xb0] sm:$0xf]  ;;  %v4872_v60 = vor.u32 %v5208_v50, %v4871_v62 }
 0x3ff   : > { %v4844_v53 = vor.u32 %v5199_v2, %v4841_v35  ;;  %v4812_v19 = vor.u32 %v5191_v7, %v4809_v15  ;;  %v4876_v2 = vor.u32 %v5207_v10, %v4873_v5  ;;  %v4863_v35 = vld [vmem:[%s6566_s1 + $0x80] sm:$0xf]  ;;  %v4959_v7 = vld [vmem:[%s6574_s26 + $0x40] sm:$0xf]  ;;  %v5230_v15 = vld [vmem:[%s6574_s26 + $0x44] sm:$0xf0] }
 0x400   : > { %v3170_v48 = vmul.f32 %v7680_v22, %v7680_v22  ;;  %v3171_v46 = vmul.f32 %v7682_v8, %v7682_v8  ;;  %3428 = vmatpush.bf16.msra.mxu0 %v4840_v32  ;;  %v4799_v32 = vld [vmem:[%s6566_s1] sm:$0xf]  ;;  %v4864_v27 = vor.u32 %v5206_v45, %v4863_v35  ;;  %v4961_v5 = vld [vmem:[%s6574_s26 + $0x48] sm:$0xf0] }
 0x401   : > { %3456 = vmatpush.bf16.msra.mxu2 %v4844_v53  ;;  %v5189_v53 = vld [vmem:[%s6566_s1 + $0x4] sm:$0xf] }
 0x402   : > { %v3174_v41 = vadd.f32 %v3171_v46, %v3170_v48  ;;  %v4824_v48 = vor.u32 %v5196_v61, %v4823_v13  ;;  %v5212_v46 = vld [vmem:[%s6566_s1 + $0xb4] sm:$0xf0]  ;;  %v4988_v61 = vor.u32 %v5235_v31, %v4985_v11 }
 0x403   : > { %v3156_v21 = vpop.xlane.xlu0 %3155 }
 0x404   : > { %v3165_v58 = vmul.f32 %v7677_v14, %v3156_v21  ;;  %3175 = vadd.xlane.f32.xlu1 %v3174_v41  ;;  %v5195_v41 = vld [vmem:[%s6566_s1 + $0x34] sm:$0xf]  ;;  %v4825_v21 = vld [vmem:[%s6566_s1 + $0x38] sm:$0xf0] }
 0x406   : > { %v7689_v24 = vsub.f32 %v3147_v42, %v3165_v58  ;;  %v7691_v4 = vsub.f32 %v3148_v6, %v3165_v58  ;;  %v4832_v42 = vor.u32 %v5198_v17, %v4831_v39  ;;  %v5197_v6 = vld [vmem:[%s6566_s1 + $0x44] sm:$0xf]  ;;  %v4888_v58 = vor.u32 %v5212_v46, %v4887_v54 }
 0x407   : > { %v4836_v30 = vor.u32 %v5197_v6, %v4833_v28  ;;  %v4800_v17 = vor.u32 %v5190_v52, %v4799_v32  ;;  %v4804_v6 = vor.u32 %v5189_v53, %v4801_v12  ;;  %v5236_v28 = vld [vmem:[%s6574_s26 + $0x74] sm:$0xf0]  ;;  %v4975_v54 = vld [vmem:[%s6574_s26 + $0x60] sm:$0xf]  ;;  %v4960_v52 = vor.u32 %v5230_v15, %v4959_v7  ;;  %v3149_v53 = vld [vmem:[%s865_s19] sm:$0x3] }
 0x408   : > { %v3172_v26 = vmul.f32 %v7689_v24, %v7689_v24  ;;  %v3173_v49 = vmul.f32 %v7691_v4, %v7691_v4  ;;  %3429 = vmatpush.bf16.msra.mxu0 %v4832_v42  ;;  %3444 = vmatpush.bf16.msra.mxu1 %v4888_v58  ;;  %v5047_v58 = vld [vmem:[%s6574_s26 + $0xf0] sm:$0xf] }
 0x409   : > { %3457 = vmatpush.bf16.msra.mxu2 %v4836_v30  ;;  %v4984_v30 = vor.u32 %v5236_v28, %v4983_v59  ;;  %v4935_v15 = vld [vmem:[%s6574_s26 + $0x10] sm:$0xf] }
 0x40a   : > { %v3177_v23 = vadd.f32 %v3173_v49, %v3172_v26  ;;  %v4828_v26 = vor.u32 %v5195_v41, %v4825_v21  ;;  %v5211_v49 = vld [vmem:[%s6566_s1 + $0xb4] sm:$0xf]  ;;  %v5233_v41 = vld [vmem:[%s6574_s26 + $0x64] sm:$0xf]  ;;  %v4977_v21 = vld [vmem:[%s6574_s26 + $0x68] sm:$0xf0] }
 0x40b   : > { %v4980_v9 = vor.u32 %v5233_v41, %v4977_v21  ;;  %v5033_v21 = vld [vmem:[%s6574_s26 + $0xd8] sm:$0xf0] }
 0x40c   : > { %3178 = vadd.xlane.f32.xlu1 %v3177_v23  ;;  %v4889_v23 = vld [vmem:[%s6566_s1 + $0xb8] sm:$0xf0]  ;;  %3430 = vmatpush.bf16.msra.mxu0 %v4824_v48  ;;  %v5234_v48 = vld [vmem:[%s6574_s26 + $0x64] sm:$0xf0] }
 0x40d   : > { %v4892_v37 = vor.u32 %v5211_v49, %v4889_v23  ;;  %3458 = vmatpush.bf16.msra.mxu2 %v4828_v26  ;;  %3445 = vmatpush.bf16.msra.mxu1 %v4880_v56  ;;  %v5252_v26 = vld [vmem:[%s6574_s26 + $0xf4] sm:$0xf0]  ;;  %v5251_v49 = vld [vmem:[%s6574_s26 + $0xf4] sm:$0xf]  ;;  %v4976_v51 = vor.u32 %v5234_v48, %v4975_v54  ;;  %v4969_v56 = vld [vmem:[%s6574_s26 + $0x58] sm:$0xf0] }
 0x40e   : > { %v5031_v54 = vld [vmem:[%s6574_s26 + $0xd0] sm:$0xf]  ;;  %v5248_v48 = vld [vmem:[%s6574_s26 + $0xd4] sm:$0xf0] }
 0x40f   : > { %3472 = vmatpush.bf16.msra.mxu3 %v4892_v37  ;;  %v5049_v37 = vld [vmem:[%s6574_s26 + $0xf8] sm:$0xf0]  ;;  %v5032_v41 = vor.u32 %v5248_v48, %v5031_v54 }
 0x410   : > { %3431 = vmatpush.bf16.msra.mxu0 %v4816_v0  ;;  %v5231_v0 = vld [vmem:[%s6574_s26 + $0x54] sm:$0xf]  ;;  %v3260_v48 = vld [vmem:[%s915_s7] sm:$0x3] }
 0x411   : > { %3459 = vmatpush.bf16.msra.mxu2 %v4820_v55  ;;  %3446 = vmatpush.bf16.msra.mxu1 %v4872_v60  ;;  %v5249_v55 = vld [vmem:[%s6574_s26 + $0xe4] sm:$0xf] }
 0x412   : > { %v5044_v62 = vor.u32 %v5249_v55, %v5041_v43 }
 0x413   : > { %3473 = vmatpush.bf16.msra.mxu3 %v4884_v40  ;;  %v4968_v40 = vor.u32 %v5232_v47, %v4967_v36  ;;  %v5246_v47 = vld [vmem:[%s6574_s26 + $0xc4] sm:$0xf0] }
 0x414   : > { %3432 = vmatpush.bf16.msra.mxu0 %v4808_v1  ;;  %v4972_v1 = vor.u32 %v5231_v0, %v4969_v56 }
 0x415   : > { %3460 = vmatpush.bf16.msra.mxu2 %v4812_v19  ;;  %3447 = vmatpush.bf16.msra.mxu1 %v4864_v27  ;;  %v5229_v19 = vld [vmem:[%s6574_s26 + $0x44] sm:$0xf] }
 0x417   : > { %3474 = vmatpush.bf16.msra.mxu3 %v4876_v2  ;;  %v4964_v2 = vor.u32 %v5229_v19, %v4961_v5  ;;  %v4937_v5 = vld [vmem:[%s6574_s26 + $0x18] sm:$0xf0] }
 0x418   : > { %3433 = vmatpush.bf16.msra.mxu0 %v4800_v17  ;;  %v3210_v17 = vperm.slane %v3149_v53, 1 }
 0x419   : > { %3461 = vmatpush.bf16.msra.mxu2 %v4804_v6 }
 0x41b   : > { %3475 = vmatpush.bf16.msra.mxu3 %v4868_v18 }
 0x41c   : > { %3686 = vmatpush.bf16.msrb.mxu0 %v4984_v30 }
 0x41d   : > { %3714 = vmatpush.bf16.msrb.mxu2 %v4988_v61 }
 0x420   : > { %3687 = vmatpush.bf16.msrb.mxu0 %v4976_v51  ;;  %v5227_v51 = vld [vmem:[%s6574_s26 + $0x34] sm:$0xf] }
 0x421   : > { %3715 = vmatpush.bf16.msrb.mxu2 %v4980_v9  ;;  %v5245_v9 = vld [vmem:[%s6574_s26 + $0xc4] sm:$0xf] }
 0x424   : > { %3688 = vmatpush.bf16.msrb.mxu0 %v4968_v40  ;;  %v5244_v40 = vld [vmem:[%s6574_s26 + $0xb4] sm:$0xf0] }
 0x425   : > { %3716 = vmatpush.bf16.msrb.mxu2 %v4972_v1  ;;  %v5017_v1 = vld [vmem:[%s6574_s26 + $0xb8] sm:$0xf0] }
 0x428   : > { %3689 = vmatpush.bf16.msrb.mxu0 %v4960_v52  ;;  %v5242_v52 = vld [vmem:[%s6574_s26 + $0xa4] sm:$0xf0] }
 0x429   : > { %3717 = vmatpush.bf16.msrb.mxu2 %v4964_v2 }
 0x477   : > { %v3176_v33 = vpop.xlane.xlu1 %3175 }
 0x478   : > { %v3180_v38 = vmul.f32 %v3176_v33, %v7677_v14  ;;  %v5048_v33 = vor.u32 %v5252_v26, %v5047_v58  ;;  %v4951_v58 = vld [vmem:[%s6574_s26 + $0x30] sm:$0xf]  ;;  %v5228_v26 = vld [vmem:[%s6574_s26 + $0x34] sm:$0xf0] }
 0x47a   : > { %v7748_v20 = vadd.f32 1e-05, %v3180_v38  ;;  %v5052_v38 = vor.u32 %v5251_v49, %v5049_v37  ;;  %3700 = vmatpush.bf16.msrb.mxu1 %v5048_v33  ;;  %v4953_v33 = vld [vmem:[%s6574_s26 + $0x38] sm:$0xf0]  ;;  %v5023_v37 = vld [vmem:[%s6574_s26 + $0xc0] sm:$0xf] }
 0x47b   : > { %v4956_v36 = vor.u32 %v5227_v51, %v4953_v33  ;;  %v5024_v0 = vor.u32 %v5246_v47, %v5023_v37 }
 0x47c   : > { %5501 = vrsqrt.f32 %v7748_v20  ;;  %3728 = vmatpush.bf16.msrb.mxu3 %v5052_v38  ;;  %vm3190_vm11 = vweird.f32 %v7748_v20  ;;  %v5025_v38 = vld [vmem:[%s6574_s26 + $0xc8] sm:$0xf0] }
 0x47d   : > { %v5028_v56 = vor.u32 %v5245_v9, %v5025_v38  ;;  %3718 = vmatpush.bf16.msrb.mxu2 %v4956_v36 }
 0x47e   : > { %3701 = vmatpush.bf16.msrb.mxu1 %v5040_v3  ;;  %v4945_v3 = vld [vmem:[%s6574_s26 + $0x28] sm:$0xf0] }
 0x47f   : > { %v3179_v39 = vpop.xlane.xlu1 %3178  ;;  %v4948_v43 = vor.u32 %v5225_v63, %v4945_v3 }
 0x480   : > { %v3181_v42 = vmul.f32 %v3179_v39, %v7677_v14  ;;  %3729 = vmatpush.bf16.msrb.mxu3 %v5044_v62  ;;  %v3150_v39 = vld [vmem:[%s875_s18] sm:$0x3]  ;;  %v5243_v62 = vld [vmem:[%s6574_s26 + $0xb4] sm:$0xf] }
 0x481   : > { %v3218_v27 = vperm.slane %v3150_v39, 0  ;;  %v3219_v6 = vperm.slane %v3150_v39, 1  ;;  %3719 = vmatpush.bf16.msrb.mxu2 %v4948_v43  ;;  %v5020_v7 = vor.u32 %v5243_v62, %v5017_v1  ;;  %v5221_v39 = vld [vmem:[%s6574_s26 + $0x4] sm:$0xf]  ;;  %v3520_v62 = vld [vmem:[%s935_s0] sm:$0x3] }
 0x482   : > { %v5502_v44 = vpop.eup %5501  ;;  %v7770_v13 = vadd.f32 1e-05, %v3181_v42  ;;  %3702 = vmatpush.bf16.msrb.mxu1 %v5032_v41  ;;  %v3522_v1 = vperm.slane %v3520_v62, 0 }
 0x483   : > { %v3185_v46 = vmul.f32 %v5502_v44, %v7748_v20  ;;  %vm3191_vm10 = vweird.f32 %v5502_v44  ;;  %v3209_v20 = vperm.slane %v3149_v53, 0  ;;  %v5009_v53 = vld [vmem:[%s6574_s26 + $0xa8] sm:$0xf0] }
 0x484   : > { %5503 = vrsqrt.f32 %v7770_v13  ;;  %vm3192_vm12 = vmor %vm3190_vm11, %vm3191_vm10  ;;  %vm3200_vm14 = vweird.f32 %v7770_v13 }
 0x485   : > { %v3186_v23 = vmul.f32 %v5502_v44, %v3185_v46  ;;  %v5247_v46 = vld [vmem:[%s6574_s26 + $0xd4] sm:$0xf] }
 0x486   : > { %v5036_v49 = vor.u32 %v5247_v46, %v5033_v21  ;;  %3703 = vmatpush.bf16.msrb.mxu1 %v5024_v0  ;;  %v3262_v21 = vperm.slane %v3260_v48, 0 }
 0x487   : > { %v3187_v29 = vmul.f32 0.5, %v3186_v23  ;;  %v4952_v23 = vor.u32 %v5228_v26, %v4951_v58 }
 0x488   : > { %3730 = vmatpush.bf16.msrb.mxu3 %v5036_v49 }
 0x489   : > { %v3188_v25 = vsub.f32 1.5, %v3187_v29  ;;  %3690 = vmatpush.bf16.msrb.mxu0 %v4952_v23  ;;  %v5226_v29 = vld [vmem:[%s6574_s26 + $0x24] sm:$0xf0]  ;;  %v3263_v23 = vperm.slane %v3260_v48, 1 }
 0x48a   : > { %v5504_v50 = vpop.eup %5503  ;;  %v4944_v55 = vor.u32 %v5226_v29, %v4943_v16 }
 0x48b   : > { %v3189_v10 = vmul.f32 %v5502_v44, %v3188_v25  ;;  %v3195_v60 = vmul.f32 %v5504_v50, %v7770_v13  ;;  %vm3201_vm13 = vweird.f32 %v5504_v50  ;;  %v5015_v25 = vld [vmem:[%s6574_s26 + $0xb0] sm:$0xf] }
 0x48c   : > { %vm3202_vm15 = vmor %vm3200_vm14, %vm3201_vm13  ;;  %3731 = vmatpush.bf16.msrb.mxu3 %v5028_v56 }
 0x48d   : > { %v3196_v32 = vmul.f32 %v5504_v50, %v3195_v60  ;;  %v3193_v35 = vsel %vm3192_vm12, %v5502_v44, %v3189_v10  ;;  %3691 = vmatpush.bf16.msrb.mxu0 %v4944_v55  ;;  %v5224_v10 = vld [vmem:[%s6574_s26 + $0x14] sm:$0xf0]  ;;  %v5223_v60 = vld [vmem:[%s6574_s26 + $0x14] sm:$0xf] }
 0x48e   : > { %v3204_v57 = vmul.f32 %v3193_v35, %v7680_v22  ;;  %v3205_v34 = vmul.f32 %v3193_v35, %v7682_v8  ;;  %v4936_v19 = vor.u32 %v5224_v10, %v4935_v15  ;;  %v4940_v2 = vor.u32 %v5223_v60, %v4937_v5 }
 0x48f   : > { %v3197_v45 = vmul.f32 0.5, %v3196_v32  ;;  %v5007_v32 = vld [vmem:[%s6574_s26 + $0xa0] sm:$0xf]  ;;  %v3523_v10 = vperm.slane %v3520_v62, 1 }
 0x490   : > { %v3213_v22 = vmul.f32 %v3209_v20, %v3204_v57  ;;  %v3214_v8 = vmul.f32 %v3210_v17, %v3205_v34  ;;  %3732 = vmatpush.bf16.msrb.mxu3 %v5020_v7  ;;  %v5008_v35 = vor.u32 %v5242_v52, %v5007_v32  ;;  %3720 = vmatpush.bf16.msrb.mxu2 %v4940_v2  ;;  %v4927_v57 = vld [vmem:[%s6574_s26] sm:$0xf]  ;;  %v5222_v34 = vld [vmem:[%s6574_s26 + $0x4] sm:$0xf0] }
 0x491   : > { %v3198_v12 = vsub.f32 1.5, %v3197_v45  ;;  %v5241_v45 = vld [vmem:[%s6574_s26 + $0xa4] sm:$0xf]  ;;  %3692 = vmatpush.bf16.msrb.mxu0 %v4936_v19 }
 0x492   : > { %v7805_v11 = vadd.f32 %v3218_v27, %v3213_v22  ;;  %v7809_v13 = vadd.f32 %v3219_v6, %v3214_v8  ;;  %v4991_v22 = vld [vmem:[%s6574_s26 + $0x80] sm:$0xf]  ;;  %v5238_v8 = vld [vmem:[%s6574_s26 + $0x84] sm:$0xf0] }
 0x493   : > { %v3199_v59 = vmul.f32 %v5504_v50, %v3198_v12  ;;  %v5012_v12 = vor.u32 %v5241_v45, %v5009_v53 }
 0x495   : > { %v3203_v42 = vsel %vm3202_vm15, %v5504_v50, %v3199_v59  ;;  %v5016_v50 = vor.u32 %v5244_v40, %v5015_v25  ;;  %3733 = vmatpush.bf16.msrb.mxu3 %v5012_v12 }
 0x496   : > { %v3206_v28 = vmul.f32 %v3203_v42, %v7689_v24  ;;  %v3207_v18 = vmul.f32 %v3203_v42, %v7691_v4  ;;  %v4999_v42 = vld [vmem:[%s6574_s26 + $0x90] sm:$0xf] }
 0x497   : > { %3704 = vmatpush.bf16.msrb.mxu1 %v5016_v50 }
 0x498   : > { %v3215_v30 = vmul.f32 %v3209_v20, %v3206_v28  ;;  %v3216_v31 = vmul.f32 %v3210_v17, %v3207_v18  ;;  %v4928_v20 = vor.u32 %v5222_v34, %v4927_v57  ;;  %v4929_v17 = vld [vmem:[%s6574_s26 + $0x8] sm:$0xf0]  ;;  %v5001_v18 = vld [vmem:[%s6574_s26 + $0x98] sm:$0xf0] }
 0x499   : > { %v4932_v59 = vor.u32 %v5221_v39, %v4929_v17 }
 0x49a   : > { %v7807_v44 = vadd.f32 %v3218_v27, %v3215_v30  ;;  %v7811_v61 = vadd.f32 %v3219_v6, %v3216_v31  ;;  %v5240_v27 = vld [vmem:[%s6574_s26 + $0x94] sm:$0xf0]  ;;  %v5239_v6 = vld [vmem:[%s6574_s26 + $0x94] sm:$0xf]  ;;  %3693 = vmatpush.bf16.msrb.mxu0 %v4928_v20  ;;  %v5237_v31 = vld [vmem:[%s6574_s26 + $0x84] sm:$0xf] }
 0x49b   : > { %3705 = vmatpush.bf16.msrb.mxu1 %v5008_v35  ;;  %v5000_v28 = vor.u32 %v5240_v27, %v4999_v42  ;;  %3721 = vmatpush.bf16.msrb.mxu2 %v4932_v59  ;;  %v5004_v30 = vor.u32 %v5239_v6, %v5001_v18 }
 0x49c   : > { %v3226_v24 = vpack.c.bf16 %v7807_v44, %v7805_v11  ;;  %v3227_v4 = vpack.c.bf16 %v7811_v61, %v7809_v13 }
 0x49d   : > { %3734 = vmatpush.bf16.msrb.mxu3 %v5004_v30 }
 0x49e   : > { %3434 = vmatmul.bf16.vlgmr.msra.gmra.mxu0 %v3226_v24  ;;  %3448 = vmatmul.bf16.vlgmr.msra.gmra.mxu1 %v3227_v4 }
 0x49f   : > { %3462 = vmatmul.bf16.vlgmr.msra.gmra.mxu2 %v3226_v24  ;;  %3476 = vmatmul.bf16.vlgmr.msra.gmra.mxu3 %v3227_v4  ;;  %v4993_v24 = vld [vmem:[%s6574_s26 + $0x88] sm:$0xf0]  ;;  %v4992_v4 = vor.u32 %v5238_v8, %v4991_v22 }
 0x4a0   : > { %3706 = vmatpush.bf16.msrb.mxu1 %v5000_v28  ;;  %v4996_v54 = vor.u32 %v5237_v31, %v4993_v24 }
 0x4a2   : > { %3735 = vmatpush.bf16.msrb.mxu3 %v4996_v54 }
 0x4a4   : > { %3707 = vmatpush.bf16.msrb.mxu1 %v4992_v4 }
 0x51b   : > { %v3435_v46 = vpop.f32.mrf.mxu0  ;;  %v3449_v41 = vpop.f32.mrf.mxu1 }
 0x51c   : > { %v3436_v58 = vadd.f32 %v3435_v46, %v3262_v21 }
 0x51e   : > { %v3450_v33 = vadd.f32 %v3449_v41, %v3436_v58 }
 0x520   : > { %v3482_v38 = vmax.f32 %v3450_v33, 0.0 }
 0x522   : > { %v3463_v26 = vpop.f32.mrf.mxu2  ;;  %v3477_v49 = vpop.f32.mrf.mxu3 }
 0x523   : > { %v3437_v51 = vpop.f32.mrf.mxu0  ;;  %v3451_v36 = vpop.f32.mrf.mxu1  ;;  %v3464_v9 = vadd.f32 %v3463_v26, %v3263_v23 }
 0x524   : > { %v3438_v37 = vadd.f32 %v3437_v51, %v3262_v21 }
 0x525   : > { %v3478_v29 = vadd.f32 %v3477_v49, %v3464_v9 }
 0x526   : > { %v3452_v47 = vadd.f32 %v3451_v36, %v3438_v37  ;;  %v3746_v36 = vld [vmem:[%s885_s2] sm:$0x3] }
 0x527   : > { %v3483_v43 = vmax.f32 %v3478_v29, 0.0  ;;  %v3800_v29 = vperm.slane %v3746_v36, 1 }
 0x528   : > { %v3484_v0 = vmax.f32 %v3452_v47, 0.0 }
 0x52a   : > { %v3486_v56 = vpack.c.bf16 %v3484_v0, %v3482_v38  ;;  %v3465_v16 = vpop.f32.mrf.mxu2  ;;  %v3479_v55 = vpop.f32.mrf.mxu3  ;;  %v3747_v38 = vld [vmem:[%s895_s28] sm:$0x3] }
 0x52b   : > { %v3466_v63 = vadd.f32 %v3465_v16, %v3263_v23  ;;  %v3799_v16 = vperm.slane %v3746_v36, 0 }
 0x52c   : > { %3694 = vmatmul.bf16.vlgmr.msrb.gmra.mxu0 %v3486_v56  ;;  %3722 = vmatmul.bf16.vlgmr.msrb.gmra.mxu2 %v3486_v56 }
 0x52d   : > { %v3480_v3 = vadd.f32 %v3479_v55, %v3466_v63  ;;  %v3808_v55 = vperm.slane %v3747_v38, 0 }
 0x52f   : > { %v3485_v25 = vmax.f32 %v3480_v3, 0.0  ;;  %v3809_v3 = vperm.slane %v3747_v38, 1 }
 0x531   : > { %v3487_v40 = vpack.c.bf16 %v3485_v25, %v3483_v43 }
 0x533   : > { %3708 = vmatmul.bf16.vlgmr.msrb.gmra.mxu1 %v3487_v40  ;;  %3736 = vmatmul.bf16.vlgmr.msrb.gmra.mxu3 %v3487_v40 }
 0x5a9   : > { %v3695_v50 = vpop.f32.mrf.mxu0 }
 0x5aa   : > { %v3696_v60 = vadd.f32 %v3695_v50, %v3522_v1 }
 0x5af   : > { %v3723_v15 = vpop.f32.mrf.mxu2 }
 0x5b0   : > { %v3709_v7 = vpop.f32.mrf.mxu1  ;;  %v3724_v5 = vadd.f32 %v3723_v15, %v3523_v10 }
 0x5b1   : > { %v3710_v19 = vadd.f32 %v3709_v7, %v3696_v60  ;;  %v3697_v2 = vpop.f32.mrf.mxu0 }
 0x5b2   : > { %v3698_v57 = vadd.f32 %v3697_v2, %v3522_v1 }
 0x5b3   : > { %v3742_v35 = vadd.f32 %v3710_v19, %v7805_v11 }
 0x5b6   : > { %v3737_v32 = vpop.f32.mrf.mxu3 }
 0x5b7   : > { %v3738_v52 = vadd.f32 %v3737_v32, %v3724_v5  ;;  %v3725_v12 = vpop.f32.mrf.mxu2 }
 0x5b8   : > { %v3711_v53 = vpop.f32.mrf.mxu1  ;;  %v3726_v20 = vadd.f32 %v3725_v12, %v3523_v10 }
 0x5b9   : > { %v3743_v45 = vadd.f32 %v3738_v52, %v7809_v13  ;;  %v3712_v39 = vadd.f32 %v3711_v53, %v3698_v57 }
 0x5bb   : > { %v3748_v34 = vadd.f32 %v3743_v45, %v3742_v35  ;;  %v3744_v42 = vadd.f32 %v3712_v39, %v7807_v44 }
 0x5bd   : > { %3749 = vadd.xlane.f32.xlu2 %v3748_v34 }
 0x5be   : > { %v3739_v17 = vpop.f32.mrf.mxu3 }
 0x5bf   : > { %v3740_v59 = vadd.f32 %v3739_v17, %v3726_v20 }
 0x5c1   : > { %v3745_v27 = vadd.f32 %v3740_v59, %v7811_v61 }
 0x5c3   : > { %v3751_v6 = vadd.f32 %v3745_v27, %v3744_v42 }
 0x5c5   : > { %3752 = vadd.xlane.f32.xlu2 %v3751_v6 }
 0x630   : > { %v3750_v28 = vpop.xlane.xlu2 %3749 }
 0x631   : > { %v3754_v11 = vmul.f32 %v3750_v28, %v7677_v14 }
 0x633   : > { %v3756_v18 = vsub.f32 %v3742_v35, %v3754_v11  ;;  %v3757_v13 = vsub.f32 %v3743_v45, %v3754_v11 }
 0x635   : > { %v3760_v22 = vmul.f32 %v3756_v18, %v3756_v18  ;;  %v3761_v8 = vmul.f32 %v3757_v13, %v3757_v13 }
 0x637   : > { %v3764_v30 = vadd.f32 %v3761_v8, %v3760_v22 }
 0x638   : > { %v3753_v31 = vpop.xlane.xlu2 %3752 }
 0x639   : > { %v3755_v24 = vmul.f32 %v3753_v31, %v7677_v14  ;;  %3765 = vadd.xlane.f32.xlu0 %v3764_v30 }
 0x63b   : > { %v3758_v4 = vsub.f32 %v3744_v42, %v3755_v24  ;;  %v3759_v54 = vsub.f32 %v3745_v27, %v3755_v24 }
 0x63d   : > { %v3762_v48 = vmul.f32 %v3758_v4, %v3758_v4  ;;  %v3763_v44 = vmul.f32 %v3759_v54, %v3759_v54 }
 0x63f   : > { %v3767_v61 = vadd.f32 %v3763_v44, %v3762_v48 }
 0x641   : > { %3768 = vadd.xlane.f32.xlu1 %v3767_v61 }
 0x6ac   : > { %v3766_v46 = vpop.xlane.xlu0 %3765 }
 0x6ad   : > { %v3770_v41 = vmul.f32 %v3766_v46, %v7677_v14 }
 0x6af   : > { %v3772_v21 = vadd.f32 1e-05, %v3770_v41 }
 0x6b1   : > { %5505 = vrsqrt.f32 %v3772_v21  ;;  %vm3780_vm2 = vweird.f32 %v3772_v21 }
 0x6b4   : > { %v3769_v58 = vpop.xlane.xlu1 %3768 }
 0x6b5   : > { %v3771_v26 = vmul.f32 %v3769_v58, %v7677_v14 }
 0x6b7   : > { %v5506_v49 = vpop.eup %5505  ;;  %v3773_v23 = vadd.f32 1e-05, %v3771_v26 }
 0x6b8   : > { %v3775_v51 = vmul.f32 %v5506_v49, %v3772_v21  ;;  %vm3781_vm0 = vweird.f32 %v5506_v49 }
 0x6b9   : > { %5507 = vrsqrt.f32 %v3773_v23  ;;  %vm3782_vm3 = vmor %vm3780_vm2, %vm3781_vm0  ;;  %vm3790_vm5 = vweird.f32 %v3773_v23 }
 0x6ba   : > { %v3776_v33 = vmul.f32 %v5506_v49, %v3775_v51 }
 0x6bc   : > { %v3777_v37 = vmul.f32 0.5, %v3776_v33 }
 0x6be   : > { %v3778_v47 = vsub.f32 1.5, %v3777_v37 }
 0x6bf   : > { %v5508_v9 = vpop.eup %5507 }
 0x6c0   : > { %v3779_v0 = vmul.f32 %v5506_v49, %v3778_v47  ;;  %v3785_v56 = vmul.f32 %v5508_v9, %v3773_v23  ;;  %vm3791_vm4 = vweird.f32 %v5508_v9 }
 0x6c1   : > { %vm3792_vm6 = vmor %vm3790_vm5, %vm3791_vm4 }
 0x6c2   : > { %v3783_v14 = vsel %vm3782_vm3, %v5506_v49, %v3779_v0  ;;  %v3786_v63 = vmul.f32 %v5508_v9, %v3785_v56 }
 0x6c3   : > { %v3794_v43 = vmul.f32 %v3783_v14, %v3756_v18  ;;  %v3795_v25 = vmul.f32 %v3783_v14, %v3757_v13 }
 0x6c4   : > { %v3787_v40 = vmul.f32 0.5, %v3786_v63 }
 0x6c5   : > { %v3803_v62 = vmul.f32 %v3799_v16, %v3794_v43  ;;  %v3804_v50 = vmul.f32 %v3800_v29, %v3795_v25 }
 0x6c6   : > { %v3788_v1 = vsub.f32 1.5, %v3787_v40 }
 0x6c7   : > { %v3812_v7 = vadd.f32 %v3808_v55, %v3803_v62  ;;  %v3813_v15 = vadd.f32 %v3809_v3, %v3804_v50 }
 0x6c8   : > { %v3789_v10 = vmul.f32 %v5508_v9, %v3788_v1 }
 0x6c9   : > { %3816 = vst [vmem:[#allocation2 + $0x10] sm:$0xff] %v3812_v7 }
 0x6ca   : > { %3817 = vst [vmem:[#allocation2] sm:$0xff] %v3813_v15  ;;  %v3793_v60 = vsel %vm3792_vm6, %v5508_v9, %v3789_v10 }
 0x6cb   : > { %v3796_v19 = vmul.f32 %v3793_v60, %v3758_v4  ;;  %v3797_v5 = vmul.f32 %v3793_v60, %v3759_v54 }
 0x6cd   : > { %v3805_v32 = vmul.f32 %v3799_v16, %v3796_v19  ;;  %v3806_v52 = vmul.f32 %v3800_v29, %v3797_v5 }
 0x6ce   : > { %3823 = sbr.rel (%p5053_p4) target bundleno = 2030 (0x7ee), region = 160 }
 0x6cf   : > { %v3814_v2 = vadd.f32 %v3808_v55, %v3805_v32  ;;  %v3815_v35 = vadd.f32 %v3809_v3, %v3806_v52 }
 0x6d1   : > { %3818 = vst [vmem:[#allocation2 + $0x18] sm:$0xff] %v3814_v2 }
 0x6d2   : > { %3819 = vst [vmem:[#allocation2 + $0x8] sm:$0xff] %v3815_v35 }
 0x6d3   : > { %v3824_v45 = vld [vmem:[#allocation2 + $0x10] sm:$0xff]  ;;  %v3825_v53 = vld [vmem:[#allocation2] sm:$0xff]  ;;  %v3828_v12 = vld [vmem:[#allocation28] sm:$0x3]  ;;  %v3870_v57 = vlaneseq  ;;  %v6098_v34 = vmov 0   ;;  %vm3901_vm7 = vcmask 58368  }
 0x6d4   : > { %5513 = vset.pattern.permute.xlu1 %v6098_v34  ;;  %v3830_v39 = vperm.slane %v3828_v12, 0  ;;  %v3831_v20 = vperm.slane %v3828_v12, 1  ;;  %v5518_v17 = vld [vmem:[#allocation3] ss:$0 sm:$0xff]  ;;  %5517 = vset.pattern.permute.xlu0 %v6098_v34  ;;  %v3867_v22 = vld [vmem:[#allocation9] sm:$0x3] }
 0x6d5   : > { %v3871_v59 = vshrl.u32 %v3870_v57, 7  ;;  %3848 = vperm.xlu1 %5513, %v5518_v17   ;;  %v3876_v8 = vperm.slane %v3867_v22, 1  ;;  %v3869_v31 = vperm.slane %v3867_v22, 0  ;;  %v3896_v29 = vand.u32 127, %v3870_v57 }
 0x6d6   : > { %v3834_v42 = vmul.f32 %v3830_v39, %v3824_v45  ;;  %v3835_v27 = vmul.f32 %v3831_v20, %v3825_v53 }
 0x6d7   : > { %5515 = vset.pattern.permute.xlu2 %v3871_v59 }
 0x6d8   : > { %v3826_v6 = vld [vmem:[#allocation2 + $0x18] sm:$0xff]  ;;  %v3838_v11 = vadd.f32 %v3835_v27, %v3834_v42 }
 0x6d9   : > { %v3827_v28 = vld [vmem:[#allocation2 + $0x8] sm:$0xff]  ;;  %v3836_v18 = vmul.f32 %v3830_v39, %v3826_v6 }
 0x6da   : > { %3839 = vadd.xlane.f32.xlu0 %v3838_v11  ;;  %v3837_v13 = vmul.f32 %v3831_v20, %v3827_v28 }
 0x6dc   : > { %v3841_v30 = vadd.f32 %v3837_v13, %v3836_v18 }
 0x6dd   : > { %5514 = vset.pattern.permute.xlu1 %v3871_v59 }
 0x6df   : > { %3881 = vperm.xlu2 %5515, %v3876_v8  }
 0x6e2   : > { %3842 = vadd.xlane.f32.xlu0 %v3841_v30 }
 0x6e5   : > { %3874 = vperm.xlu1 %5514, %v3869_v31  }
 0x6e7   : > { %5516 = vset.pattern.permute.xlu2 %v6098_v34 }
 0x739   : > { %v3882_v0 = vpop.permute.xlu2 %3881 }
 0x747   : > { %v3849_v24 = vpop.permute.xlu1 %3848 }
 0x74d   : > { %v3840_v4 = vpop.xlane.xlu0 %3839 }
 0x74e   : > { %v3851_v54 = vadd.f32 %v3849_v24, %v3840_v4 }
 0x750   : > { %v3853_v48 = vsub.f32 0.0, %v3851_v54 }
 0x752   : > { %v3855_v44 = vmul.f32 1.442695, %v3853_v48 }
 0x754   : > { %5519 = vpow2.f32 %v3855_v44 }
 0x755   : > { %v3843_v61 = vpop.xlane.xlu0 %3842 }
 0x756   : > { %v3852_v46 = vadd.f32 %v3849_v24, %v3843_v61 }
 0x757   : > { %v3875_v37 = vpop.permute.xlu1 %3874 }
 0x758   : > { %v3854_v41 = vsub.f32 0.0, %v3852_v46 }
 0x75a   : > { %v5520_v21 = vpop.eup %5519  ;;  %v3857_v58 = vmul.f32 1.442695, %v3854_v41 }
 0x75b   : > { %v3859_v26 = vadd.f32 1.0, %v5520_v21 }
 0x75c   : > { %5521 = vpow2.f32 %v3857_v58 }
 0x75d   : > { %5523 = vrcp.f32 %v3859_v26 }
 0x762   : > { %v5522_v49 = vpop.eup %5521 }
 0x763   : > { %v5524_v23 = vpop.eup %5523  ;;  %v3860_v51 = vadd.f32 1.0, %v5522_v49 }
 0x764   : > { %v3863_v33 = vmul.f32 1.442695, %v5524_v23 }
 0x765   : > { %5525 = vrcp.f32 %v3860_v51 }
 0x766   : > { %5527 = vpow2.f32 %v3863_v33 }
 0x76b   : > { %v5526_v36 = vpop.eup %5525 }
 0x76c   : > { %v5528_v47 = vpop.eup %5527  ;;  %v3865_v9 = vmul.f32 1.442695, %v5526_v36 }
 0x76d   : > { %v3885_v38 = vmul.f32 %v5528_v47, %v3875_v37 }
 0x76e   : > { %5529 = vpow2.f32 %v3865_v9 }
 0x76f   : > { %3890 = vperm.xlu2 %5516, %v3885_v38  }
 0x774   : > { %v5530_v56 = vpop.eup %5529 }
 0x775   : > { %v3886_v16 = vmul.f32 %v5530_v56, %v3882_v0 }
 0x777   : > { %3893 = vperm.xlu0 %5517, %v3886_v16  }
 0x7c9   : > { %v3891_v14 = vpop.permute.xlu2 %3890 }
 0x7ca   : > { %v3897_v55 = vperm.slane %v3891_v14, %v3896_v29 }
 0x7e9   : > { %v3894_v63 = vpop.permute.xlu0 %3893 }
 0x7ea   : > { %v3898_v3 = vperm.slane %v3894_v63, %v3896_v29 }
 0x7ec   : > { %v3899_v43 = vsel %vm1826_vm1, %v3898_v3, %v3897_v55 }
 0x7ed   : > { %3902 = vst.msk [vmem:[#allocation30] sm:$0x3] %vm3901_vm7, %v3899_v43 }
 0x7ee PF: > { %s8069_s29 = sld [smem:[#allocation42_spill]]  ;;  %s6099_s5 = smov [#allocation30]  }
 0x7ef   : > { %s3909_s9 = sshll.u32 %s6099_s5, 4  ;;  %s8070_s24 = sld [smem:[#allocation85_spill]]  ;;  %s3910_s9 = int_to_ptr.vmem [resolvable:$true] %s3909_s9 }
 0x7f4   : > { %p5324_p5 = scmp.eq.s32.totalorder %s8069_s29, 3 }
 0x7f5   : > { %s3911_s16 = sshll.u32 %s8070_s24, 4  ;;  %s3912_s16 = int_to_ptr.hbm [resolvable:$true] %s3911_s16 }
 0x7f6   : > { %5300 = dma.vmem_to_hbm [thread:$0]  (%p5324_p5), %s3910_s9, 32, %s3912_s16, [#allocation6]  }
 0x7f7   : > { %6068 = dma.done.wait (%p5324_p5), [#allocation6], 32  }
 0x7f8   : > { %6070 = vsyncadd (%p5324_p5), [#allocation6], 4294967264 }
 0x7f9 PF: > { %s8071_s28 = sld [smem:[#allocation43_spill]]  ;;  %s8074_s16 = smov %s6081_s27 }
 0x7fa   : > { %s8072_s26 = sld [smem:[#allocation41_spill]] }
 0x7fb   : > { %s8073_s21 = sld [smem:[#allocation44_spill]] }
 0x7ff   : > { %p48_p8 = scmp.ge.s32.totalorder %s8071_s28, 6  }
 0x801   : > { %s8075_s27 = smov %s8073_s21  ;;  %50 = sbr.rel (!%p48_p8) target bundleno = 29 (0x1d), region = 281 }
 0x806   :  { %3925 = vsyncpa [#allocation5], 1 }
 0x807   :  { %3927 = vsyncpa [#allocation5 + $0x1], 1 }
 0x808   :  { %3928 = vsyncpa [#allocation8], 1 }
 0x809   :  { %3929 = vsyncpa [#allocation11], 1 }
 0x80a   :  { %3931 = vsyncpa [#allocation11 + $0x1], 1 }
 0x80b   :  { %3932 = vsyncpa [#allocation14], 1 }
 0x80c   :  { %3934 = vsyncpa [#allocation14 + $0x1], 1 }
 0x80d   :  { %3935 = vsyncpa [#allocation17], 1 }
 0x80e   :  { %3937 = vsyncpa [#allocation17 + $0x1], 1 }
 0x80f   :  { %3938 = vsyncpa [#allocation20], 1 }
 0x810   :  { %3940 = vsyncpa [#allocation20 + $0x1], 1 }
 0x811   :  { %3941 = vsyncpa [#allocation23], 1 }
 0x812   :  { %3943 = vsyncpa [#allocation23 + $0x1], 1 }
 0x813   :  { %3944 = vsyncpa [#allocation26], 1 }
 0x814   :  { %3946 = vsyncpa [#allocation26 + $0x1], 1 }
 0x815   :  { %3947 = vsyncpa [#allocation29], 1 }
 0x816   :  { %3948 = vsyncpa [#allocation6], 1 }
 0x817   :  { %3950 = vsyncpa [#allocation6 + $0x1], 1 }

</bundles_post_ra>
